<compile_context>
chip_gen: v5e
topology: v5e:2x2
jax: 0.10.0
libtpu: 0.0.40
codegen_flags: <defaults>
</compile_context>

<pallas_src>
import functools

import jax
import jax.numpy as jnp
from jax import lax
from jax.experimental import pallas as pl
from jax.experimental.pallas import tpu as pltpu


def _resnet_block_kernel(x_ref, x_hbm, w1_ref, b1_ref, w2_ref, b2_ref, o_ref,
                         xpad_s, h1pad_s, halo_s, sem, *, res_scale, H):
    # x_ref   : (BH, W, Cp)        f32  auto-pipelined core rows of this band
    # x_hbm   : (N, H, W, Cp)      f32  raw HBM ref (manual halo DMA only)
    # w1_ref  : (3, 3*Cp, Cp)      bf16 conv1 weights, [kh][kw*Cp+ci, co]
    # b1_ref  : (1, Cp)            f32
    # w2_ref  : (3, 3*Cp, Cp)      bf16 conv2 weights
    # b2_ref  : (1, Cp)            f32
    # o_ref   : (BH, W, Cp)        f32  output row band
    # xpad_s  : (BH+4, W+2, Cp)    bf16 persistent: x band with zero halo
    # h1pad_s : (BH+2, W+2, Cp)    bf16 persistent: relu(conv1) with zero halo
    # halo_s  : (4, W, Cp)         f32  DMA staging (2 top + 2 bottom rows)
    # sem     : DMA((2,))
    BH, W, Cp = x_ref.shape
    HB1 = BH + 2
    n = pl.program_id(0)
    hb = pl.program_id(1)
    nb = pl.num_programs(1)
    r0 = hb * BH

    # ---- kick off the (tiny) halo-row DMAs; starts clamped into the image,
    #      out-of-image halo rows are overwritten with zeros below ----------
    top_start = jnp.maximum(r0 - 2, 0)
    bot_start = jnp.minimum(r0 + BH, H - 2)
    top_cp = pltpu.make_async_copy(x_hbm.at[n, pl.ds(top_start, 2)],
                                   halo_s.at[0:2], sem.at[0])
    bot_cp = pltpu.make_async_copy(x_hbm.at[n, pl.ds(bot_start, 2)],
                                   halo_s.at[2:4], sem.at[1])
    top_cp.start()
    bot_cp.start()

    # ---- always-zero border columns: written once per batch element -------
    @pl.when(hb == 0)
    def _():
        xpad_s[:, 0:1, :] = jnp.zeros((BH + 4, 1, Cp), xpad_s.dtype)
        xpad_s[:, W + 1:W + 2, :] = jnp.zeros((BH + 4, 1, Cp), xpad_s.dtype)
        h1pad_s[:, 0:1, :] = jnp.zeros((HB1, 1, Cp), h1pad_s.dtype)
        h1pad_s[:, W + 1:W + 2, :] = jnp.zeros((HB1, 1, Cp), h1pad_s.dtype)

    # ---- build the bf16 padded conv1 slab (single f32->bf16 cast) ---------
    xpad_s[2:2 + BH, 1:1 + W, :] = x_ref[...].astype(xpad_s.dtype)
    top_cp.wait()
    bot_cp.wait()
    xpad_s[0:2, 1:1 + W, :] = halo_s[0:2].astype(xpad_s.dtype)
    xpad_s[2 + BH:4 + BH, 1:1 + W, :] = halo_s[2:4].astype(xpad_s.dtype)

    @pl.when(hb == 0)                 # image rows -2, -1 are zero padding
    def _():
        xpad_s[0:2, :, :] = jnp.zeros((2, W + 2, Cp), xpad_s.dtype)

    @pl.when(hb == nb - 1)            # image rows H, H+1 are zero padding
    def _():
        xpad_s[2 + BH:4 + BH, :, :] = jnp.zeros((2, W + 2, Cp), xpad_s.dtype)

    # ---- conv1: kw-concat im2col (K = 3*Cp) + 3 accumulating dots over kh --
    xp = xpad_s[...]                                          # (BH+4, W+2, Cp)
    kwcat1 = jnp.concatenate([xp[:, 0:W, :], xp[:, 1:1 + W, :],
                              xp[:, 2:2 + W, :]], axis=-1)    # (BH+4, W, 3*Cp)
    acc1 = None
    for kh in range(3):
        d = jnp.dot(kwcat1[kh:kh + HB1].reshape(HB1 * W, 3 * Cp), w1_ref[kh],
                    preferred_element_type=jnp.float32)
        acc1 = d if acc1 is None else acc1 + d
    h1 = jnp.maximum(acc1 + b1_ref[...], 0.0)                 # (HB1*W, Cp) f32

    # ---- conv2: zero-padded bf16 h1 slab, same kw-concat scheme ------------
    h1pad_s[:, 1:1 + W, :] = h1.reshape(HB1, W, Cp).astype(h1pad_s.dtype)

    @pl.when(hb == 0)                 # h1 at image row -1 is zero padding
    def _():
        h1pad_s[0:1, :, :] = jnp.zeros((1, W + 2, Cp), h1pad_s.dtype)

    @pl.when(hb == nb - 1)            # h1 at image row H is zero padding
    def _():
        h1pad_s[BH + 1:BH + 2, :, :] = jnp.zeros((1, W + 2, Cp), h1pad_s.dtype)

    hp = h1pad_s[...]                                         # (BH+2, W+2, Cp)
    kwcat2 = jnp.concatenate([hp[:, 0:W, :], hp[:, 1:1 + W, :],
                              hp[:, 2:2 + W, :]], axis=-1)    # (BH+2, W, 3*Cp)
    acc2 = None
    for kh in range(3):
        d = jnp.dot(kwcat2[kh:kh + BH].reshape(BH * W, 3 * Cp), w2_ref[kh],
                    preferred_element_type=jnp.float32)
        acc2 = d if acc2 is None else acc2 + d
    y = (acc2 + b2_ref[...]) * res_scale                      # (BH*W, Cp) f32

    # ---- residual add (exact f32 skip path) --------------------------------
    o_ref[...] = (x_ref[...] + y.reshape(BH, W, Cp)).astype(o_ref.dtype)


def _round_up(x, m):
    return ((x + m - 1) // m) * m


def _pack_conv_weight(w_oihw, cp_in, cp_out, dtype):
    """PyTorch (out, in, 3, 3) conv weight -> (3, 3*cp_in, cp_out) [kh][kw*ci, co]."""
    co, ci, kh, kw = w_oihw.shape
    w = jnp.transpose(w_oihw, (2, 3, 1, 0))                   # (kh, kw, cin, cout)
    w = jnp.pad(w, ((0, 0), (0, 0), (0, cp_in - ci), (0, cp_out - co)))
    return w.reshape(kh, kw * cp_in, cp_out).astype(dtype)


def resnet_block(x_nchw, w1_oihw, b1, w2_oihw, b2, *, res_scale=1.0,
                 band_rows=16):
    """out = x + res_scale * conv2(relu(conv1(x))); 3x3, zero pad, stride 1.

    x_nchw: (N, C, H, W) f32; conv weights in PyTorch OIHW layout; biases (C,).
    Assumes in_nc == mid_nc == out_nc == C (required by the skip connection).
    band_rows: row-band height (multiple of 8); ~32 on v5e/v6e, 16 on v7x.
    """
    N, C, H, W = x_nchw.shape
    BH = min(band_rows, H)
    assert H % BH == 0, "H must be a multiple of band_rows"
    Cp = _round_up(C, 128)

    # TODO(synk): in a real model keep activations NHWC and channel-padded
    # end-to-end so this transpose/pad (and the slice/transpose back) is not a
    # per-call HBM round trip.
    x = jnp.transpose(x_nchw, (0, 2, 3, 1))                   # NHWC
    x = jnp.pad(x, ((0, 0), (0, 0), (0, 0), (0, Cp - C)))     # lane-pad channels

    w1m = _pack_conv_weight(w1_oihw, Cp, Cp, jnp.bfloat16)
    w2m = _pack_conv_weight(w2_oihw, Cp, Cp, jnp.bfloat16)
    b1p = jnp.pad(b1.reshape(-1), (0, Cp - C)).reshape(1, Cp).astype(jnp.float32)
    b2p = jnp.pad(b2.reshape(-1), (0, Cp - C)).reshape(1, Cp).astype(jnp.float32)

    kernel = functools.partial(_resnet_block_kernel,
                               res_scale=float(res_scale), H=H)
    # Note: weights/biases use constant block indices; they could be
    # single-buffered (pipeline_mode=pl.Buffered(1)) to shave ~0.5 MiB of VMEM.
    out = pl.pallas_call(
        kernel,
        out_shape=jax.ShapeDtypeStruct((N, H, W, Cp), jnp.float32),
        grid_spec=pltpu.PrefetchScalarGridSpec(
            num_scalar_prefetch=0,
            grid=(N, H // BH),
            in_specs=[
                pl.BlockSpec((None, BH, W, Cp), lambda n, hb: (n, hb, 0, 0)),
                pl.BlockSpec(memory_space=pl.ANY),            # raw HBM x (halo DMA)
                pl.BlockSpec((3, 3 * Cp, Cp), lambda n, hb: (0, 0, 0)),
                pl.BlockSpec((1, Cp), lambda n, hb: (0, 0)),
                pl.BlockSpec((3, 3 * Cp, Cp), lambda n, hb: (0, 0, 0)),
                pl.BlockSpec((1, Cp), lambda n, hb: (0, 0)),
            ],
            out_specs=pl.BlockSpec((None, BH, W, Cp),
                                   lambda n, hb: (n, hb, 0, 0)),
            scratch_shapes=[
                pltpu.VMEM((BH + 4, W + 2, Cp), jnp.bfloat16),   # padded x band
                pltpu.VMEM((BH + 2, W + 2, Cp), jnp.bfloat16),   # padded relu(conv1)
                pltpu.VMEM((4, W, Cp), jnp.float32),             # halo DMA staging
                pltpu.SemaphoreType.DMA((2,)),
            ],
        ),
        compiler_params=pltpu.CompilerParams(
            dimension_semantics=("parallel", "arbitrary"),
            vmem_limit_bytes=48 * 1024 * 1024),
    )(x, x, w1m, b1p, w2m, b2p)

    out = out[..., :C]                                        # drop lane padding
    return jnp.transpose(out, (0, 3, 1, 2))                   # back to NCHW


def _reference(x_nchw, w1_oihw, b1, w2_oihw, b2, res_scale=1.0):
    """Pure-JAX reference (NCHW / OIHW, like PyTorch)."""
    dn = lax.conv_dimension_numbers(x_nchw.shape, w1_oihw.shape,
                                    ("NCHW", "OIHW", "NCHW"))
    h = lax.conv_general_dilated(x_nchw, w1_oihw, (1, 1), "SAME",
                                 dimension_numbers=dn)
    h = jnp.maximum(h + b1.reshape(1, -1, 1, 1), 0.0)
    y = lax.conv_general_dilated(h, w2_oihw, (1, 1), "SAME",
                                 dimension_numbers=dn)
    y = (y + b2.reshape(1, -1, 1, 1)) * res_scale
    return x_nchw + y


if __name__ == "__main__":
    N, C, H, W = 2, 4, 16, 16
    key = jax.random.PRNGKey(0)
    kx, k1, k2, k3, k4 = jax.random.split(key, 5)

    x = jax.random.normal(kx, (N, C, H, W), jnp.float32)
    # PyTorch-style parameters: OIHW conv weights, (C,) biases.
    w1 = jax.random.normal(k1, (C, C, 3, 3), jnp.float32) * 0.1
    b1 = jax.random.normal(k2, (C,), jnp.float32) * 0.1
    w2 = jax.random.normal(k3, (C, C, 3, 3), jnp.float32) * 0.1
    b2 = jax.random.normal(k4, (C,), jnp.float32) * 0.1

    # band_rows=8 -> 2 row bands per image: exercises first/last-band halo
    # zeroing and the real (interior) top/bottom halo DMAs.
    out = resnet_block(x, w1, b1, w2, b2, res_scale=1.0, band_rows=8)
    out = jax.block_until_ready(out)

    ref = _reference(x, w1, b1, w2, b2, res_scale=1.0)
    assert out.shape == (N, C, H, W)
    # bf16 MXU operands (f32 accumulation) -> small expected drift vs f32 ref.
    assert jnp.allclose(out, ref, atol=5e-2, rtol=5e-2), (
        "mismatch vs reference; max abs err = "
        f"{float(jnp.max(jnp.abs(out - ref)))}")

    print("KERNEL_OK")
</pallas_src>

<mosaic_0001>
module attributes {stable_mosaic.version = 11 : i64} {
  func.func @_resnet_block_kernel(%arg0: i32, %arg1: i32, %arg2: memref<1x8x16x128xf32, #tpu.memory_space<vmem>>, %arg3: memref<2x16x16x128xf32, #tpu.memory_space<any>>, %arg4: memref<3x384x128xbf16, #tpu.memory_space<vmem>>, %arg5: memref<1x128xf32, #tpu.memory_space<vmem>>, %arg6: memref<3x384x128xbf16, #tpu.memory_space<vmem>>, %arg7: memref<1x128xf32, #tpu.memory_space<vmem>>, %arg8: memref<1x8x16x128xf32, #tpu.memory_space<vmem>>, %arg9: memref<12x18x128xbf16, #tpu.memory_space<vmem>>, %arg10: memref<10x18x128xbf16, #tpu.memory_space<vmem>>, %arg11: memref<4x16x128xf32, #tpu.memory_space<vmem>>, %arg12: memref<2x!tpu.dma_semaphore, #tpu.memory_space<semaphore_mem>>) attributes {dimension_semantics = [#tpu.dimension_semantics<parallel>, #tpu.dimension_semantics<arbitrary>], iteration_bounds = array<i64: 2, 2>, scalar_prefetch = 0 : i64, scratch_operands = 4 : i64, tpu.core_type = #tpu.core_type<tc>, window_params = [{transform_indices = @transform_0, window_bounds = array<i64: 1, 8, 16, 128>}, {}, {pipeline_mode = #tpu.pipeline_mode<synchronous>, transform_indices = @transform_2, window_bounds = array<i64: 3, 384, 128>}, {pipeline_mode = #tpu.pipeline_mode<synchronous>, transform_indices = @transform_3, window_bounds = array<i64: 1, 128>}, {pipeline_mode = #tpu.pipeline_mode<synchronous>, transform_indices = @transform_4, window_bounds = array<i64: 3, 384, 128>}, {pipeline_mode = #tpu.pipeline_mode<synchronous>, transform_indices = @transform_5, window_bounds = array<i64: 1, 128>}, {transform_indices = @transform_6, window_bounds = array<i64: 1, 8, 16, 128>}]} {
    %c8_i32 = arith.constant 8 : i32
    %0 = arith.muli %arg1, %c8_i32 : i32
    %c2_i32 = arith.constant 2 : i32
    %1 = arith.subi %0, %c2_i32 : i32
    %c0_i32 = arith.constant 0 : i32
    %2 = arith.maxsi %1, %c0_i32 : i32
    %c8_i32_0 = arith.constant 8 : i32
    %3 = arith.addi %0, %c8_i32_0 : i32
    %c14_i32 = arith.constant 14 : i32
    %4 = arith.minsi %3, %c14_i32 : i32
    %c0_i32_1 = arith.constant 0 : i32
    %c0_i32_2 = arith.constant 0 : i32
    %c0_i32_3 = arith.constant 0 : i32
    %5 = tpu.memref_slice %arg3[%arg0, %2, %c0_i32_2, %c0_i32_3] : memref<2x16x16x128xf32, #tpu.memory_space<any>> -> memref<1x2x16x128xf32, #tpu.memory_space<any>>
    %6 = tpu.memref_squeeze %5 : memref<1x2x16x128xf32, #tpu.memory_space<any>> -> memref<2x16x128xf32, #tpu.memory_space<any>>
    %c0_i32_4 = arith.constant 0 : i32
    %c0_i32_5 = arith.constant 0 : i32
    %c0_i32_6 = arith.constant 0 : i32
    %7 = tpu.memref_slice %arg11[%c0_i32_4, %c0_i32_5, %c0_i32_6] : memref<4x16x128xf32, #tpu.memory_space<vmem>> -> memref<2x16x128xf32, #tpu.memory_space<vmem>>
    %8 = tpu.memref_slice %arg12[%c0_i32_1] : memref<2x!tpu.dma_semaphore, #tpu.memory_space<semaphore_mem>> -> memref<1x!tpu.dma_semaphore, #tpu.memory_space<semaphore_mem>>
    %9 = tpu.memref_squeeze %8 : memref<1x!tpu.dma_semaphore, #tpu.memory_space<semaphore_mem>> -> memref<!tpu.dma_semaphore, #tpu.memory_space<semaphore_mem>>
    tpu.enqueue_dma source(%6 : memref<2x16x128xf32, #tpu.memory_space<any>>) target(%7 : memref<2x16x128xf32, #tpu.memory_space<vmem>>) target_semaphore(%9 : memref<!tpu.dma_semaphore, #tpu.memory_space<semaphore_mem>>)
    %c1_i32 = arith.constant 1 : i32
    %c0_i32_7 = arith.constant 0 : i32
    %c0_i32_8 = arith.constant 0 : i32
    %10 = tpu.memref_slice %arg3[%arg0, %4, %c0_i32_7, %c0_i32_8] : memref<2x16x16x128xf32, #tpu.memory_space<any>> -> memref<1x2x16x128xf32, #tpu.memory_space<any>>
    %11 = tpu.memref_squeeze %10 : memref<1x2x16x128xf32, #tpu.memory_space<any>> -> memref<2x16x128xf32, #tpu.memory_space<any>>
    %c2_i32_9 = arith.constant 2 : i32
    %c0_i32_10 = arith.constant 0 : i32
    %c0_i32_11 = arith.constant 0 : i32
    %12 = tpu.memref_slice %arg11[%c2_i32_9, %c0_i32_10, %c0_i32_11] : memref<4x16x128xf32, #tpu.memory_space<vmem>> -> memref<2x16x128xf32, #tpu.memory_space<vmem>>
    %13 = tpu.memref_slice %arg12[%c1_i32] : memref<2x!tpu.dma_semaphore, #tpu.memory_space<semaphore_mem>> -> memref<1x!tpu.dma_semaphore, #tpu.memory_space<semaphore_mem>>
    %14 = tpu.memref_squeeze %13 : memref<1x!tpu.dma_semaphore, #tpu.memory_space<semaphore_mem>> -> memref<!tpu.dma_semaphore, #tpu.memory_space<semaphore_mem>>
    tpu.enqueue_dma source(%11 : memref<2x16x128xf32, #tpu.memory_space<any>>) target(%12 : memref<2x16x128xf32, #tpu.memory_space<vmem>>) target_semaphore(%14 : memref<!tpu.dma_semaphore, #tpu.memory_space<semaphore_mem>>)
    %c0_i32_12 = arith.constant 0 : i32
    %15 = arith.cmpi eq, %arg1, %c0_i32_12 : i32
    %16 = arith.extui %15 : i1 to i32
    %c0_i32_13 = arith.constant 0 : i32
    %17 = arith.cmpi ne, %16, %c0_i32_13 : i32
    scf.if %17 {
      %cst_95 = arith.constant 0.000000e+00 : bf16
      %114 = vector.broadcast %cst_95 : bf16 to vector<12x1x128xbf16>
      %c0_96 = arith.constant 0 : index
      %c0_97 = arith.constant 0 : index
      %c0_98 = arith.constant 0 : index
      %115 = vector.load %arg9[%c0_96, %c0_97, %c0_98] : memref<12x18x128xbf16, #tpu.memory_space<vmem>>, vector<12x1x128xbf16>
      tpu.vector_store %arg9[%c0_96, %c0_97, %c0_98], %114 {strides = array<i32>} : memref<12x18x128xbf16, #tpu.memory_space<vmem>>, vector<12x1x128xbf16>,
      %cst_99 = arith.constant 0.000000e+00 : bf16
      %116 = vector.broadcast %cst_99 : bf16 to vector<12x1x128xbf16>
      %c0_100 = arith.constant 0 : index
      %c17 = arith.constant 17 : index
      %c0_101 = arith.constant 0 : index
      %117 = vector.load %arg9[%c0_100, %c17, %c0_101] : memref<12x18x128xbf16, #tpu.memory_space<vmem>>, vector<12x1x128xbf16>
      tpu.vector_store %arg9[%c0_100, %c17, %c0_101], %116 {strides = array<i32>} : memref<12x18x128xbf16, #tpu.memory_space<vmem>>, vector<12x1x128xbf16>,
      %cst_102 = arith.constant 0.000000e+00 : bf16
      %118 = vector.broadcast %cst_102 : bf16 to vector<10x1x128xbf16>
      %c0_103 = arith.constant 0 : index
      %c0_104 = arith.constant 0 : index
      %c0_105 = arith.constant 0 : index
      %119 = vector.load %arg10[%c0_103, %c0_104, %c0_105] : memref<10x18x128xbf16, #tpu.memory_space<vmem>>, vector<10x1x128xbf16>
      tpu.vector_store %arg10[%c0_103, %c0_104, %c0_105], %118 {strides = array<i32>} : memref<10x18x128xbf16, #tpu.memory_space<vmem>>, vector<10x1x128xbf16>,
      %cst_106 = arith.constant 0.000000e+00 : bf16
      %120 = vector.broadcast %cst_106 : bf16 to vector<10x1x128xbf16>
      %c0_107 = arith.constant 0 : index
      %c17_108 = arith.constant 17 : index
      %c0_109 = arith.constant 0 : index
      %121 = vector.load %arg10[%c0_107, %c17_108, %c0_109] : memref<10x18x128xbf16, #tpu.memory_space<vmem>>, vector<10x1x128xbf16>
      tpu.vector_store %arg10[%c0_107, %c17_108, %c0_109], %120 {strides = array<i32>} : memref<10x18x128xbf16, #tpu.memory_space<vmem>>, vector<10x1x128xbf16>,
    } else {
    }
    %c0 = arith.constant 0 : index
    %c0_14 = arith.constant 0 : index
    %c0_15 = arith.constant 0 : index
    %c0_16 = arith.constant 0 : index
    %18 = vector.load %arg2[%c0, %c0_14, %c0_15, %c0_16] : memref<1x8x16x128xf32, #tpu.memory_space<vmem>>, vector<1x8x16x128xf32>
    %19 = vector.shape_cast %18 : vector<1x8x16x128xf32> to vector<8x16x128xf32>
    %20 = arith.truncf %19 : vector<8x16x128xf32> to vector<8x16x128xbf16>
    %c2 = arith.constant 2 : index
    %c1 = arith.constant 1 : index
    %c0_17 = arith.constant 0 : index
    %21 = vector.load %arg9[%c2, %c1, %c0_17] : memref<12x18x128xbf16, #tpu.memory_space<vmem>>, vector<8x16x128xbf16>
    tpu.vector_store %arg9[%c2, %c1, %c0_17], %20 {strides = array<i32>} : memref<12x18x128xbf16, #tpu.memory_space<vmem>>, vector<8x16x128xbf16>,
    %c0_i32_18 = arith.constant 0 : i32
    %c0_i32_19 = arith.constant 0 : i32
    %c0_i32_20 = arith.constant 0 : i32
    %22 = tpu.memref_slice %arg3[%arg0, %2, %c0_i32_19, %c0_i32_20] : memref<2x16x16x128xf32, #tpu.memory_space<any>> -> memref<1x2x16x128xf32, #tpu.memory_space<any>>
    %23 = tpu.memref_squeeze %22 : memref<1x2x16x128xf32, #tpu.memory_space<any>> -> memref<2x16x128xf32, #tpu.memory_space<any>>
    %c0_i32_21 = arith.constant 0 : i32
    %c0_i32_22 = arith.constant 0 : i32
    %c0_i32_23 = arith.constant 0 : i32
    %24 = tpu.memref_slice %arg11[%c0_i32_21, %c0_i32_22, %c0_i32_23] : memref<4x16x128xf32, #tpu.memory_space<vmem>> -> memref<2x16x128xf32, #tpu.memory_space<vmem>>
    %25 = tpu.memref_slice %arg12[%c0_i32_18] : memref<2x!tpu.dma_semaphore, #tpu.memory_space<semaphore_mem>> -> memref<1x!tpu.dma_semaphore, #tpu.memory_space<semaphore_mem>>
    %26 = tpu.memref_squeeze %25 : memref<1x!tpu.dma_semaphore, #tpu.memory_space<semaphore_mem>> -> memref<!tpu.dma_semaphore, #tpu.memory_space<semaphore_mem>>
    tpu.wait_dma2 semaphore(%26 : memref<!tpu.dma_semaphore, #tpu.memory_space<semaphore_mem>>) src(%23 : memref<2x16x128xf32, #tpu.memory_space<any>>) dst(%24 : memref<2x16x128xf32, #tpu.memory_space<vmem>>)
    %c1_i32_24 = arith.constant 1 : i32
    %c0_i32_25 = arith.constant 0 : i32
    %c0_i32_26 = arith.constant 0 : i32
    %27 = tpu.memref_slice %arg3[%arg0, %4, %c0_i32_25, %c0_i32_26] : memref<2x16x16x128xf32, #tpu.memory_space<any>> -> memref<1x2x16x128xf32, #tpu.memory_space<any>>
    %28 = tpu.memref_squeeze %27 : memref<1x2x16x128xf32, #tpu.memory_space<any>> -> memref<2x16x128xf32, #tpu.memory_space<any>>
    %c2_i32_27 = arith.constant 2 : i32
    %c0_i32_28 = arith.constant 0 : i32
    %c0_i32_29 = arith.constant 0 : i32
    %29 = tpu.memref_slice %arg11[%c2_i32_27, %c0_i32_28, %c0_i32_29] : memref<4x16x128xf32, #tpu.memory_space<vmem>> -> memref<2x16x128xf32, #tpu.memory_space<vmem>>
    %30 = tpu.memref_slice %arg12[%c1_i32_24] : memref<2x!tpu.dma_semaphore, #tpu.memory_space<semaphore_mem>> -> memref<1x!tpu.dma_semaphore, #tpu.memory_space<semaphore_mem>>
    %31 = tpu.memref_squeeze %30 : memref<1x!tpu.dma_semaphore, #tpu.memory_space<semaphore_mem>> -> memref<!tpu.dma_semaphore, #tpu.memory_space<semaphore_mem>>
    tpu.wait_dma2 semaphore(%31 : memref<!tpu.dma_semaphore, #tpu.memory_space<semaphore_mem>>) src(%28 : memref<2x16x128xf32, #tpu.memory_space<any>>) dst(%29 : memref<2x16x128xf32, #tpu.memory_space<vmem>>)
    %c0_30 = arith.constant 0 : index
    %c0_31 = arith.constant 0 : index
    %c0_32 = arith.constant 0 : index
    %32 = vector.load %arg11[%c0_30, %c0_31, %c0_32] : memref<4x16x128xf32, #tpu.memory_space<vmem>>, vector<2x16x128xf32>
    %33 = arith.truncf %32 : vector<2x16x128xf32> to vector<2x16x128xbf16>
    %c0_33 = arith.constant 0 : index
    %c1_34 = arith.constant 1 : index
    %c0_35 = arith.constant 0 : index
    %34 = vector.load %arg9[%c0_33, %c1_34, %c0_35] : memref<12x18x128xbf16, #tpu.memory_space<vmem>>, vector<2x16x128xbf16>
    tpu.vector_store %arg9[%c0_33, %c1_34, %c0_35], %33 {strides = array<i32>} : memref<12x18x128xbf16, #tpu.memory_space<vmem>>, vector<2x16x128xbf16>,
    %c2_36 = arith.constant 2 : index
    %c0_37 = arith.constant 0 : index
    %c0_38 = arith.constant 0 : index
    %35 = vector.load %arg11[%c2_36, %c0_37, %c0_38] : memref<4x16x128xf32, #tpu.memory_space<vmem>>, vector<2x16x128xf32>
    %36 = arith.truncf %35 : vector<2x16x128xf32> to vector<2x16x128xbf16>
    %c10 = arith.constant 10 : index
    %c1_39 = arith.constant 1 : index
    %c0_40 = arith.constant 0 : index
    %37 = vector.load %arg9[%c10, %c1_39, %c0_40] : memref<12x18x128xbf16, #tpu.memory_space<vmem>>, vector<2x16x128xbf16>
    tpu.vector_store %arg9[%c10, %c1_39, %c0_40], %36 {strides = array<i32>} : memref<12x18x128xbf16, #tpu.memory_space<vmem>>, vector<2x16x128xbf16>,
    %c0_i32_41 = arith.constant 0 : i32
    %38 = arith.cmpi eq, %arg1, %c0_i32_41 : i32
    %39 = arith.extui %38 : i1 to i32
    %c0_i32_42 = arith.constant 0 : i32
    %40 = arith.cmpi ne, %39, %c0_i32_42 : i32
    scf.if %40 {
      %cst_95 = arith.constant 0.000000e+00 : bf16
      %114 = vector.broadcast %cst_95 : bf16 to vector<2x18x128xbf16>
      %c0_96 = arith.constant 0 : index
      %c0_97 = arith.constant 0 : index
      %c0_98 = arith.constant 0 : index
      %115 = vector.load %arg9[%c0_96, %c0_97, %c0_98] : memref<12x18x128xbf16, #tpu.memory_space<vmem>>, vector<2x18x128xbf16>
      tpu.vector_store %arg9[%c0_96, %c0_97, %c0_98], %114 {strides = array<i32>} : memref<12x18x128xbf16, #tpu.memory_space<vmem>>, vector<2x18x128xbf16>,
    } else {
    }
    %c1_i32_43 = arith.constant 1 : i32
    %41 = arith.cmpi eq, %arg1, %c1_i32_43 : i32
    %42 = arith.extui %41 : i1 to i32
    %c0_i32_44 = arith.constant 0 : i32
    %43 = arith.cmpi ne, %42, %c0_i32_44 : i32
    scf.if %43 {
      %cst_95 = arith.constant 0.000000e+00 : bf16
      %114 = vector.broadcast %cst_95 : bf16 to vector<2x18x128xbf16>
      %c10_96 = arith.constant 10 : index
      %c0_97 = arith.constant 0 : index
      %c0_98 = arith.constant 0 : index
      %115 = vector.load %arg9[%c10_96, %c0_97, %c0_98] : memref<12x18x128xbf16, #tpu.memory_space<vmem>>, vector<2x18x128xbf16>
      tpu.vector_store %arg9[%c10_96, %c0_97, %c0_98], %114 {strides = array<i32>} : memref<12x18x128xbf16, #tpu.memory_space<vmem>>, vector<2x18x128xbf16>,
    } else {
    }
    %c0_45 = arith.constant 0 : index
    %c0_46 = arith.constant 0 : index
    %c0_47 = arith.constant 0 : index
    %44 = vector.load %arg9[%c0_45, %c0_46, %c0_47] : memref<12x18x128xbf16, #tpu.memory_space<vmem>>, vector<12x18x128xbf16>
    %45 = vector.extract_strided_slice %44 {offsets = [0, 0, 0], sizes = [12, 16, 128], strides = [1, 1, 1]} : vector<12x18x128xbf16> to vector<12x16x128xbf16>
    %46 = vector.extract_strided_slice %44 {offsets = [0, 1, 0], sizes = [12, 16, 128], strides = [1, 1, 1]} : vector<12x18x128xbf16> to vector<12x16x128xbf16>
    %47 = vector.extract_strided_slice %44 {offsets = [0, 2, 0], sizes = [12, 16, 128], strides = [1, 1, 1]} : vector<12x18x128xbf16> to vector<12x16x128xbf16>
    %48 = tpu.concatenate %45, %46, %47 in 2 : vector<12x16x128xbf16>, vector<12x16x128xbf16>, vector<12x16x128xbf16> -> vector<12x16x384xbf16>
    %49 = vector.extract_strided_slice %48 {offsets = [0, 0, 0], sizes = [10, 16, 384], strides = [1, 1, 1]} : vector<12x16x384xbf16> to vector<10x16x384xbf16>
    %50 = vector.shape_cast %49 : vector<10x16x384xbf16> to vector<160x384xbf16>
    %c0_48 = arith.constant 0 : index
    %c0_49 = arith.constant 0 : index
    %c0_50 = arith.constant 0 : index
    %51 = vector.load %arg4[%c0_48, %c0_49, %c0_50] : memref<3x384x128xbf16, #tpu.memory_space<vmem>>, vector<1x384x128xbf16>
    %52 = vector.shape_cast %51 : vector<1x384x128xbf16> to vector<384x128xbf16>
    %cst = arith.constant dense<0.000000e+00> : vector<160x128xf32>
    %53 = tpu.matmul %50, %52, %cst {dimension_numbers = #tpu.dot_dimension_numbers<[1], [0], [0], [1], [0, 0, 1, 1], [], []>} : vector<160x384xbf16>, vector<384x128xbf16>, vector<160x128xf32> -> vector<160x128xf32>
    %54 = vector.extract_strided_slice %48 {offsets = [1, 0, 0], sizes = [10, 16, 384], strides = [1, 1, 1]} : vector<12x16x384xbf16> to vector<10x16x384xbf16>
    %55 = vector.shape_cast %54 : vector<10x16x384xbf16> to vector<160x384xbf16>
    %c1_51 = arith.constant 1 : index
    %c0_52 = arith.constant 0 : index
    %c0_53 = arith.constant 0 : index
    %56 = vector.load %arg4[%c1_51, %c0_52, %c0_53] : memref<3x384x128xbf16, #tpu.memory_space<vmem>>, vector<1x384x128xbf16>
    %57 = vector.shape_cast %56 : vector<1x384x128xbf16> to vector<384x128xbf16>
    %cst_54 = arith.constant dense<0.000000e+00> : vector<160x128xf32>
    %58 = tpu.matmul %55, %57, %cst_54 {dimension_numbers = #tpu.dot_dimension_numbers<[1], [0], [0], [1], [0, 0, 1, 1], [], []>} : vector<160x384xbf16>, vector<384x128xbf16>, vector<160x128xf32> -> vector<160x128xf32>
    %59 = arith.addf %53, %58 : vector<160x128xf32>
    %60 = vector.extract_strided_slice %48 {offsets = [2, 0, 0], sizes = [10, 16, 384], strides = [1, 1, 1]} : vector<12x16x384xbf16> to vector<10x16x384xbf16>
    %61 = vector.shape_cast %60 : vector<10x16x384xbf16> to vector<160x384xbf16>
    %c2_55 = arith.constant 2 : index
    %c0_56 = arith.constant 0 : index
    %c0_57 = arith.constant 0 : index
    %62 = vector.load %arg4[%c2_55, %c0_56, %c0_57] : memref<3x384x128xbf16, #tpu.memory_space<vmem>>, vector<1x384x128xbf16>
    %63 = vector.shape_cast %62 : vector<1x384x128xbf16> to vector<384x128xbf16>
    %cst_58 = arith.constant dense<0.000000e+00> : vector<160x128xf32>
    %64 = tpu.matmul %61, %63, %cst_58 {dimension_numbers = #tpu.dot_dimension_numbers<[1], [0], [0], [1], [0, 0, 1, 1], [], []>} : vector<160x384xbf16>, vector<384x128xbf16>, vector<160x128xf32> -> vector<160x128xf32>
    %65 = arith.addf %59, %64 : vector<160x128xf32>
    %c0_59 = arith.constant 0 : index
    %c0_60 = arith.constant 0 : index
    %66 = vector.load %arg5[%c0_59, %c0_60] : memref<1x128xf32, #tpu.memory_space<vmem>>, vector<1x128xf32>
    %67 = vector.broadcast %66 : vector<1x128xf32> to vector<160x128xf32>
    %68 = arith.addf %65, %67 : vector<160x128xf32>
    %cst_61 = arith.constant 0.000000e+00 : f32
    %69 = vector.broadcast %cst_61 : f32 to vector<160x128xf32>
    %70 = arith.maximumf %68, %69 : vector<160x128xf32>
    %71 = vector.shape_cast %70 : vector<160x128xf32> to vector<10x16x128xf32>
    %72 = arith.truncf %71 : vector<10x16x128xf32> to vector<10x16x128xbf16>
    %c0_62 = arith.constant 0 : index
    %c1_63 = arith.constant 1 : index
    %c0_64 = arith.constant 0 : index
    %73 = vector.load %arg10[%c0_62, %c1_63, %c0_64] : memref<10x18x128xbf16, #tpu.memory_space<vmem>>, vector<10x16x128xbf16>
    tpu.vector_store %arg10[%c0_62, %c1_63, %c0_64], %72 {strides = array<i32>} : memref<10x18x128xbf16, #tpu.memory_space<vmem>>, vector<10x16x128xbf16>,
    %c0_i32_65 = arith.constant 0 : i32
    %74 = arith.cmpi eq, %arg1, %c0_i32_65 : i32
    %75 = arith.extui %74 : i1 to i32
    %c0_i32_66 = arith.constant 0 : i32
    %76 = arith.cmpi ne, %75, %c0_i32_66 : i32
    scf.if %76 {
      %cst_95 = arith.constant 0.000000e+00 : bf16
      %114 = vector.broadcast %cst_95 : bf16 to vector<1x18x128xbf16>
      %c0_96 = arith.constant 0 : index
      %c0_97 = arith.constant 0 : index
      %c0_98 = arith.constant 0 : index
      %115 = vector.load %arg10[%c0_96, %c0_97, %c0_98] : memref<10x18x128xbf16, #tpu.memory_space<vmem>>, vector<1x18x128xbf16>
      tpu.vector_store %arg10[%c0_96, %c0_97, %c0_98], %114 {strides = array<i32>} : memref<10x18x128xbf16, #tpu.memory_space<vmem>>, vector<1x18x128xbf16>,
    } else {
    }
    %c1_i32_67 = arith.constant 1 : i32
    %77 = arith.cmpi eq, %arg1, %c1_i32_67 : i32
    %78 = arith.extui %77 : i1 to i32
    %c0_i32_68 = arith.constant 0 : i32
    %79 = arith.cmpi ne, %78, %c0_i32_68 : i32
    scf.if %79 {
      %cst_95 = arith.constant 0.000000e+00 : bf16
      %114 = vector.broadcast %cst_95 : bf16 to vector<1x18x128xbf16>
      %c9 = arith.constant 9 : index
      %c0_96 = arith.constant 0 : index
      %c0_97 = arith.constant 0 : index
      %115 = vector.load %arg10[%c9, %c0_96, %c0_97] : memref<10x18x128xbf16, #tpu.memory_space<vmem>>, vector<1x18x128xbf16>
      tpu.vector_store %arg10[%c9, %c0_96, %c0_97], %114 {strides = array<i32>} : memref<10x18x128xbf16, #tpu.memory_space<vmem>>, vector<1x18x128xbf16>,
    } else {
    }
    %c0_69 = arith.constant 0 : index
    %c0_70 = arith.constant 0 : index
    %c0_71 = arith.constant 0 : index
    %80 = vector.load %arg10[%c0_69, %c0_70, %c0_71] : memref<10x18x128xbf16, #tpu.memory_space<vmem>>, vector<10x18x128xbf16>
    %81 = vector.extract_strided_slice %80 {offsets = [0, 0, 0], sizes = [10, 16, 128], strides = [1, 1, 1]} : vector<10x18x128xbf16> to vector<10x16x128xbf16>
    %82 = vector.extract_strided_slice %80 {offsets = [0, 1, 0], sizes = [10, 16, 128], strides = [1, 1, 1]} : vector<10x18x128xbf16> to vector<10x16x128xbf16>
    %83 = vector.extract_strided_slice %80 {offsets = [0, 2, 0], sizes = [10, 16, 128], strides = [1, 1, 1]} : vector<10x18x128xbf16> to vector<10x16x128xbf16>
    %84 = tpu.concatenate %81, %82, %83 in 2 : vector<10x16x128xbf16>, vector<10x16x128xbf16>, vector<10x16x128xbf16> -> vector<10x16x384xbf16>
    %85 = vector.extract_strided_slice %84 {offsets = [0, 0, 0], sizes = [8, 16, 384], strides = [1, 1, 1]} : vector<10x16x384xbf16> to vector<8x16x384xbf16>
    %86 = vector.shape_cast %85 : vector<8x16x384xbf16> to vector<128x384xbf16>
    %c0_72 = arith.constant 0 : index
    %c0_73 = arith.constant 0 : index
    %c0_74 = arith.constant 0 : index
    %87 = vector.load %arg6[%c0_72, %c0_73, %c0_74] : memref<3x384x128xbf16, #tpu.memory_space<vmem>>, vector<1x384x128xbf16>
    %88 = vector.shape_cast %87 : vector<1x384x128xbf16> to vector<384x128xbf16>
    %cst_75 = arith.constant dense<0.000000e+00> : vector<128x128xf32>
    %89 = tpu.matmul %86, %88, %cst_75 {dimension_numbers = #tpu.dot_dimension_numbers<[1], [0], [0], [1], [0, 0, 1, 1], [], []>} : vector<128x384xbf16>, vector<384x128xbf16>, vector<128x128xf32> -> vector<128x128xf32>
    %90 = vector.extract_strided_slice %84 {offsets = [1, 0, 0], sizes = [8, 16, 384], strides = [1, 1, 1]} : vector<10x16x384xbf16> to vector<8x16x384xbf16>
    %91 = vector.shape_cast %90 : vector<8x16x384xbf16> to vector<128x384xbf16>
    %c1_76 = arith.constant 1 : index
    %c0_77 = arith.constant 0 : index
    %c0_78 = arith.constant 0 : index
    %92 = vector.load %arg6[%c1_76, %c0_77, %c0_78] : memref<3x384x128xbf16, #tpu.memory_space<vmem>>, vector<1x384x128xbf16>
    %93 = vector.shape_cast %92 : vector<1x384x128xbf16> to vector<384x128xbf16>
    %cst_79 = arith.constant dense<0.000000e+00> : vector<128x128xf32>
    %94 = tpu.matmul %91, %93, %cst_79 {dimension_numbers = #tpu.dot_dimension_numbers<[1], [0], [0], [1], [0, 0, 1, 1], [], []>} : vector<128x384xbf16>, vector<384x128xbf16>, vector<128x128xf32> -> vector<128x128xf32>
    %95 = arith.addf %89, %94 : vector<128x128xf32>
    %96 = vector.extract_strided_slice %84 {offsets = [2, 0, 0], sizes = [8, 16, 384], strides = [1, 1, 1]} : vector<10x16x384xbf16> to vector<8x16x384xbf16>
    %97 = vector.shape_cast %96 : vector<8x16x384xbf16> to vector<128x384xbf16>
    %c2_80 = arith.constant 2 : index
    %c0_81 = arith.constant 0 : index
    %c0_82 = arith.constant 0 : index
    %98 = vector.load %arg6[%c2_80, %c0_81, %c0_82] : memref<3x384x128xbf16, #tpu.memory_space<vmem>>, vector<1x384x128xbf16>
    %99 = vector.shape_cast %98 : vector<1x384x128xbf16> to vector<384x128xbf16>
    %cst_83 = arith.constant dense<0.000000e+00> : vector<128x128xf32>
    %100 = tpu.matmul %97, %99, %cst_83 {dimension_numbers = #tpu.dot_dimension_numbers<[1], [0], [0], [1], [0, 0, 1, 1], [], []>} : vector<128x384xbf16>, vector<384x128xbf16>, vector<128x128xf32> -> vector<128x128xf32>
    %101 = arith.addf %95, %100 : vector<128x128xf32>
    %c0_84 = arith.constant 0 : index
    %c0_85 = arith.constant 0 : index
    %102 = vector.load %arg7[%c0_84, %c0_85] : memref<1x128xf32, #tpu.memory_space<vmem>>, vector<1x128xf32>
    %103 = vector.broadcast %102 : vector<1x128xf32> to vector<128x128xf32>
    %104 = arith.addf %101, %103 : vector<128x128xf32>
    %cst_86 = arith.constant 1.000000e+00 : f32
    %105 = vector.broadcast %cst_86 : f32 to vector<128x128xf32>
    %106 = arith.mulf %104, %105 : vector<128x128xf32>
    %c0_87 = arith.constant 0 : index
    %c0_88 = arith.constant 0 : index
    %c0_89 = arith.constant 0 : index
    %c0_90 = arith.constant 0 : index
    %107 = vector.load %arg2[%c0_87, %c0_88, %c0_89, %c0_90] : memref<1x8x16x128xf32, #tpu.memory_space<vmem>>, vector<1x8x16x128xf32>
    %108 = vector.shape_cast %107 : vector<1x8x16x128xf32> to vector<8x16x128xf32>
    %109 = vector.shape_cast %106 : vector<128x128xf32> to vector<8x16x128xf32>
    %110 = arith.addf %108, %109 : vector<8x16x128xf32>
    %c0_91 = arith.constant 0 : index
    %c0_92 = arith.constant 0 : index
    %c0_93 = arith.constant 0 : index
    %c0_94 = arith.constant 0 : index
    %111 = vector.load %arg8[%c0_91, %c0_92, %c0_93, %c0_94] : memref<1x8x16x128xf32, #tpu.memory_space<vmem>>, vector<1x8x16x128xf32>
    %112 = vector.shape_cast %111 : vector<1x8x16x128xf32> to vector<8x16x128xf32>
    %113 = vector.shape_cast %110 : vector<8x16x128xf32> to vector<1x8x16x128xf32>
    tpu.vector_store %arg8[%c0_91, %c0_92, %c0_93, %c0_94], %113 {strides = array<i32>} : memref<1x8x16x128xf32, #tpu.memory_space<vmem>>, vector<1x8x16x128xf32>,
    return
  }
  func.func @transform_0(%arg0: i32, %arg1: i32) -> (i32, i32, i32, i32) {
    %c0_i32 = arith.constant 0 : i32
    %c0_i32_0 = arith.constant 0 : i32
    %c0_i32_1 = arith.constant 0 : i32
    return %arg0, %arg1, %c0_i32, %c0_i32_0 : i32, i32, i32, i32
  }
  func.func @transform_2(%arg0: i32, %arg1: i32) -> (i32, i32, i32) {
    %c0_i32 = arith.constant 0 : i32
    %c0_i32_0 = arith.constant 0 : i32
    %c0_i32_1 = arith.constant 0 : i32
    %c0_i32_2 = arith.constant 0 : i32
    return %c0_i32, %c0_i32_0, %c0_i32_1 : i32, i32, i32
  }
  func.func @transform_3(%arg0: i32, %arg1: i32) -> (i32, i32) {
    %c0_i32 = arith.constant 0 : i32
    %c0_i32_0 = arith.constant 0 : i32
    %c0_i32_1 = arith.constant 0 : i32
    return %c0_i32, %c0_i32_0 : i32, i32
  }
  func.func @transform_4(%arg0: i32, %arg1: i32) -> (i32, i32, i32) {
    %c0_i32 = arith.constant 0 : i32
    %c0_i32_0 = arith.constant 0 : i32
    %c0_i32_1 = arith.constant 0 : i32
    %c0_i32_2 = arith.constant 0 : i32
    return %c0_i32, %c0_i32_0, %c0_i32_1 : i32, i32, i32
  }
  func.func @transform_5(%arg0: i32, %arg1: i32) -> (i32, i32) {
    %c0_i32 = arith.constant 0 : i32
    %c0_i32_0 = arith.constant 0 : i32
    %c0_i32_1 = arith.constant 0 : i32
    return %c0_i32, %c0_i32_0 : i32, i32
  }
  func.func @transform_6(%arg0: i32, %arg1: i32) -> (i32, i32, i32, i32) {
    %c0_i32 = arith.constant 0 : i32
    %c0_i32_0 = arith.constant 0 : i32
    %c0_i32_1 = arith.constant 0 : i32
    return %arg0, %arg1, %c0_i32, %c0_i32_0 : i32, i32, i32, i32
  }
}

</mosaic_0001>

<bundles_post_ra>
// kernel: tpu_custom_call.1
= control target key start
LH: loop header
LB: loop body
LE: loop exit
PB: predicated region body
PF: predicated region fallthrough
CT: control target
= control target key end

     0   :  { %s6853_s0 = inlined_call_operand.hbm [shape: f32[2,16,16,128], index: 0, kind: input, shape index: {}]   ;;  %s6854_s1 = inlined_call_operand.hbm [shape: f32[2,16,16,128], index: 1, kind: input, shape index: {}]   ;;  %s6855_s2 = inlined_call_operand.hbm [shape: bf16[3,384,128], index: 2, kind: input, shape index: {}]   ;;  %s6856_s3 = inlined_call_operand.vmem [shape: f32[1,128], index: 3, kind: input, shape index: {}]   ;;  %s6857_s4 = inlined_call_operand.hbm [shape: bf16[3,384,128], index: 4, kind: input, shape index: {}]   ;;  %s6858_s5 = inlined_call_operand.vmem [shape: f32[1,128], index: 5, kind: input, shape index: {}]   ;;  %s6859_s6 = inlined_call_operand.hbm [shape: f32[2,16,16,128], index: 6, kind: output, shape index: {}]  }
   0x1   :  { %6877 = sst [smem:[#allocation47_spill]] %s6855_s2 }
   0x2   :  { %6878 = sst [smem:[#allocation48_spill]] %s6856_s3 }
   0x3   :  { %6879 = sst [smem:[#allocation49_spill]] %s6857_s4 }
   0x4   :  { %6880 = sst [smem:[#allocation50_spill]] %s6858_s5 }
   0x5   :  { %6881 = sst [smem:[#allocation51_spill]] %s6859_s6 }
   0x6   :  { %11 = vsyncpa [#allocation7], 0 }
   0x7   :  { %13 = vsyncpa [#allocation7 + $0x1], 0 }
   0x8   :  { %14 = vsyncpa [#allocation10], 0 }
   0x9   :  { %15 = vsyncpa [#allocation8], 0 }
   0xa   :  { %17 = vsyncpa [#allocation8 + $0x1], 0  ;;  %s5550_s21 = smov 0   ;;  %s5552_s22 = smov 0  }
   0xb   :  { %s5554_s23 = smov 0   ;;  %s5556_s24 = smov 0  }
   0xc   :  { %s5558_s25 = smov 0   ;;  %s5560_s26 = smov 0  }
   0xd   :  { %s5562_s27 = smov 0   ;;  %s5564_s28 = smov 0  }
   0xe LB: > { %6882 = sst [smem:[#allocation24_spill]] %s5471_s21  ;;  %s4259_s29 = sadd.s32 4294967295, %s5499_s28   ;;  %s5499_s28 = sphi %s5564_s28, %s23_s28   ;;  %s5495_s27 = sphi %s5562_s27, %s6956_s27   ;;  %s5491_s26 = sphi %s5560_s26, %s6955_s26   ;;  %s5487_s25 = sphi %s5558_s25, %s6954_s25   ;;  %s5483_s24 = sphi %s5556_s24, %s6953_s24   ;;  %s5479_s23 = sphi %s5554_s23, %s6952_s23   ;;  %s5475_s22 = sphi %s5552_s22, %s6951_s22   ;;  %s5471_s21 = sphi %s5550_s21, %s6950_s21  }
   0xf   : > { %s4260_s30 = sadd.s32 4294967294, %s5499_s28   ;;  %p57_p0 = scmp.ne.s32.totalorder %s5475_s22, %s5471_s21 }
  0x10   : > { %p5594_p1 = scmp.eq.s32.totalorder %s4259_s29, 0  ;;  %p5598_p2 = scmp.eq.s32.totalorder %s4259_s29, 3 }
  0x11   : > { %p173_p3 = scmp.eq.s32.totalorder %s4260_s30, 3  ;;  %p4261_p5 = scmp.ge.s32.totalorder %s5499_s28, 1 }
  0x12   : > { %p5604_p4 = por %p5594_p1, %p57_p0  ;;  %p180_p7 = scmp.lt.s32.totalorder %s5499_s28, 5 }
  0x13   : > { %p5609_p6 = por %p173_p3, %p57_p0  ;;  %s6888_s2 = sld [smem:[#allocation47_spill]] }
  0x14   : > { %p5617_p8 = pnand %p4261_p5, %p180_p7  ;;  %s5501_s15 = smov [#allocation9]  }
  0x15   : > { %s6886_s10 = scalar_select %p5609_p6, 1, 0 }
  0x16   : > { %p5154_p9 = pneg %p5617_p8  ;;  %s193_s16 = sshll.u32 %s5501_s15, 4  ;;  %s194_s16 = int_to_ptr.vmem [resolvable:$true] %s193_s16 }
  0x17   : > { %6887 = sst [smem:[#allocation25_spill]] %s6886_s10  ;;  %s5502_s20 = smov 64  }
  0x18   : > { %p5155_p10 = pnand %p5154_p9, %p5594_p1  ;;  %s6890_s4 = sld [smem:[#allocation49_spill]] }
  0x19   : > { %s191_s13 = sshll.u32 %s6888_s2, 4  ;;  %s5503_s29 = smov 4   ;;  %s192_s13 = int_to_ptr.hbm [resolvable:$true] %s191_s13 }
  0x1a   : > { %5157 = dma.hbm_to_vmem [thread:$0]  (!%p5155_p10), %s192_s13, 9216, %s194_s16, [#allocation10], %s5502_s20, %s5502_s20, %s5503_s29  }
  0x1b   : > { %s5504_s30 = smov [#allocation11]   ;;  %s32_s12 = sadd.s32 1, %s5491_s26 }
  0x1c   : > { %s210_s11 = sshll.u32 %s5504_s30, 4  ;;  %s35_s15 = sadd.s32 1, %s5495_s27  ;;  %s211_s11 = int_to_ptr.vmem [resolvable:$true] %s210_s11 }
  0x1d   : > { %p33_p11 = scmp.ge.s32.totalorder %s32_s12, 2  ;;  %s44_s17 = sadd.s32 1, %s5479_s23 }
  0x1e   : > { %s208_s19 = sshll.u32 %s6890_s4, 4  ;;  %p51_p12 = scmp.ne.s32.totalorder %s5479_s23, %s5475_s22  ;;  %s209_s19 = int_to_ptr.hbm [resolvable:$true] %s208_s19 }
  0x1f   : > { %5160 = dma.hbm_to_vmem [thread:$0]  (!%p5155_p10), %s209_s19, 9216, %s211_s11, [#allocation10], %s5502_s20, %s5502_s20, %s5503_s29  }
  0x20   : > { %p52_p13 = scmp.eq.s32.totalorder %s5499_s28, 0  ;;  %s6958_s12 = smov (%p33_p11, %s32_s12), 0 }
  0x21   : > { %6891 = sst [smem:[#allocation26_spill]] %s6958_s12  ;;  %s6960_s15 = smov (!%p33_p11, %s35_s15), %s5495_s27 }
  0x22   : > { %s40_s13 = ssub.s32 %s5491_s26, %s6958_s12  ;;  %p5639_p0 = por %p52_p13, %p51_p12 }
  0x23   : > { %p37_p3 = scmp.ge.s32.totalorder %s6960_s15, 2  ;;  %p5645_p5 = por %p5598_p2, %p51_p12 }
  0x24   : > { %p5171_p7 = scmp.lt.s32.totalorder %s5499_s28, 4  ;;  %s227_s19 = sand.u32 1, %s5479_s23  }
  0x25   : > { %s6893_s18 = scalar_select %p5645_p5, 1, 0 }
  0x26   : > { %s6962_s15 = smov (%p37_p3, %s6960_s15), 0  ;;  %s4265_s20 = sshll.u32 %s227_s19, 7 }
  0x27   : > { %6894 = sst [smem:[#allocation27_spill]] %s6893_s18  ;;  %s39_s29 = ssub.s32 %s5495_s27, %s6962_s15 }
  0x28   : > { %s41_s30 = sor.u32 %s40_s13, %s39_s29  ;;  %s4958_s11 = sshll.u32 %s5491_s26, 4 }
  0x29   : > { %p42_p9 = scmp.eq.s32.totalorder %s41_s30, 0  ;;  %s4268_s2 = sshll.u32 %s5495_s27, 5 }
  0x2a   : > { %s237_s4 = sadd.s32 %s4958_s11, %s4268_s2  ;;  %s231_s12 = scalar_lea.vmem [#allocation6], %s4265_s20 }
  0x2b   : > { %s242_s8 = sshll.u32 %s231_s12, 4  ;;  %s4269_s21 = sshll.u32 %s237_s4, 3  ;;  %s243_s8 = int_to_ptr.vmem [resolvable:$true] %s242_s8 }
  0x2c   : > { %s5658_s10 = scalar_select %p42_p9, %s5479_s23, %s44_s17  }
  0x2d   : > { %s239_s5 = scalar_lea.hbm %s6853_s0, %s4269_s21  ;;  %p5162_p2 = pnand %p5171_p7, %p5639_p0 }
  0x2e   : > { %s240_s3 = sshll.u32 %s239_s5, 4  ;;  %s228_s13 = scalar_lea.sflag [#allocation7], %s227_s19  ;;  %s241_s3 = int_to_ptr.hbm [resolvable:$true] %s240_s3 }
  0x2f   : > { %s5505_s29 = smov 128   ;;  %s5506_s30 = smov 8  }
  0x30   : > { %5164 = dma.hbm_to_vmem [thread:$0]  (!%p5162_p2), %s241_s3, 2048, %s243_s8, %s228_s13, %s5505_s29, %s5505_s29, %s5506_s30  }
  0x31   : > { %254 = sbr.rel (%p5617_p8) target bundleno = 1496 (0x5d8), region = 40 }
  0x36   : > { %s5670_s2 = sand.u32 1, %s5475_s22  }
  0x37   : > { %s4271_s4 = sshll.u32 %s5670_s2, 7  ;;  %s257_s6 = scalar_lea.sflag [#allocation7], %s5670_s2 }
  0x38   : > { %s5676_s21 = scalar_lea.vmem [#allocation6], %s4271_s4 }
  0x39   : > { %5454 = dma.done.wait (%p5604_p4), %s257_s6, 2048  }
  0x3a   : > { %5456 = vsyncadd (%p5604_p4), %s257_s6, 4294965248 }
  0x3b   : > { %5458 = dma.done.wait (%p5594_p1), [#allocation10], 18432  }
  0x3c   : > { %5460 = vsyncadd (%p5594_p1), [#allocation10], 4294948864  ;;  %s4275_s3 = sshll.u32 %s5483_s24, 3  ;;  %s4278_s14 = sshll.u32 %s5487_s25, 8 }
  0x3d   : > { %s4276_s5 = sadd.s32 4294967294, %s4275_s3  ;;  %s5507_s12 = smov [#allocation4]  }
  0x3e   : > { %p303_p8 = scmp.gt.s32.totalorder %s4276_s5, 0  ;;  %s321_s17 = sshll.u32 %s5507_s12, 4  ;;  %s322_s17 = int_to_ptr.vmem [resolvable:$true] %s321_s17 }
  0x3f   : > { %s305_s16 = sadd.s32 8, %s4275_s3  ;;  %s5349_s6 = scalar_lea.hbm %s6854_s1, 512 }
  0x40   : > { %s6964_s5 = smov (!%p303_p8, %s4276_s5), 0  ;;  %p306_p4 = scmp.lt.s32.totalorder %s305_s16, 14 }
  0x41   : > { %s4277_s18 = sshll.u32 %s6964_s5, 4 }
  0x42   : > { %s310_s19 = sadd.s32 %s4278_s14, %s4277_s18 }
  0x43   : > { %s311_s11 = scalar_lea.hbm %s6854_s1, %s310_s19 }
  0x44   : > { %s319_s7 = sshll.u32 %s311_s11, 4  ;;  %s320_s7 = int_to_ptr.hbm [resolvable:$true] %s319_s7 }
  0x45   : > { %s5345_s8 = sshra.s32 %s320_s7, 4  ;;  %s5346_s8 = int_to_ptr.hbm [resolvable:$true] %s5345_s8 }
  0x46   : > { %s5347_s13 = scalar_lea.hbm %s5346_s8, 32  ;;  %p5350_p10 = scmp.lt.s32.totalorder %s5346_s8, %s6854_s1 }
  0x47   : > { %p5348_p1 = scmp.ne.s32.totalorder %s5346_s8, %s5347_s13  ;;  %p5351_p11 = scmp.lt.s32.totalorder %s5349_s6, %s5347_s13 }
  0x49   : > { %p5352_p12 = por %p5351_p11, %p5350_p10 }
  0x4b   : > { %p5353_p13 = pnand %p5352_p12, %p5348_p1 }
  0x4d   : > { %5356 = shalt.err (!%p5353_p13)  }
  0x4e   : > { %324 = dma.hbm_to_vmem [thread:$0]  %s320_s7, 512, %s322_s17, [#allocation5] }
  0x4f   : > { %s6966_s16 = smov (!%p306_p4, %s305_s16), 14  ;;  %s5508_s5 = smov [#allocation4 + $0x20]  }
  0x50   : > { %s339_s18 = sshll.u32 %s5508_s5, 4  ;;  %s4279_s19 = sshll.u32 %s6966_s16, 4  ;;  %s340_s18 = int_to_ptr.vmem [resolvable:$true] %s339_s18 }
  0x51   : > { %s326_s9 = sadd.s32 %s4279_s19, %s4278_s14 }
  0x52   : > { %s327_s29 = scalar_lea.hbm %s6854_s1, %s326_s9 }
  0x53   : > { %s337_s30 = sshll.u32 %s327_s29, 4  ;;  %s338_s30 = int_to_ptr.hbm [resolvable:$true] %s337_s30 }
  0x54   : > { %s5369_s12 = sshra.s32 %s338_s30, 4  ;;  %s5370_s12 = int_to_ptr.hbm [resolvable:$true] %s5369_s12 }
  0x55   : > { %s5371_s8 = scalar_lea.hbm %s5370_s12, 32  ;;  %p5374_p3 = scmp.lt.s32.totalorder %s5370_s12, %s6854_s1 }
  0x56   : > { %p5372_p0 = scmp.ne.s32.totalorder %s5370_s12, %s5371_s8  ;;  %p5375_p7 = scmp.lt.s32.totalorder %s5349_s6, %s5371_s8 }
  0x58   : > { %p5376_p9 = por %p5375_p7, %p5374_p3 }
  0x5a   : > { %p5377_p2 = pnand %p5376_p9, %p5372_p0 }
  0x5c   : > { %5380 = shalt.err (!%p5377_p2)  }
  0x5d   : > { %342 = dma.hbm_to_vmem [thread:$0]  %s338_s30, 512, %s340_s18, [#allocation5 + $0x1] }
  0x5e   : > { %s5706_s14 = scalar_lea.vmem [#allocation12], %s4271_s4  ;;  %p4280_p8 = scmp.ne.s32.totalorder %s5483_s24, 0 }
  0x60   : > { %346 = sbr.rel (%p4280_p8) target bundleno = 148 (0x94), region = 64 }
  0x65   : > { %vm347_vm0 = vcmask 1040384   ;;  %vm348_vm1 = vsmask.f32 256  ;;  %v350_v0 = vld [vmem:[#allocation2] sm:$0x1] }
  0x66   : > { %vm5712_vm2 = vmand %vm347_vm0, %vm348_vm1  ;;  %v353_v2 = vld [vmem:[#allocation2 + $0xc] sm:$0x1]  ;;  %v356_v3 = vld [vmem:[#allocation2 + $0x18] sm:$0x1]  ;;  %vm386_vm3 = vsmask.f32 7938 }
  0x67   : > { %v351_v4 = vsel %vm5712_vm2, 0, %v350_v0  ;;  %v354_v5 = vsel %vm5712_vm2, 0, %v353_v2  ;;  %v357_v6 = vsel %vm5712_vm2, 0, %v356_v3  ;;  %v359_v7 = vld [vmem:[#allocation2 + $0x24] sm:$0x1]  ;;  %vm5738_vm4 = vmand %vm347_vm0, %vm386_vm3 }
  0x68   : > { %352 = vst [vmem:[#allocation2] sm:$0x1] %v351_v4  ;;  %v360_v8 = vsel %vm5712_vm2, 0, %v359_v7  ;;  %v362_v9 = vld [vmem:[#allocation2 + $0x30] sm:$0x1] }
  0x69   : > { %355 = vst [vmem:[#allocation2 + $0xc] sm:$0x1] %v354_v5  ;;  %v363_v10 = vsel %vm5712_vm2, 0, %v362_v9  ;;  %v365_v11 = vld [vmem:[#allocation2 + $0x3c] sm:$0x1] }
  0x6a   : > { %358 = vst [vmem:[#allocation2 + $0x18] sm:$0x1] %v357_v6  ;;  %v366_v12 = vsel %vm5712_vm2, 0, %v365_v11  ;;  %v368_v13 = vld [vmem:[#allocation2 + $0x48] sm:$0x1] }
  0x6b   : > { %361 = vst [vmem:[#allocation2 + $0x24] sm:$0x1] %v360_v8  ;;  %v369_v14 = vsel %vm5712_vm2, 0, %v368_v13  ;;  %v371_v15 = vld [vmem:[#allocation2 + $0x54] sm:$0x1] }
  0x6c   : > { %364 = vst [vmem:[#allocation2 + $0x30] sm:$0x1] %v363_v10  ;;  %v372_v16 = vsel %vm5712_vm2, 0, %v371_v15  ;;  %v374_v17 = vld [vmem:[#allocation2 + $0x60] sm:$0x1] }
  0x6d   : > { %367 = vst [vmem:[#allocation2 + $0x3c] sm:$0x1] %v366_v12  ;;  %v375_v18 = vsel %vm5712_vm2, 0, %v374_v17  ;;  %v377_v19 = vld [vmem:[#allocation2 + $0x6c] sm:$0x1] }
  0x6e   : > { %370 = vst [vmem:[#allocation2 + $0x48] sm:$0x1] %v369_v14  ;;  %v378_v20 = vsel %vm5712_vm2, 0, %v377_v19  ;;  %v380_v21 = vld [vmem:[#allocation2 + $0x78] sm:$0x1] }
  0x6f   : > { %373 = vst [vmem:[#allocation2 + $0x54] sm:$0x1] %v372_v16  ;;  %v381_v23 = vsel %vm5712_vm2, 0, %v380_v21  ;;  %v383_v24 = vld [vmem:[#allocation2 + $0x84] sm:$0x1] }
  0x70   : > { %376 = vst [vmem:[#allocation2 + $0x60] sm:$0x1] %v375_v18  ;;  %v384_v25 = vsel %vm5712_vm2, 0, %v383_v24  ;;  %v388_v26 = vld [vmem:[#allocation2 + $0x8] sm:$0x1] }
  0x71   : > { %379 = vst [vmem:[#allocation2 + $0x6c] sm:$0x1] %v378_v20  ;;  %v389_v27 = vsel %vm5738_vm4, 0, %v388_v26  ;;  %v391_v28 = vld [vmem:[#allocation2 + $0x14] sm:$0x1] }
  0x72   : > { %382 = vst [vmem:[#allocation2 + $0x78] sm:$0x1] %v381_v23  ;;  %v392_v29 = vsel %vm5738_vm4, 0, %v391_v28  ;;  %v394_v30 = vld [vmem:[#allocation2 + $0x20] sm:$0x1] }
  0x73   : > { %385 = vst [vmem:[#allocation2 + $0x84] sm:$0x1] %v384_v25  ;;  %v395_v31 = vsel %vm5738_vm4, 0, %v394_v30  ;;  %v397_v32 = vld [vmem:[#allocation2 + $0x2c] sm:$0x1] }
  0x74   : > { %390 = vst [vmem:[#allocation2 + $0x8] sm:$0x1] %v389_v27  ;;  %v398_v33 = vsel %vm5738_vm4, 0, %v397_v32  ;;  %v400_v34 = vld [vmem:[#allocation2 + $0x38] sm:$0x1] }
  0x75   : > { %393 = vst [vmem:[#allocation2 + $0x14] sm:$0x1] %v392_v29  ;;  %v401_v35 = vsel %vm5738_vm4, 0, %v400_v34  ;;  %v403_v36 = vld [vmem:[#allocation2 + $0x44] sm:$0x1] }
  0x76   : > { %396 = vst [vmem:[#allocation2 + $0x20] sm:$0x1] %v395_v31  ;;  %v404_v37 = vsel %vm5738_vm4, 0, %v403_v36  ;;  %v406_v38 = vld [vmem:[#allocation2 + $0x50] sm:$0x1] }
  0x77   : > { %399 = vst [vmem:[#allocation2 + $0x2c] sm:$0x1] %v398_v33  ;;  %v407_v39 = vsel %vm5738_vm4, 0, %v406_v38  ;;  %v409_v40 = vld [vmem:[#allocation2 + $0x5c] sm:$0x1] }
  0x78   : > { %402 = vst [vmem:[#allocation2 + $0x38] sm:$0x1] %v401_v35  ;;  %v410_v41 = vsel %vm5738_vm4, 0, %v409_v40  ;;  %v412_v42 = vld [vmem:[#allocation2 + $0x68] sm:$0x1] }
  0x79   : > { %405 = vst [vmem:[#allocation2 + $0x44] sm:$0x1] %v404_v37  ;;  %v413_v43 = vsel %vm5738_vm4, 0, %v412_v42  ;;  %v415_v44 = vld [vmem:[#allocation2 + $0x74] sm:$0x1] }
  0x7a   : > { %408 = vst [vmem:[#allocation2 + $0x50] sm:$0x1] %v407_v39  ;;  %v416_v45 = vsel %vm5738_vm4, 0, %v415_v44  ;;  %v418_v46 = vld [vmem:[#allocation2 + $0x80] sm:$0x1] }
  0x7b   : > { %411 = vst [vmem:[#allocation2 + $0x5c] sm:$0x1] %v410_v41  ;;  %v419_v47 = vsel %vm5738_vm4, 0, %v418_v46  ;;  %v421_v48 = vld [vmem:[#allocation2 + $0x8c] sm:$0x1] }
  0x7c   : > { %414 = vst [vmem:[#allocation2 + $0x68] sm:$0x1] %v413_v43  ;;  %v422_v49 = vsel %vm5738_vm4, 0, %v421_v48  ;;  %v424_v50 = vld [vmem:[#allocation3] sm:$0x1] }
  0x7d   : > { %417 = vst [vmem:[#allocation2 + $0x74] sm:$0x1] %v416_v45  ;;  %v425_v51 = vsel %vm5712_vm2, 0, %v424_v50  ;;  %v427_v52 = vld [vmem:[#allocation3 + $0xc] sm:$0x1] }
  0x7e   : > { %420 = vst [vmem:[#allocation2 + $0x80] sm:$0x1] %v419_v47  ;;  %v428_v53 = vsel %vm5712_vm2, 0, %v427_v52  ;;  %v430_v54 = vld [vmem:[#allocation3 + $0x18] sm:$0x1] }
  0x7f   : > { %423 = vst [vmem:[#allocation2 + $0x8c] sm:$0x1] %v422_v49  ;;  %v431_v55 = vsel %vm5712_vm2, 0, %v430_v54  ;;  %v433_v56 = vld [vmem:[#allocation3 + $0x24] sm:$0x1] }
  0x80   : > { %426 = vst [vmem:[#allocation3] sm:$0x1] %v425_v51  ;;  %v434_v57 = vsel %vm5712_vm2, 0, %v433_v56  ;;  %v436_v58 = vld [vmem:[#allocation3 + $0x30] sm:$0x1] }
  0x81   : > { %429 = vst [vmem:[#allocation3 + $0xc] sm:$0x1] %v428_v53  ;;  %v437_v59 = vsel %vm5712_vm2, 0, %v436_v58  ;;  %v439_v60 = vld [vmem:[#allocation3 + $0x3c] sm:$0x1] }
  0x82   : > { %432 = vst [vmem:[#allocation3 + $0x18] sm:$0x1] %v431_v55  ;;  %v440_v61 = vsel %vm5712_vm2, 0, %v439_v60  ;;  %v442_v62 = vld [vmem:[#allocation3 + $0x48] sm:$0x1] }
  0x83   : > { %435 = vst [vmem:[#allocation3 + $0x24] sm:$0x1] %v434_v57  ;;  %v443_v63 = vsel %vm5712_vm2, 0, %v442_v62  ;;  %v445_v0 = vld [vmem:[#allocation3 + $0x54] sm:$0x1] }
  0x84   : > { %438 = vst [vmem:[#allocation3 + $0x30] sm:$0x1] %v437_v59  ;;  %v446_v2 = vsel %vm5712_vm2, 0, %v445_v0  ;;  %v448_v3 = vld [vmem:[#allocation3 + $0x60] sm:$0x1] }
  0x85   : > { %441 = vst [vmem:[#allocation3 + $0x3c] sm:$0x1] %v440_v61  ;;  %v449_v4 = vsel %vm5712_vm2, 0, %v448_v3  ;;  %v451_v5 = vld [vmem:[#allocation3 + $0x6c] sm:$0x1] }
  0x86   : > { %444 = vst [vmem:[#allocation3 + $0x48] sm:$0x1] %v443_v63  ;;  %v452_v6 = vsel %vm5712_vm2, 0, %v451_v5  ;;  %v454_v7 = vld [vmem:[#allocation3 + $0x8] sm:$0x1] }
  0x87   : > { %447 = vst [vmem:[#allocation3 + $0x54] sm:$0x1] %v446_v2  ;;  %v455_v8 = vsel %vm5738_vm4, 0, %v454_v7  ;;  %v457_v9 = vld [vmem:[#allocation3 + $0x14] sm:$0x1] }
  0x88   : > { %450 = vst [vmem:[#allocation3 + $0x60] sm:$0x1] %v449_v4  ;;  %v458_v10 = vsel %vm5738_vm4, 0, %v457_v9  ;;  %v460_v11 = vld [vmem:[#allocation3 + $0x20] sm:$0x1] }
  0x89   : > { %453 = vst [vmem:[#allocation3 + $0x6c] sm:$0x1] %v452_v6  ;;  %v461_v12 = vsel %vm5738_vm4, 0, %v460_v11  ;;  %v463_v13 = vld [vmem:[#allocation3 + $0x2c] sm:$0x1] }
  0x8a   : > { %456 = vst [vmem:[#allocation3 + $0x8] sm:$0x1] %v455_v8  ;;  %v464_v1 = vsel %vm5738_vm4, 0, %v463_v13  ;;  %v466_v14 = vld [vmem:[#allocation3 + $0x38] sm:$0x1] }
  0x8b   : > { %459 = vst [vmem:[#allocation3 + $0x14] sm:$0x1] %v458_v10  ;;  %v467_v15 = vsel %vm5738_vm4, 0, %v466_v14  ;;  %v469_v16 = vld [vmem:[#allocation3 + $0x44] sm:$0x1] }
  0x8c   : > { %462 = vst [vmem:[#allocation3 + $0x20] sm:$0x1] %v461_v12  ;;  %v470_v17 = vsel %vm5738_vm4, 0, %v469_v16  ;;  %v472_v18 = vld [vmem:[#allocation3 + $0x50] sm:$0x1] }
  0x8d   : > { %465 = vst [vmem:[#allocation3 + $0x2c] sm:$0x1] %v464_v1  ;;  %v473_v19 = vsel %vm5738_vm4, 0, %v472_v18  ;;  %v475_v20 = vld [vmem:[#allocation3 + $0x5c] sm:$0x1] }
  0x8e   : > { %468 = vst [vmem:[#allocation3 + $0x38] sm:$0x1] %v467_v15  ;;  %v476_v21 = vsel %vm5738_vm4, 0, %v475_v20  ;;  %v478_v23 = vld [vmem:[#allocation3 + $0x68] sm:$0x1] }
  0x8f   : > { %471 = vst [vmem:[#allocation3 + $0x44] sm:$0x1] %v470_v17  ;;  %v479_v24 = vsel %vm5738_vm4, 0, %v478_v23  ;;  %v481_v25 = vld [vmem:[#allocation3 + $0x74] sm:$0x1] }
  0x90   : > { %474 = vst [vmem:[#allocation3 + $0x50] sm:$0x1] %v473_v19  ;;  %v482_v26 = vsel %vm5738_vm4, 0, %v481_v25 }
  0x91   : > { %477 = vst [vmem:[#allocation3 + $0x5c] sm:$0x1] %v476_v21 }
  0x92   : > { %480 = vst [vmem:[#allocation3 + $0x68] sm:$0x1] %v479_v24 }
  0x93   : > { %483 = vst [vmem:[#allocation3 + $0x74] sm:$0x1] %v482_v26 }
  0x94 PF: > { %v484_v27 = vld [vmem:[%s5676_s21] sm:$0xff]  ;;  %v485_v29 = vld [vmem:[%s5676_s21 + $0x8] sm:$0xff]  ;;  %vm680_vm5 = vcmask 1043456   ;;  %vm681_vm6 = vsmask.f32 7938  ;;  %v486_v31 = vld [vmem:[%s5676_s21 + $0x10] sm:$0xff] }
  0x95   : > { %v500_v28 = vpack.c.bf16 %v484_v27, %v484_v27  ;;  %v501_v30 = vpack.c.bf16 %v485_v29, %v485_v29  ;;  %vm516_vm7 = vsmask.f32 256  ;;  %vm517_vm8 = vsmask.f32 4368  ;;  %v487_v34 = vld [vmem:[%s5676_s21 + $0x18] sm:$0xff]  ;;  %v488_v38 = vld [vmem:[%s5676_s21 + $0x20] sm:$0xff]  ;;  %vm5818_vm10 = vmand %vm680_vm5, %vm681_vm6 }
  0x96   : > { %v502_v33 = vpack.c.bf16 %v486_v31, %v486_v31  ;;  %vm687_vm9 = vcmask 1040384   ;;  %v503_v37 = vpack.c.bf16 %v487_v34, %v487_v34  ;;  %v489_v39 = vld [vmem:[%s5676_s21 + $0x28] sm:$0xff]  ;;  %v6899_v41 = vmov 0  ;;  %v683_v42 = vld [vmem:[#allocation2 + $0x18] sm:$0xf]  ;;  %vm5824_vm11 = vmor %vm516_vm7, %vm517_vm8 }
  0x97   : > { %v520_v22 = vshrl.u32 %v500_v28, 16  ;;  %v523_v32 = vshll.u32 %v500_v28, 16  ;;  %v528_v35 = vshrl.u32 %v501_v30, 16  ;;  %v531_v36 = vshll.u32 %v501_v30, 16  ;;  %v689_v48 = vld [vmem:[#allocation2 + $0x20] sm:$0x1]  ;;  %vm5830_vm12 = vmand %vm687_vm9, %vm516_vm7 }
  0x98   : > { %v6900_v41 = vsel %vm5818_vm10, 4294967295, %v6899_v41  ;;  %v537_v43 = vshrl.u32 %v502_v33, 16  ;;  %v540_v44 = vshll.u32 %v502_v33, 16  ;;  %v504_v45 = vpack.c.bf16 %v488_v38, %v488_v38  ;;  %v692_v56 = vld [vmem:[#allocation2 + $0x24] sm:$0xf]  ;;  %v490_v5 = vld [vmem:[%s5676_s21 + $0x30] sm:$0xff] }
  0x99   : > { %v522_v40 = vrot.slane %v520_v22, 7  ;;  %6901 = vst [vmem:[#allocation28_spill] sm:$0xff] %v6900_v41  ;;  %v6902_v46 = vmov 0  ;;  %v530_v47 = vrot.slane %v528_v35, 7  ;;  %v545_v49 = vshrl.u32 %v503_v37, 16  ;;  %v491_v10 = vld [vmem:[%s5676_s21 + $0x38] sm:$0xff] }
  0x9a   : > { %v6903_v46 = vsel %vm5824_vm11, 4294967295, %v6902_v46  ;;  %v548_v50 = vshll.u32 %v503_v37, 16  ;;  %v505_v51 = vpack.c.bf16 %v489_v39, %v489_v39  ;;  %v6905_v54 = vmov 0  ;;  %v696_v61 = vld [vmem:[#allocation2 + $0x2c] sm:$0x1]  ;;  %v493_v15 = vld [vmem:[%s5676_s21 + $0x48] sm:$0xff] }
  0x9b   : > { %6904 = vst [vmem:[#allocation29_spill] sm:$0xff] %v6903_v46  ;;  %v525_v52 = vor.u32 %v523_v32, %v522_v40  ;;  %v526_v53 = vrot.slane %v522_v40, 4  ;;  %v6906_v54 = vsel %vm5830_vm12, 4294967295, %v6905_v54  ;;  %v539_v55 = vrot.slane %v537_v43, 7  ;;  %v699_v4 = vld [vmem:[#allocation2 + $0x30] sm:$0xf] }
  0x9c   : > { %6907 = vst [vmem:[#allocation30_spill] sm:$0xff] %v6906_v54  ;;  %v554_v57 = vshrl.u32 %v504_v45, 16  ;;  %v533_v58 = vor.u32 %v531_v36, %v530_v47  ;;  %v535_v59 = vrot.slane %v530_v47, 4  ;;  %v547_v60 = vrot.slane %v545_v49, 7  ;;  %v492_v11 = vld [vmem:[%s5676_s21 + $0x40] sm:$0xff]  ;;  %v494_v16 = vld [vmem:[%s5676_s21 + $0x50] sm:$0xff] }
  0x9d   : > { %v557_v62 = vshll.u32 %v504_v45, 16  ;;  %v684_v63 = vsel %vm5818_vm10, %v525_v52, %v683_v42  ;;  %v542_v0 = vor.u32 %v540_v44, %v539_v55  ;;  %v543_v2 = vrot.slane %v539_v55, 4  ;;  %v703_v26 = vld [vmem:[#allocation2 + $0x38] sm:$0x1]  ;;  %v706_v32 = vld [vmem:[#allocation2 + $0x3c] sm:$0xf] }
  0x9e   : > { %v556_v3 = vrot.slane %v554_v57, 7  ;;  %685 = vst [vmem:[#allocation2 + $0x18] sm:$0xf] %v684_v63  ;;  %v534_v6 = vsel %vm5824_vm11, %v526_v53, %v533_v58  ;;  %v690_v7 = vsel %vm5830_vm12, %v535_v59, %v689_v48  ;;  %v550_v8 = vor.u32 %v548_v50, %v547_v60  ;;  %v710_v43 = vld [vmem:[#allocation2 + $0x44] sm:$0x1]  ;;  %v496_v57 = vld [vmem:[%s5676_s21 + $0x60] sm:$0xff] }
  0x9f   : > { %v552_v9 = vrot.slane %v547_v60, 4  ;;  %686 = vst [vmem:[#allocation2 + $0x1c] sm:$0xf] %v534_v6  ;;  %v693_v12 = vsel %vm5818_vm10, %v542_v0, %v692_v56  ;;  %v562_v14 = vshrl.u32 %v505_v51, 16  ;;  %v565_v19 = vshll.u32 %v505_v51, 16  ;;  %v495_v51 = vld [vmem:[%s5676_s21 + $0x58] sm:$0xff] }
  0xa0   : > { %v559_v13 = vor.u32 %v557_v62, %v556_v3  ;;  %v560_v1 = vrot.slane %v556_v3, 4  ;;  %691 = vst [vmem:[#allocation2 + $0x20] sm:$0x1] %v690_v7  ;;  %v551_v17 = vsel %vm5824_vm11, %v543_v2, %v550_v8  ;;  %v506_v20 = vpack.c.bf16 %v490_v5, %v490_v5  ;;  %v713_v44 = vld [vmem:[#allocation2 + $0x48] sm:$0xf]  ;;  %v497_v63 = vld [vmem:[%s5676_s21 + $0x68] sm:$0xff] }
  0xa1   : > { %v697_v18 = vsel %vm5830_vm12, %v552_v9, %v696_v61  ;;  %694 = vst [vmem:[#allocation2 + $0x24] sm:$0xf] %v693_v12  ;;  %v564_v23 = vrot.slane %v562_v14, 7  ;;  %v507_v24 = vpack.c.bf16 %v491_v10, %v491_v10  ;;  %v508_v25 = vpack.c.bf16 %v492_v11, %v492_v11  ;;  %v717_v62 = vld [vmem:[#allocation2 + $0x50] sm:$0x1]  ;;  %v498_v10 = vld [vmem:[%s5676_s21 + $0x70] sm:$0xff] }
  0xa2   : > { %v700_v21 = vsel %vm5818_vm10, %v559_v13, %v699_v4  ;;  %695 = vst [vmem:[#allocation2 + $0x28] sm:$0xf] %v551_v17  ;;  %v571_v27 = vshrl.u32 %v506_v20, 16  ;;  %v574_v28 = vshll.u32 %v506_v20, 16  ;;  %v509_v29 = vpack.c.bf16 %v493_v15, %v493_v15  ;;  %v720_v7 = vld [vmem:[#allocation2 + $0x54] sm:$0xf] }
  0xa3   : > { %v510_v30 = vpack.c.bf16 %v494_v16, %v494_v16  ;;  %698 = vst [vmem:[#allocation2 + $0x2c] sm:$0x1] %v697_v18  ;;  %v567_v31 = vor.u32 %v565_v19, %v564_v23  ;;  %v569_v22 = vrot.slane %v564_v23, 4  ;;  %v579_v33 = vshrl.u32 %v507_v24, 16  ;;  %v724_v19 = vld [vmem:[#allocation2 + $0x5c] sm:$0x1] }
  0xa4   : > { %v582_v34 = vshll.u32 %v507_v24, 16  ;;  %701 = vst [vmem:[#allocation2 + $0x30] sm:$0xf] %v700_v21  ;;  %v573_v35 = vrot.slane %v571_v27, 7  ;;  %v588_v36 = vshrl.u32 %v508_v25, 16  ;;  %v591_v37 = vshll.u32 %v508_v25, 16 }
  0xa5   : > { %v596_v38 = vshrl.u32 %v509_v29, 16  ;;  %v568_v39 = vsel %vm5824_vm11, %v560_v1, %v567_v31  ;;  %v704_v40 = vsel %vm5830_vm12, %v569_v22, %v703_v26  ;;  %v581_v42 = vrot.slane %v579_v33, 7  ;;  %v499_v1 = vld [vmem:[%s5676_s21 + $0x78] sm:$0xff] }
  0xa6   : > { %v599_v45 = vshll.u32 %v509_v29, 16  ;;  %702 = vst [vmem:[#allocation2 + $0x34] sm:$0xf] %v568_v39  ;;  %v576_v47 = vor.u32 %v574_v28, %v573_v35  ;;  %v577_v48 = vrot.slane %v573_v35, 4  ;;  %v590_v49 = vrot.slane %v588_v36, 7 }
  0xa7   : > { %v598_v50 = vrot.slane %v596_v38, 7  ;;  %705 = vst [vmem:[#allocation2 + $0x38] sm:$0x1] %v704_v40  ;;  %v584_v52 = vor.u32 %v582_v34, %v581_v42  ;;  %v586_v53 = vrot.slane %v581_v42, 4  ;;  %v605_v55 = vshrl.u32 %v510_v30, 16 }
  0xa8   : > { %v608_v56 = vshll.u32 %v510_v30, 16  ;;  %v707_v58 = vsel %vm5818_vm10, %v576_v47, %v706_v32  ;;  %v593_v59 = vor.u32 %v591_v37, %v590_v49  ;;  %v594_v60 = vrot.slane %v590_v49, 4  ;;  %v727_v20 = vld [vmem:[#allocation2 + $0x60] sm:$0xf]  ;;  %v731_v37 = vld [vmem:[#allocation2 + $0x68] sm:$0x1] }
  0xa9   : > { %v601_v61 = vor.u32 %v599_v45, %v598_v50  ;;  %708 = vst [vmem:[#allocation2 + $0x3c] sm:$0xf] %v707_v58  ;;  %v585_v0 = vsel %vm5824_vm11, %v577_v48, %v584_v52  ;;  %v711_v2 = vsel %vm5830_vm12, %v586_v53, %v710_v43  ;;  %v603_v3 = vrot.slane %v598_v50, 4  ;;  %v738_v53 = vld [vmem:[#allocation2 + $0x74] sm:$0x1] }
  0xaa   : > { %v607_v4 = vrot.slane %v605_v55, 7  ;;  %709 = vst [vmem:[#allocation2 + $0x40] sm:$0xf] %v585_v0  ;;  %v714_v5 = vsel %vm5818_vm10, %v593_v59, %v713_v44  ;;  %v511_v8 = vpack.c.bf16 %v495_v51, %v495_v51  ;;  %v512_v9 = vpack.c.bf16 %v496_v57, %v496_v57  ;;  %v734_v44 = vld [vmem:[#allocation2 + $0x6c] sm:$0xf] }
  0xab   : > { %v602_v6 = vsel %vm5824_vm11, %v594_v60, %v601_v61  ;;  %712 = vst [vmem:[#allocation2 + $0x44] sm:$0x1] %v711_v2  ;;  %v718_v11 = vsel %vm5830_vm12, %v603_v3, %v717_v62  ;;  %v513_v13 = vpack.c.bf16 %v497_v63, %v497_v63  ;;  %v514_v24 = vpack.c.bf16 %v498_v10, %v498_v10 }
  0xac   : > { %v610_v12 = vor.u32 %v608_v56, %v607_v4  ;;  %715 = vst [vmem:[#allocation2 + $0x48] sm:$0xf] %v714_v5  ;;  %v613_v14 = vshrl.u32 %v511_v8, 16  ;;  %v616_v15 = vshll.u32 %v511_v8, 16  ;;  %v622_v16 = vshrl.u32 %v512_v9, 16 }
  0xad   : > { %v625_v17 = vshll.u32 %v512_v9, 16  ;;  %716 = vst [vmem:[#allocation2 + $0x4c] sm:$0xf] %v602_v6  ;;  %v630_v21 = vshrl.u32 %v513_v13, 16  ;;  %v633_v23 = vshll.u32 %v513_v13, 16  ;;  %v611_v25 = vrot.slane %v607_v4, 4 }
  0xae   : > { %v721_v18 = vsel %vm5818_vm10, %v610_v12, %v720_v7  ;;  %719 = vst [vmem:[#allocation2 + $0x50] sm:$0x1] %v718_v11  ;;  %v615_v26 = vrot.slane %v613_v14, 7  ;;  %v624_v27 = vrot.slane %v622_v16, 7  ;;  %v515_v28 = vpack.c.bf16 %v499_v1, %v499_v1 }
  0xaf   : > { %722 = vst [vmem:[#allocation2 + $0x54] sm:$0xf] %v721_v18  ;;  %v632_v29 = vrot.slane %v630_v21, 7  ;;  %v639_v30 = vshrl.u32 %v514_v24, 16  ;;  %v642_v31 = vshll.u32 %v514_v24, 16 }
  0xb0   : > { %v618_v22 = vor.u32 %v616_v15, %v615_v26  ;;  %v620_v32 = vrot.slane %v615_v26, 4  ;;  %v627_v33 = vor.u32 %v625_v17, %v624_v27  ;;  %v628_v34 = vrot.slane %v624_v27, 4 }
  0xb1   : > { %v635_v35 = vor.u32 %v633_v23, %v632_v29  ;;  %v637_v36 = vrot.slane %v632_v29, 4  ;;  %v641_v38 = vrot.slane %v639_v30, 7  ;;  %v647_v39 = vshrl.u32 %v515_v28, 16 }
  0xb2   : > { %v619_v40 = vsel %vm5824_vm11, %v611_v25, %v618_v22  ;;  %v725_v42 = vsel %vm5830_vm12, %v620_v32, %v724_v19  ;;  %v728_v43 = vsel %vm5818_vm10, %v627_v33, %v727_v20  ;;  %v650_v45 = vshll.u32 %v515_v28, 16 }
  0xb3   : > { %723 = vst [vmem:[#allocation2 + $0x58] sm:$0xf] %v619_v40  ;;  %v636_v47 = vsel %vm5824_vm11, %v628_v34, %v635_v35  ;;  %v644_v48 = vor.u32 %v642_v31, %v641_v38  ;;  %v732_v49 = vsel %vm5830_vm12, %v637_v36, %v731_v37  ;;  %v645_v50 = vrot.slane %v641_v38, 4 }
  0xb4   : > { %726 = vst [vmem:[#allocation2 + $0x5c] sm:$0x1] %v725_v42  ;;  %v649_v51 = vrot.slane %v647_v39, 7 }
  0xb5   : > { %729 = vst [vmem:[#allocation2 + $0x60] sm:$0xf] %v728_v43  ;;  %v735_v52 = vsel %vm5818_vm10, %v644_v48, %v734_v44 }
  0xb6   : > { %730 = vst [vmem:[#allocation2 + $0x64] sm:$0xf] %v636_v47  ;;  %v652_v55 = vor.u32 %v650_v45, %v649_v51  ;;  %v654_v56 = vrot.slane %v649_v51, 4 }
  0xb7   : > { %733 = vst [vmem:[#allocation2 + $0x68] sm:$0x1] %v732_v49 }
  0xb8   : > { %736 = vst [vmem:[#allocation2 + $0x6c] sm:$0xf] %v735_v52  ;;  %v653_v57 = vsel %vm5824_vm11, %v645_v50, %v652_v55  ;;  %v739_v58 = vsel %vm5830_vm12, %v654_v56, %v738_v53 }
  0xb9   : > { %737 = vst [vmem:[#allocation2 + $0x70] sm:$0xf] %v653_v57 }
  0xba   : > { %740 = vst [vmem:[#allocation2 + $0x74] sm:$0x1] %v739_v58 }
  0xbb   : > { %5461 = dma.done.wait [#allocation5], 512 }
  0xbc   : > { %5462 = vsyncadd [#allocation5], 4294966784 }
  0xbd   : > { %5463 = dma.done.wait [#allocation5 + $0x1], 512 }
  0xbe   : > { %5464 = vsyncadd [#allocation5 + $0x1], 4294966784  ;;  %v747_v59 = vld [vmem:[#allocation4] sm:$0xff]  ;;  %v748_v60 = vld [vmem:[#allocation4 + $0x8] sm:$0xff] }
  0xbf   : > { %v751_v61 = vpack.c.bf16 %v747_v59, %v747_v59  ;;  %v752_v62 = vpack.c.bf16 %v748_v60, %v748_v60  ;;  %v749_v63 = vld [vmem:[#allocation4 + $0x10] sm:$0xff]  ;;  %v750_v2 = vld [vmem:[#allocation4 + $0x18] sm:$0xff]  ;;  %v809_v3 = vld [vmem:[#allocation4 + $0x20] sm:$0xff] }
  0xc0   : > { %v753_v0 = vpack.c.bf16 %v749_v63, %v749_v63  ;;  %v754_v10 = vpack.c.bf16 %v750_v2, %v750_v2  ;;  %v813_v11 = vpack.c.bf16 %v809_v3, %v809_v3  ;;  %v810_v12 = vld [vmem:[#allocation4 + $0x28] sm:$0xff]  ;;  %v811_v13 = vld [vmem:[#allocation4 + $0x30] sm:$0xff]  ;;  %v795_v14 = vld [vmem:[#allocation2] sm:$0xf] }
  0xc1   : > { %v756_v4 = vshrl.u32 %v751_v61, 16  ;;  %v759_v5 = vshll.u32 %v751_v61, 16  ;;  %v764_v6 = vshrl.u32 %v752_v62, 16  ;;  %v767_v7 = vshll.u32 %v752_v62, 16  ;;  %v799_v18 = vld [vmem:[#allocation2 + $0x8] sm:$0x1] }
  0xc2   : > { %v773_v8 = vshrl.u32 %v753_v0, 16  ;;  %v776_v9 = vshll.u32 %v753_v0, 16  ;;  %v814_v16 = vpack.c.bf16 %v810_v12, %v810_v12  ;;  %v815_v17 = vpack.c.bf16 %v811_v13, %v811_v13  ;;  %v802_v28 = vld [vmem:[#allocation2 + $0xc] sm:$0xf]  ;;  %v806_v35 = vld [vmem:[#allocation2 + $0x14] sm:$0x1] }
  0xc3   : > { %v758_v1 = vrot.slane %v756_v4, 7  ;;  %v766_v15 = vrot.slane %v764_v6, 7  ;;  %v781_v20 = vshrl.u32 %v754_v10, 16  ;;  %v784_v21 = vshll.u32 %v754_v10, 16  ;;  %v812_v37 = vld [vmem:[#allocation4 + $0x38] sm:$0xff] }
  0xc4   : > { %v775_v19 = vrot.slane %v773_v8, 7  ;;  %v818_v23 = vshrl.u32 %v813_v11, 16  ;;  %v821_v36 = vshll.u32 %v813_v11, 16  ;;  %v858_v42 = vld [vmem:[#allocation2 + $0x78] sm:$0xf]  ;;  %v826_v44 = vshrl.u32 %v814_v16, 16 }
  0xc5   : > { %v761_v24 = vor.u32 %v759_v5, %v758_v1  ;;  %v762_v25 = vrot.slane %v758_v1, 4  ;;  %v769_v26 = vor.u32 %v767_v7, %v766_v15  ;;  %v771_v27 = vrot.slane %v766_v15, 4  ;;  %v862_v50 = vld [vmem:[#allocation2 + $0x80] sm:$0x1]  ;;  %v865_v58 = vld [vmem:[#allocation2 + $0x84] sm:$0xf] }
  0xc6   : > { %v778_v29 = vor.u32 %v776_v9, %v775_v19  ;;  %v779_v30 = vrot.slane %v775_v19, 4  ;;  %v783_v31 = vrot.slane %v781_v20, 7  ;;  %v820_v22 = vrot.slane %v818_v23, 7  ;;  %v869_v6 = vld [vmem:[#allocation2 + $0x8c] sm:$0x1] }
  0xc7   : > { %v796_v32 = vsel %vm5818_vm10, %v761_v24, %v795_v14  ;;  %v770_v33 = vsel %vm5824_vm11, %v762_v25, %v769_v26  ;;  %v800_v34 = vsel %vm5830_vm12, %v771_v27, %v799_v18  ;;  %v829_v45 = vshll.u32 %v814_v16, 16 }
  0xc8   : > { %797 = vst [vmem:[#allocation2] sm:$0xf] %v796_v32  ;;  %v803_v38 = vsel %vm5818_vm10, %v778_v29, %v802_v28  ;;  %v786_v39 = vor.u32 %v784_v21, %v783_v31  ;;  %v788_v40 = vrot.slane %v783_v31, 4  ;;  %v823_v43 = vor.u32 %v821_v36, %v820_v22 }
  0xc9   : > { %798 = vst [vmem:[#allocation2 + $0x4] sm:$0xf] %v770_v33  ;;  %v835_v47 = vshrl.u32 %v815_v17, 16  ;;  %v838_v51 = vshll.u32 %v815_v17, 16  ;;  %v816_v52 = vpack.c.bf16 %v812_v37, %v812_v37  ;;  %v824_v55 = vrot.slane %v820_v22, 4 }
  0xca   : > { %801 = vst [vmem:[#allocation2 + $0x8] sm:$0x1] %v800_v34  ;;  %v787_v48 = vsel %vm5824_vm11, %v779_v30, %v786_v39  ;;  %v807_v49 = vsel %vm5830_vm12, %v788_v40, %v806_v35  ;;  %v859_v53 = vsel %vm5818_vm10, %v823_v43, %v858_v42  ;;  %v828_v56 = vrot.slane %v826_v44, 7 }
  0xcb   : > { %804 = vst [vmem:[#allocation2 + $0xc] sm:$0xf] %v803_v38  ;;  %v837_v57 = vrot.slane %v835_v47, 7  ;;  %v843_v59 = vshrl.u32 %v816_v52, 16  ;;  %v846_v60 = vshll.u32 %v816_v52, 16 }
  0xcc   : > { %805 = vst [vmem:[#allocation2 + $0x10] sm:$0xf] %v787_v48  ;;  %v831_v61 = vor.u32 %v829_v45, %v828_v56  ;;  %v833_v62 = vrot.slane %v828_v56, 4 }
  0xcd   : > { %808 = vst [vmem:[#allocation2 + $0x14] sm:$0x1] %v807_v49  ;;  %v840_v63 = vor.u32 %v838_v51, %v837_v57  ;;  %v841_v0 = vrot.slane %v837_v57, 4  ;;  %v845_v2 = vrot.slane %v843_v59, 7 }
  0xce   : > { %860 = vst [vmem:[#allocation2 + $0x78] sm:$0xf] %v859_v53  ;;  %v832_v3 = vsel %vm5824_vm11, %v824_v55, %v831_v61  ;;  %v863_v4 = vsel %vm5830_vm12, %v833_v62, %v862_v50 }
  0xcf   : > { %v866_v5 = vsel %vm5818_vm10, %v840_v63, %v865_v58  ;;  %861 = vst [vmem:[#allocation2 + $0x7c] sm:$0xf] %v832_v3  ;;  %v848_v7 = vor.u32 %v846_v60, %v845_v2  ;;  %v850_v8 = vrot.slane %v845_v2, 4  ;;  %874 = sbr.rel (%p4280_p8) target bundleno = 219 (0xdb), region = 68 }
  0xd0   : > { %864 = vst [vmem:[#allocation2 + $0x80] sm:$0x1] %v863_v4 }
  0xd1   : > { %867 = vst [vmem:[#allocation2 + $0x84] sm:$0xf] %v866_v5  ;;  %v849_v9 = vsel %vm5824_vm11, %v841_v0, %v848_v7  ;;  %v870_v10 = vsel %vm5830_vm12, %v850_v8, %v869_v6 }
  0xd2   : > { %868 = vst [vmem:[#allocation2 + $0x88] sm:$0xf] %v849_v9 }
  0xd3   : > { %871 = vst [vmem:[#allocation2 + $0x8c] sm:$0x1] %v870_v10 }
  0xd4   : > { %v5509_v11 = vmov 0  }
  0xd5   : > { %875 = vst [vmem:[#allocation2] sm:$0xf] %v5509_v11 }
  0xd6   : > { %876 = vst [vmem:[#allocation2 + $0x4] sm:$0xf] %v5509_v11 }
  0xd7   : > { %877 = vst [vmem:[#allocation2 + $0x8] sm:$0x1] %v5509_v11 }
  0xd8   : > { %878 = vst [vmem:[#allocation2 + $0xc] sm:$0xf] %v5509_v11 }
  0xd9   : > { %879 = vst [vmem:[#allocation2 + $0x10] sm:$0xf] %v5509_v11 }
  0xda   : > { %880 = vst [vmem:[#allocation2 + $0x14] sm:$0x1] %v5509_v11 }
  0xdb PF: > { %p4282_p4 = scmp.ne.s32.totalorder %s5483_s24, 1 }
  0xdd   : > { %884 = sbr.rel (%p4282_p4) target bundleno = 233 (0xe9), region = 72 }
  0xe2   : > { %v5510_v12 = vmov 0  }
  0xe3   : > { %885 = vst [vmem:[#allocation2 + $0x78] sm:$0xf] %v5510_v12 }
  0xe4   : > { %886 = vst [vmem:[#allocation2 + $0x7c] sm:$0xf] %v5510_v12 }
  0xe5   : > { %887 = vst [vmem:[#allocation2 + $0x80] sm:$0x1] %v5510_v12 }
  0xe6   : > { %888 = vst [vmem:[#allocation2 + $0x84] sm:$0xf] %v5510_v12 }
  0xe7   : > { %889 = vst [vmem:[#allocation2 + $0x88] sm:$0xf] %v5510_v12 }
  0xe8   : > { %890 = vst [vmem:[#allocation2 + $0x8c] sm:$0x1] %v5510_v12 }
  0xe9 PF: > { %v5002_v13 = vld [vmem:[#allocation9 + $0xf8] sm:$0xff]  ;;  %v5001_v14 = vld [vmem:[#allocation9 + $0xf0] sm:$0xff]  ;;  %v5000_v16 = vld [vmem:[#allocation9 + $0xe8] sm:$0xff]  ;;  %vm1035_vm13 = vsmask.f32 7424  ;;  %vm1192_vm14 = vcmask 1046528  }
  0xea   : > { %v5010_v1 = vld [vmem:[#allocation9 + $0x138] sm:$0xff]  ;;  %1482 = vmatpush.bf16.msra.mxu0 %v5002_v13  ;;  %v5009_v15 = vld [vmem:[#allocation9 + $0x130] sm:$0xff]  ;;  %v5008_v17 = vld [vmem:[#allocation9 + $0x128] sm:$0xff]  ;;  %s6939_s16 = sld [smem:[#allocation48_spill]] }
  0xeb   : > { %1541 = vmatpush.bf16.msra.mxu1 %v5010_v1  ;;  %5126 = vmatpush.bf16.msra.mxu3 %v5010_v1  ;;  %v5921_v18 = vld [vmem:[#allocation9 + $0x178] sm:$0xff]  ;;  %v4999_v19 = vld [vmem:[#allocation9 + $0xe0] sm:$0xff]  ;;  %v896_v21 = vld [vmem:[#allocation2 + $0x14] sm:$0x1] }
  0xec   : > { %5134 = vmatpush.bf16.msra.mxu2 %v5921_v18  ;;  %v5007_v20 = vld [vmem:[#allocation9 + $0x120] sm:$0xff]  ;;  %v4998_v24 = vld [vmem:[#allocation9 + $0xd8] sm:$0xff]  ;;  %v1012_v27 = vunpack.c.l.b16 %v896_v21  ;;  %v5017_v30 = vld [vmem:[#allocation9 + $0x170] sm:$0xff] }
  0xed   : > { %v917_v23 = vld [vmem:[#allocation2 + $0x68] sm:$0x1]  ;;  %v5006_v25 = vld [vmem:[#allocation9 + $0x118] sm:$0xff]  ;;  %v5924_v26 = vld [vmem:[#allocation2 + $0xc] sm:$0xff] }
  0xee   : > { %1483 = vmatpush.bf16.msra.mxu0 %v5001_v14  ;;  %v5926_v28 = vld [vmem:[#allocation2 + $0x60] sm:$0xff]  ;;  %v1019_v29 = vunpack.c.l.b16 %v917_v23  ;;  %v4997_v31 = vld [vmem:[#allocation9 + $0xd0] sm:$0xff]  ;;  %v5928_v32 = vpack.c.b16 %v1012_v27, %v1012_v27  ;;  %v1051_v33 = vshll.u32 %v5924_v26, 16  ;;  %v5934_v36 = vld [vmem:[#allocation9 + $0x168] sm:$0xff]  ;;  %v1049_v39 = vshrl.u32 %v5924_v26, 16 }
  0xef   : > { %1542 = vmatpush.bf16.msra.mxu1 %v5009_v15  ;;  %5127 = vmatpush.bf16.msra.mxu3 %v5009_v15  ;;  %6908 = vst [vmem:[#allocation31_spill] sm:$0xff] %v5926_v28  ;;  %v5005_v22 = vld [vmem:[#allocation9 + $0x110] sm:$0xff]  ;;  %v1135_v35 = vshll.u32 %v5926_v28, 16  ;;  %v4996_v37 = vld [vmem:[#allocation9 + $0xc8] sm:$0xff]  ;;  %v1133_v43 = vshrl.u32 %v5926_v28, 16  ;;  %v5941_v47 = vld [vmem:[#allocation9 + $0x160] sm:$0xff] }
  0xf0   : > { %v5931_v34 = vpack.c.b16 %v1019_v29, %v1019_v29  ;;  %5135 = vmatpush.bf16.msra.mxu2 %v5017_v30  ;;  %v5004_v38 = vld [vmem:[#allocation9 + $0x108] sm:$0xff]  ;;  %v1053_v40 = vrot.slane %v1051_v33, 1  ;;  %v1056_v42 = vshll.u32 %v5928_v32, 16  ;;  %v4995_v48 = vld [vmem:[#allocation9 + $0xc0] sm:$0xff]  ;;  %v899_v55 = vld [vmem:[#allocation2 + $0x20] sm:$0x1] }
  0xf1   : > { %v1137_v44 = vrot.slane %v1135_v35, 1  ;;  %v5003_v49 = vld [vmem:[#allocation9 + $0x100] sm:$0xff]  ;;  %v920_v56 = vld [vmem:[#allocation2 + $0x74] sm:$0x1]  ;;  %v4978_v57 = vld [vmem:[#allocation9 + $0x38] sm:$0xff]  ;;  %v1013_v61 = vunpack.c.l.b16 %v899_v55 }
  0xf2   : > { %1484 = vmatpush.bf16.msra.mxu0 %v5000_v16  ;;  %v1140_v45 = vshll.u32 %v5931_v34, 16  ;;  %v1054_v50 = vor.u32 %v1053_v40, %v1049_v39  ;;  %v1058_v51 = vrot.slane %v1056_v42, 1  ;;  %v5014_v58 = vld [vmem:[#allocation9 + $0x158] sm:$0xff]  ;;  %v5947_v60 = vld [vmem:[#allocation2 + $0x18] sm:$0xff]  ;;  %v5953_v63 = vld [vmem:[#allocation2 + $0x6c] sm:$0xff]  ;;  %v1020_v0 = vunpack.c.l.b16 %v920_v56 }
  0xf3   : > { %1543 = vmatpush.bf16.msra.mxu1 %v5008_v17  ;;  %5128 = vmatpush.bf16.msra.mxu3 %v5008_v17  ;;  %v1138_v52 = vor.u32 %v1137_v44, %v1133_v43  ;;  %6909 = vst [vmem:[#allocation32_spill] sm:$0xff] %v5953_v63  ;;  %v4977_v2 = vld [vmem:[#allocation9 + $0x30] sm:$0xff]  ;;  %v5958_v4 = vpack.c.b16 %v1013_v61, %v1013_v61  ;;  %v1063_v5 = vshll.u32 %v5947_v60, 16  ;;  %v1147_v7 = vshll.u32 %v5953_v63, 16  ;;  %v4976_v9 = vld [vmem:[#allocation9 + $0x28] sm:$0xff] }
  0xf4   : > { %5136 = vmatpush.bf16.msra.mxu2 %v5934_v36  ;;  %v1142_v53 = vrot.slane %v1140_v45, 1  ;;  %v5945_v59 = vsel %vm1035_vm13, %v1054_v50, %v1058_v51  ;;  %v5013_v3 = vld [vmem:[#allocation9 + $0x150] sm:$0xff]  ;;  %v5961_v6 = vpack.c.b16 %v1020_v0, %v1020_v0  ;;  %v5012_v10 = vld [vmem:[#allocation9 + $0x148] sm:$0xff]  ;;  %v1061_v13 = vshrl.u32 %v5947_v60, 16  ;;  %v908_v45 = vld [vmem:[#allocation2 + $0x44] sm:$0x1] }
  0xf5   : > { %v905_v8 = vld [vmem:[#allocation2 + $0x38] sm:$0x1]  ;;  %v5964_v11 = vld [vmem:[#allocation2 + $0x30] sm:$0xff]  ;;  %v1065_v1 = vrot.slane %v1063_v5, 1  ;;  %v1068_v14 = vshll.u32 %v5958_v4, 16  ;;  %v1145_v16 = vshrl.u32 %v5953_v63, 16 }
  0xf6   : > { %1485 = vmatpush.bf16.msra.mxu0 %v4999_v19  ;;  %v5950_v62 = vsel %vm1035_vm13, %v1138_v52, %v1142_v53  ;;  %v1015_v12 = vunpack.c.l.b16 %v905_v8  ;;  %v1149_v17 = vrot.slane %v1147_v7, 1  ;;  %v4975_v19 = vld [vmem:[#allocation9 + $0x20] sm:$0xff]  ;;  %v1205_v21 = vrot.slane %v5964_v11, 1  ;;  %v5987_v39 = vld [vmem:[#allocation2 + $0x78] sm:$0xff]  ;;  %v4972_v50 = vld [vmem:[#allocation9 + $0x8] sm:$0xff] }
  0xf7   : > { %1544 = vmatpush.bf16.msra.mxu1 %v5007_v20  ;;  %5129 = vmatpush.bf16.msra.mxu3 %v5007_v20  ;;  %v5011_v20 = vld [vmem:[#allocation9 + $0x140] sm:$0xff]  ;;  %6910 = vst [vmem:[#allocation33_spill] sm:$0xff] %v5987_v39  ;;  %v4973_v42 = vld [vmem:[#allocation9 + $0x10] sm:$0xff] }
  0xf8   : > { %5137 = vmatpush.bf16.msra.mxu2 %v5941_v47  ;;  %v5968_v15 = vpack.c.b16 %v1015_v12, %v1015_v12  ;;  %v1150_v27 = vor.u32 %v1149_v17, %v1145_v16  ;;  %v5999_v51 = vld [vmem:[#allocation2 + $0x3c] sm:$0xff]  ;;  %v4971_v0 = vld [vmem:[#allocation9] sm:$0xff] }
  0xf9   : > { %v6020_v17 = vld [vmem:[#allocation2 + $0x48] sm:$0xff] }
  0xfa   : > { %1486 = vmatpush.bf16.msra.mxu0 %v4998_v24  ;;  %v1206_v23 = vrot.slane %v5968_v15, 1  ;;  %v1066_v24 = vor.u32 %v1065_v1, %v1061_v13 }
  0xfb   : > { %1545 = vmatpush.bf16.msra.mxu1 %v5006_v25  ;;  %5130 = vmatpush.bf16.msra.mxu3 %v5006_v25  ;;  %v1070_v25 = vrot.slane %v1068_v14, 1  ;;  %v911_v14 = vld [vmem:[#allocation2 + $0x50] sm:$0x1] }
  0xfc   : > { %5138 = vmatpush.bf16.msra.mxu2 %v5014_v58  ;;  %v5977_v33 = vsel %vm1192_vm14, %v1205_v21, %v1206_v23  ;;  %v1017_v16 = vunpack.c.l.b16 %v911_v14  ;;  %v1092_v21 = vshll.u32 %v5968_v15, 16  ;;  %v1211_v23 = vrot.slane %v6020_v17, 1 }
  0xfd   : > { %v5980_v35 = vsel %vm1035_vm13, %v1066_v24, %v1070_v25  ;;  %v1099_v15 = vshll.u32 %v5999_v51, 16 }
  0xfe   : > { %1487 = vmatpush.bf16.msra.mxu0 %v4997_v31  ;;  %v923_v31 = vld [vmem:[#allocation2 + $0x80] sm:$0x1] }
  0xff   : > { %1546 = vmatpush.bf16.msra.mxu1 %v5005_v22  ;;  %5131 = vmatpush.bf16.msra.mxu3 %v5005_v22  ;;  %v4974_v22 = vld [vmem:[#allocation9 + $0x18] sm:$0xff]  ;;  %v1021_v40 = vunpack.c.l.b16 %v923_v31 }
 0x100   : > { %5139 = vmatpush.bf16.msra.mxu2 %v5013_v3  ;;  %v6031_v31 = vld [vmem:[#allocation2] sm:$0xff] }
 0x102   : > { %1488 = vmatpush.bf16.msra.mxu0 %v4996_v37 }
 0x103   : > { %1547 = vmatpush.bf16.msra.mxu1 %v5004_v38  ;;  %5132 = vmatpush.bf16.msra.mxu3 %v5004_v38 }
 0x104   : > { %5140 = vmatpush.bf16.msra.mxu2 %v5012_v10 }
 0x106   : > { %1489 = vmatpush.bf16.msra.mxu0 %v4995_v48  ;;  %v1159_v48 = vshll.u32 %v5987_v39, 16 }
 0x107   : > { %1548 = vmatpush.bf16.msra.mxu1 %v5003_v49  ;;  %5133 = vmatpush.bf16.msra.mxu3 %v5003_v49  ;;  %v1016_v49 = vunpack.c.l.b16 %v908_v45  ;;  %v1101_v45 = vrot.slane %v1099_v15, 1 }
 0x108   : > { %5141 = vmatpush.bf16.msra.mxu2 %v5011_v20 }
 0x109   : > { %1490 = vmatmul.bf16.vlgmr.msra.gmra.mxu0 %v5924_v26  ;;  %v1028_v52 = vpack.c.b16 %v1016_v49, %v1016_v49 }
 0x10a   : > { %1600 = vmatpush.bf16.msrb.mxu0 %v5921_v18  ;;  %1549 = vmatmul.bf16.vlgmr.msra.gmra.mxu1 %v5945_v59  ;;  %v1152_v18 = vshll.u32 %v5961_v6, 16 }
 0x10b   : > { %1803 = vmatpush.bf16.msrb.mxu3 %v4978_v57  ;;  %1623 = vmatmul.bf16.vlgmr.msra.gmra.mxu2 %v5977_v33  ;;  %v1157_v57 = vshrl.u32 %v5987_v39, 16 }
 0x10c   : > { %1584 = vmatmul.bf16.vlgmr.msra.gmra.mxu3 %v5950_v62  ;;  %v1154_v29 = vrot.slane %v1152_v18, 1  ;;  %v1029_v18 = vpack.c.b16 %v1017_v16, %v1017_v16 }
 0x10e   : > { %1601 = vmatpush.bf16.msrb.mxu0 %v5017_v30  ;;  %v902_v30 = vld [vmem:[#allocation2 + $0x2c] sm:$0x1]  ;;  %v5985_v38 = vsel %vm1035_vm13, %v1150_v27, %v1154_v29  ;;  %v1212_v24 = vrot.slane %v1029_v18, 1  ;;  %v1094_v27 = vrot.slane %v1092_v21, 1 }
 0x10f   : > { %1804 = vmatpush.bf16.msrb.mxu3 %v4977_v2  ;;  %v1014_v37 = vunpack.c.l.b16 %v902_v30  ;;  %v1208_v2 = vrot.slane %v5999_v51, 1 }
 0x110   : > { %v6026_v29 = vsel %vm1192_vm14, %v1211_v23, %v1212_v24 }
 0x111   : > { %v5993_v43 = vpack.c.b16 %v1014_v37, %v1014_v37 }
 0x112   : > { %1602 = vmatpush.bf16.msrb.mxu0 %v5934_v36  ;;  %v5982_v36 = vld [vmem:[#allocation2 + $0x24] sm:$0xff] }
 0x113   : > { %1805 = vmatpush.bf16.msrb.mxu3 %v4976_v9  ;;  %v1075_v44 = vshll.u32 %v5982_v36, 16  ;;  %v1073_v53 = vshrl.u32 %v5982_v36, 16  ;;  %v1080_v56 = vshll.u32 %v5993_v43, 16 }
 0x115   : > { %v1077_v55 = vrot.slane %v1075_v44, 1  ;;  %v1082_v7 = vrot.slane %v1080_v56, 1  ;;  %v1097_v44 = vshrl.u32 %v5999_v51, 16 }
 0x116   : > { %1603 = vmatpush.bf16.msrb.mxu0 %v5941_v47  ;;  %v5996_v47 = vpack.c.b16 %v1021_v40, %v1021_v40  ;;  %v6038_v40 = vld [vmem:[#allocation2 + $0x54] sm:$0xff] }
 0x117   : > { %1806 = vmatpush.bf16.msrb.mxu3 %v4975_v19  ;;  %v1078_v5 = vor.u32 %v1077_v55, %v1073_v53  ;;  %v1085_v19 = vshrl.u32 %v5964_v11, 16  ;;  %v1214_v49 = vrot.slane %v6038_v40, 1  ;;  %v1102_v53 = vor.u32 %v1101_v45, %v1097_v44 }
 0x118   : > { %v1164_v61 = vshll.u32 %v5996_v47, 16 }
 0x119   : > { %1495 = vmatmul.bf16.gmra.mxu0 %v5947_v60  ;;  %v6010_v13 = vsel %vm1035_vm13, %v1078_v5, %v1082_v7 }
 0x11a   : > { %1604 = vmatpush.bf16.msrb.mxu0 %v5014_v58  ;;  %1554 = vmatmul.bf16.gmra.mxu1 %v5980_v35  ;;  %v1161_v58 = vrot.slane %v1159_v48, 1  ;;  %v1166_v9 = vrot.slane %v1164_v61, 1  ;;  %v1104_v48 = vshll.u32 %v1028_v52, 16 }
 0x11b   : > { %1807 = vmatpush.bf16.msrb.mxu3 %v4974_v22  ;;  %v914_v22 = vld [vmem:[#allocation2 + $0x5c] sm:$0x1] }
 0x11c   : > { %1589 = vmatmul.bf16.gmra.mxu3 %v5985_v38  ;;  %v1162_v8 = vor.u32 %v1161_v58, %v1157_v57  ;;  %v1018_v37 = vunpack.c.l.b16 %v914_v22  ;;  %v1106_v55 = vrot.slane %v1104_v48, 1  ;;  %v1109_v58 = vshrl.u32 %v6020_v17, 16  ;;  %v4985_v48 = vld [vmem:[#allocation9 + $0x70] sm:$0xff] }
 0x11e   : > { %1605 = vmatpush.bf16.msrb.mxu0 %v5013_v3  ;;  %v1209_v3 = vrot.slane %v1028_v52, 1  ;;  %v6013_v1 = vsel %vm1035_vm13, %v1162_v8, %v1166_v9  ;;  %v6046_v57 = vsel %vm1035_vm13, %v1102_v53, %v1106_v55  ;;  %v1111_v52 = vshll.u32 %v6020_v17, 16 }
 0x11f   : > { %1808 = vmatpush.bf16.msrb.mxu3 %v4973_v42  ;;  %6911 = vst [vmem:[#allocation34_spill] sm:$0xff] %v6013_v1  ;;  %v1030_v42 = vpack.c.b16 %v1018_v37, %v1018_v37 }
 0x120   : > { %v6007_v12 = vsel %vm1192_vm14, %v1208_v2, %v1209_v3  ;;  %v1113_v61 = vrot.slane %v1111_v52, 1  ;;  %v1217_v2 = vrot.slane %v5926_v28, 1  ;;  %v1218_v3 = vrot.slane %v5931_v34, 1 }
 0x121   : > { %1628 = vmatmul.bf16.gmra.mxu2 %v6007_v12  ;;  %v1121_v34 = vshrl.u32 %v6038_v40, 16  ;;  %v1128_v16 = vshll.u32 %v1030_v42, 16 }
 0x122   : > { %1606 = vmatpush.bf16.msrb.mxu0 %v5012_v10  ;;  %v1087_v10 = vshll.u32 %v5964_v11, 16  ;;  %v1114_v5 = vor.u32 %v1113_v61, %v1109_v58  ;;  %v6057_v8 = vsel %vm1192_vm14, %v1217_v2, %v1218_v3  ;;  %v4983_v58 = vld [vmem:[#allocation9 + $0x60] sm:$0xff]  ;;  %v4994_v61 = vld [vmem:[#allocation9 + $0xb8] sm:$0xff] }
 0x123   : > { %1809 = vmatpush.bf16.msrb.mxu3 %v4972_v50  ;;  %v1215_v50 = vrot.slane %v1030_v42, 1  ;;  %v1130_v21 = vrot.slane %v1128_v16, 1  ;;  %v4986_v42 = vld [vmem:[#allocation9 + $0x78] sm:$0xff]  ;;  %1921 = vmatpush.bf16.msrb.mxu1 %v4994_v61  ;;  %v4992_v16 = vld [vmem:[#allocation9 + $0xa8] sm:$0xff] }
 0x124   : > { %v5034_v61 = vld [vmem:[#allocation9 + $0x1f8] sm:$0xff] }
 0x125   : > { %v6043_v56 = vsel %vm1192_vm14, %v1214_v49, %v1215_v50  ;;  %v4984_v50 = vld [vmem:[#allocation9 + $0x68] sm:$0xff] }
 0x126   : > { %1607 = vmatpush.bf16.msrb.mxu0 %v5011_v20  ;;  %v1089_v20 = vrot.slane %v1087_v10, 1  ;;  %v1123_v10 = vshll.u32 %v6038_v40, 16 }
 0x127   : > { %1810 = vmatpush.bf16.msrb.mxu3 %v4971_v0  ;;  %v1116_v0 = vshll.u32 %v1029_v18, 16  ;;  %v1220_v18 = vrot.slane %v5953_v63, 1 }
 0x128   : > { %v1090_v25 = vor.u32 %v1089_v20, %v1085_v19  ;;  %v1125_v14 = vrot.slane %v1123_v10, 1  ;;  %v1221_v19 = vrot.slane %v5961_v6, 1  ;;  %v1224_v6 = vrot.slane %v5996_v47, 1  ;;  %v4982_v10 = vld [vmem:[#allocation9 + $0x58] sm:$0xff] }
 0x129   : > { %1500 = vmatmul.bf16.gmra.mxu0 %v5982_v36  ;;  %v1118_v7 = vrot.slane %v1116_v0, 1 }
 0x12a   : > { %1559 = vmatmul.bf16.gmra.mxu1 %v6010_v13  ;;  %v6029_v30 = vsel %vm1035_vm13, %v1090_v25, %v1094_v27  ;;  %v1126_v20 = vor.u32 %v1125_v14, %v1121_v34  ;;  %v6071_v23 = vsel %vm1192_vm14, %v1220_v18, %v1221_v19  ;;  %v1223_v25 = vrot.slane %v5987_v39, 1  ;;  %1862 = vmatpush.bf16.msra.mxu0 %v4986_v42  ;;  %v4980_v42 = vld [vmem:[#allocation9 + $0x48] sm:$0xff] }
 0x12b   : > { %v6060_v9 = vsel %vm1035_vm13, %v1114_v5, %v1118_v7  ;;  %v4993_v7 = vld [vmem:[#allocation9 + $0xb0] sm:$0xff]  ;;  %v1196_v34 = vrot.slane %v5924_v26, 1  ;;  %v1197_v14 = vrot.slane %v5928_v32, 1  ;;  %2232 = vmatpush.bf16.msra.mxu3 %v5034_v61  ;;  %v1193_v61 = vrot.slane %v6031_v31, 1 }
 0x12c   : > { %1594 = vmatmul.bf16.gmra.mxu3 %v6013_v1  ;;  %v6074_v24 = vsel %vm1035_vm13, %v1126_v20, %v1130_v21  ;;  %v6083_v27 = vsel %vm1192_vm14, %v1223_v25, %v1224_v6  ;;  %1922 = vmatpush.bf16.msrb.mxu1 %v4993_v7  ;;  %v4979_v7 = vld [vmem:[#allocation9 + $0x40] sm:$0xff] }
 0x12d   : > { %6912 = vst [vmem:[#allocation35_spill] sm:$0xff] %v6083_v27  ;;  %v6115_v21 = vsel %vm1192_vm14, %v1196_v34, %v1197_v14  ;;  %v1200_v34 = vrot.slane %v5958_v4, 1  ;;  %v4988_v14 = vld [vmem:[#allocation9 + $0x88] sm:$0xff]  ;;  %v5042_v4 = vld [vmem:[#allocation9 + $0x238] sm:$0xff] }
 0x12e   : > { %1863 = vmatpush.bf16.msra.mxu0 %v4985_v48 }
 0x130   : > { %1923 = vmatpush.bf16.msrb.mxu1 %v4992_v16 }
 0x131   : > { %1633 = vmatmul.bf16.gmra.mxu2 %v6026_v29 }
 0x132   : > { %1864 = vmatpush.bf16.msra.mxu0 %v4984_v50 }
 0x136   : > { %1865 = vmatpush.bf16.msra.mxu0 %v4983_v58 }
 0x139   : > { %1505 = vmatmul.bf16.gmra.mxu0 %v5964_v11 }
 0x13a   : > { %1564 = vmatmul.bf16.gmra.mxu1 %v6029_v30  ;;  %1866 = vmatpush.bf16.msra.mxu0 %v4982_v10  ;;  %v1199_v10 = vrot.slane %v5947_v60, 1 }
 0x13c   : > { %1811 = vmatmul.bf16.vlgmr.msrb.gmra.mxu3 %v6031_v31 }
 0x141   : > { %1638 = vmatmul.bf16.gmra.mxu2 %v6043_v56 }
 0x149   : > { %1510 = vmatmul.bf16.gmra.mxu0 %v5999_v51 }
 0x14a   : > { %1569 = vmatmul.bf16.gmra.mxu1 %v6046_v57 }
 0x14c   : > { %1816 = vmatmul.bf16.gmra.mxu3 %v5924_v26  ;;  %v4990_v26 = vld [vmem:[#allocation9 + $0x98] sm:$0xff] }
 0x151   : > { %1643 = vmatmul.bf16.gmra.mxu2 %v6057_v8 }
 0x159   : > { %1515 = vmatmul.bf16.gmra.mxu0 %v6020_v17 }
 0x15a   : > { %1574 = vmatmul.bf16.gmra.mxu1 %v6060_v9 }
 0x15c   : > { %1821 = vmatmul.bf16.gmra.mxu3 %v5947_v60 }
 0x161   : > { %1648 = vmatmul.bf16.gmra.mxu2 %v6071_v23 }
 0x169   : > { %1520 = vmatmul.bf16.gmra.mxu0 %v6038_v40 }
 0x16a   : > { %1579 = vmatmul.bf16.gmra.mxu1 %v6074_v24 }
 0x16c   : > { %1826 = vmatmul.bf16.gmra.mxu3 %v5982_v36 }
 0x171   : > { %1653 = vmatmul.bf16.gmra.mxu2 %v6083_v27 }
 0x179   : > { %1525 = vmatmul.bf16.gmra.mxu0 %v5926_v28 }
 0x17c   : > { %1831 = vmatmul.bf16.gmra.mxu3 %v5964_v11 }
 0x186   : > { %v1491_v15 = vpop.f32.mrf.mxu0 }
 0x187   : > { %v1550_v22 = vpop.f32.mrf.mxu1 }
 0x188   : > { %v6088_v37 = vadd.f32 %v1550_v22, %v1491_v15  ;;  %v4981_v15 = vld [vmem:[#allocation9 + $0x50] sm:$0xff]  ;;  %v4991_v22 = vld [vmem:[#allocation9 + $0xa0] sm:$0xff] }
 0x189   : > { %1530 = vmatmul.bf16.gmra.mxu0 %v5953_v63  ;;  %1924 = vmatpush.bf16.msrb.mxu1 %v4991_v22  ;;  %v6134_v22 = vsel %vm1192_vm14, %v1199_v10, %v1200_v34 }
 0x18a   : > { %1867 = vmatpush.bf16.msra.mxu0 %v4981_v15 }
 0x18c   : > { %1836 = vmatmul.bf16.gmra.mxu3 %v5999_v51 }
 0x18d   : > { %1925 = vmatpush.bf16.msrb.mxu1 %v4990_v26 }
 0x18e   : > { %v6094_v44 = vpop.f32.mrf.mxu0  ;;  %v1624_v2 = vpop.f32.mrf.mxu2  ;;  %1868 = vmatpush.bf16.msra.mxu0 %v4980_v42  ;;  %v4987_v42 = vld [vmem:[#allocation9 + $0x80] sm:$0xff] }
 0x18f   : > { %v6092_v47 = vpop.f32.mrf.mxu3  ;;  %v6096_v45 = vpop.f32.mrf.mxu1 }
 0x192   : > { %1869 = vmatpush.bf16.msra.mxu0 %v4979_v7 }
 0x196   : > { %v1496_v53 = vpop.f32.mrf.mxu0  ;;  %v6119_v6 = vpop.f32.mrf.mxu2 }
 0x197   : > { %v6098_v49 = vpop.f32.mrf.mxu3  ;;  %v1555_v55 = vpop.f32.mrf.mxu1 }
 0x198   : > { %6913 = vst [vmem:[#allocation36_spill] sm:$0xff] %v6098_v49  ;;  %v6100_v52 = vadd.f32 %v1555_v55, %v1496_v53  ;;  %v4989_v53 = vld [vmem:[#allocation9 + $0x90] sm:$0xff]  ;;  %v893_v55 = vld [vmem:[#allocation2 + $0x8] sm:$0x1] }
 0x199   : > { %1535 = vmatmul.bf16.gmra.mxu0 %v5987_v39  ;;  %1926 = vmatpush.bf16.msrb.mxu1 %v4989_v53  ;;  %v1011_v16 = vunpack.c.l.b16 %v893_v55 }
 0x19b   : > { %v1023_v53 = vpack.c.b16 %v1011_v16, %v1011_v16  ;;  %v1202_v16 = vrot.slane %v5982_v36, 1 }
 0x19c   : > { %1841 = vmatmul.bf16.gmra.mxu3 %v6020_v17 }
 0x19d   : > { %1927 = vmatpush.bf16.msrb.mxu1 %v4988_v14  ;;  %v1194_v55 = vrot.slane %v1023_v53, 1 }
 0x19e   : > { %v6106_v3 = vpop.f32.mrf.mxu0 }
 0x19f   : > { %v6104_v0 = vpop.f32.mrf.mxu3  ;;  %v6108_v5 = vpop.f32.mrf.mxu1  ;;  %v1195_v10 = vsel %vm1192_vm14, %v1193_v61, %v1194_v55 }
 0x1a1   : > { %1928 = vmatpush.bf16.msrb.mxu1 %v4987_v42  ;;  %v5033_v42 = vld [vmem:[#allocation9 + $0x1f0] sm:$0xff] }
 0x1a2   : > { %2233 = vmatpush.bf16.msra.mxu3 %v5033_v42 }
 0x1a4   : > { %v1629_v58 = vpop.f32.mrf.mxu2  ;;  %1929 = vmatmul.bf16.vlgmr.msrb.gmra.mxu1 %v1195_v10  ;;  %v1039_v10 = vshll.u32 %v6031_v31, 16 }
 0x1a6   : > { %v1501_v19 = vpop.f32.mrf.mxu0 }
 0x1a7   : > { %v6112_v18 = vpop.f32.mrf.mxu3  ;;  %v1560_v20 = vpop.f32.mrf.mxu1 }
 0x1a8   : > { %v6117_v25 = vadd.f32 %v1560_v20, %v1501_v19 }
 0x1a9   : > { %1608 = vmatmul.bf16.vlgmr.msrb.gmra.mxu0 %v6115_v21 }
 0x1aa   : > { %2291 = vmatpush.bf16.msrb.mxu0 %v5042_v4 }
 0x1ac   : > { %1846 = vmatmul.bf16.gmra.mxu3 %v6038_v40  ;;  %v6141_v7 = vpop.f32.mrf.mxu2 }
 0x1ad   : > { %6915 = vst [vmem:[#allocation38_spill] sm:$0xff] %v6141_v7  ;;  %v5032_v7 = vld [vmem:[#allocation9 + $0x1e8] sm:$0xff] }
 0x1ae   : > { %v6125_v48 = vpop.f32.mrf.mxu0  ;;  %2234 = vmatpush.bf16.msra.mxu3 %v5032_v7 }
 0x1af   : > { %v6123_v32 = vpop.f32.mrf.mxu3  ;;  %v6127_v50 = vpop.f32.mrf.mxu1 }
 0x1b4   : > { %1934 = vmatmul.bf16.gmra.mxu1 %v6115_v21 }
 0x1b6   : > { %v1506_v20 = vpop.f32.mrf.mxu0 }
 0x1b7   : > { %v6131_v19 = vpop.f32.mrf.mxu3  ;;  %v1565_v15 = vpop.f32.mrf.mxu1 }
 0x1b8   : > { %6914 = vst [vmem:[#allocation37_spill] sm:$0xff] %v6131_v19  ;;  %v1566_v26 = vadd.f32 %v1565_v15, %v1506_v20  ;;  %v1203_v20 = vrot.slane %v5993_v43, 1 }
 0x1b9   : > { %1613 = vmatmul.bf16.gmra.mxu0 %v6134_v22 }
 0x1ba   : > { %v6136_v54 = vadd.f32 %v1624_v2, %v1566_v26  ;;  %v1634_v26 = vpop.f32.mrf.mxu2  ;;  %v6155_v4 = vsel %vm1192_vm14, %v1202_v16, %v1203_v20  ;;  %v1037_v16 = vshrl.u32 %v6031_v31, 16  ;;  %v1041_v20 = vrot.slane %v1039_v10, 1 }
 0x1bc   : > { %1851 = vmatmul.bf16.gmra.mxu3 %v5926_v28  ;;  %v1042_v42 = vor.u32 %v1041_v20, %v1037_v16  ;;  %v5026_v20 = vld [vmem:[#allocation9 + $0x1b8] sm:$0xff] }
 0x1bd   : > { %2173 = vmatpush.bf16.msrb.mxu2 %v5026_v20  ;;  %v5025_v20 = vld [vmem:[#allocation9 + $0x1b0] sm:$0xff] }
 0x1be   : > { %v6146_v14 = vpop.f32.mrf.mxu0 }
 0x1bf   : > { %v6144_v34 = vpop.f32.mrf.mxu3  ;;  %v6148_v2 = vpop.f32.mrf.mxu1 }
 0x1c1   : > { %2174 = vmatpush.bf16.msrb.mxu2 %v5025_v20  ;;  %v5030_v20 = vld [vmem:[#allocation9 + $0x1d8] sm:$0xff] }
 0x1c4   : > { %1939 = vmatmul.bf16.gmra.mxu1 %v6134_v22 }
 0x1c6   : > { %v1511_v46 = vpop.f32.mrf.mxu0 }
 0x1c7   : > { %v6152_v15 = vpop.f32.mrf.mxu3  ;;  %v1570_v41 = vpop.f32.mrf.mxu1 }
 0x1c8   : > { %v1571_v61 = vadd.f32 %v1570_v41, %v1511_v46  ;;  %v1044_v41 = vshll.u32 %v1023_v53, 16  ;;  %v5041_v46 = vld [vmem:[#allocation9 + $0x230] sm:$0xff] }
 0x1c9   : > { %1618 = vmatmul.bf16.gmra.mxu0 %v6155_v4 }
 0x1ca   : > { %v1630_v55 = vadd.f32 %v1629_v58, %v1571_v61  ;;  %v6168_v58 = vpop.f32.mrf.mxu2  ;;  %2292 = vmatpush.bf16.msrb.mxu0 %v5041_v46  ;;  %v1046_v61 = vrot.slane %v1044_v41, 1  ;;  %v5040_v41 = vld [vmem:[#allocation9 + $0x228] sm:$0xff] }
 0x1cb   : > { %6917 = vst [vmem:[#allocation40_spill] sm:$0xff] %v6168_v58 }
 0x1cc   : > { %1856 = vmatmul.bf16.gmra.mxu3 %v5953_v63  ;;  %v1047_v1 = vsel %vm1035_vm13, %v1042_v42, %v1046_v61 }
 0x1ce   : > { %v6163_v27 = vpop.f32.mrf.mxu0  ;;  %2293 = vmatpush.bf16.msrb.mxu0 %v5040_v41 }
 0x1cf   : > { %v6161_v43 = vpop.f32.mrf.mxu3  ;;  %v6165_v19 = vpop.f32.mrf.mxu1 }
 0x1d0   : > { %6916 = vst [vmem:[#allocation39_spill] sm:$0xff] %v6165_v19 }
 0x1d2   : > { %v1639_v19 = vpop.f32.mrf.mxu2 }
 0x1d4   : > { %1944 = vmatmul.bf16.gmra.mxu1 %v6155_v4 }
 0x1d6   : > { %v1516_v39 = vpop.f32.mrf.mxu0 }
 0x1d7   : > { %v6170_v49 = vpop.f32.mrf.mxu3  ;;  %v1575_v21 = vpop.f32.mrf.mxu1 }
 0x1d8   : > { %v1576_v63 = vadd.f32 %v1575_v21, %v1516_v39 }
 0x1d9   : > { %1870 = vmatmul.bf16.vlgmr.msra.gmra.mxu0 %v1047_v1 }
 0x1da   : > { %v1635_v28 = vadd.f32 %v1634_v26, %v1576_v63  ;;  %v6178_v46 = vpop.f32.mrf.mxu2 }
 0x1db   : > { %6919 = vst [vmem:[#allocation42_spill] sm:$0xff] %v6178_v46 }
 0x1de   : > { %v1518_v53 = vpop.f32.mrf.mxu0 }
 0x1df   : > { %v6174_v31 = vpop.f32.mrf.mxu3  ;;  %v1577_v10 = vpop.f32.mrf.mxu1 }
 0x1e0   : > { %v6176_v16 = vadd.f32 %v1577_v10, %v1518_v53  ;;  %v5031_v10 = vld [vmem:[#allocation9 + $0x1e0] sm:$0xff] }
 0x1e1   : > { %2235 = vmatpush.bf16.msra.mxu3 %v5031_v10  ;;  %v5024_v10 = vld [vmem:[#allocation9 + $0x1a8] sm:$0xff] }
 0x1e2   : > { %6918 = vst [vmem:[#allocation41_spill] sm:$0xff] %v6176_v16  ;;  %v1644_v53 = vpop.f32.mrf.mxu2  ;;  %2175 = vmatpush.bf16.msrb.mxu2 %v5024_v10 }
 0x1e4   : > { %1949 = vmatmul.bf16.gmra.mxu1 %v5977_v33 }
 0x1e5   : > { %2236 = vmatpush.bf16.msra.mxu3 %v5030_v20 }
 0x1e6   : > { %v1521_v63 = vpop.f32.mrf.mxu0 }
 0x1e7   : > { %v6180_v39 = vpop.f32.mrf.mxu3  ;;  %v1580_v1 = vpop.f32.mrf.mxu1 }
 0x1e8   : > { %v1581_v26 = vadd.f32 %v1580_v1, %v1521_v63  ;;  %v5039_v63 = vld [vmem:[#allocation9 + $0x220] sm:$0xff] }
 0x1e9   : > { %1875 = vmatmul.bf16.gmra.mxu0 %v5945_v59 }
 0x1ea   : > { %v1640_v7 = vadd.f32 %v1639_v19, %v1581_v26  ;;  %v6192_v59 = vpop.f32.mrf.mxu2  ;;  %2294 = vmatpush.bf16.msrb.mxu0 %v5039_v63  ;;  %v5038_v63 = vld [vmem:[#allocation9 + $0x218] sm:$0xff] }
 0x1eb   : > { %6921 = vst [vmem:[#allocation44_spill] sm:$0xff] %v6192_v59 }
 0x1ee   : > { %v6187_v21 = vpop.f32.mrf.mxu0  ;;  %2295 = vmatpush.bf16.msrb.mxu0 %v5038_v63 }
 0x1ef   : > { %v1827_v42 = vpop.f32.mrf.mxu3  ;;  %6920 = vst [vmem:[#allocation43_spill] sm:$0xff] %v6187_v21 }
 0x1f0   : > { %v6185_v61 = vadd.f32 %v1827_v42, %v6136_v54 }
 0x1f2   : > { %v1649_v21 = vpop.f32.mrf.mxu2 }
 0x1f4   : > { %1954 = vmatmul.bf16.gmra.mxu1 %v6007_v12 }
 0x1f6   : > { %v1526_v46 = vpop.f32.mrf.mxu0 }
 0x1f7   : > { %v6189_v41 = vpop.f32.mrf.mxu3  ;;  %v1586_v19 = vadd.f32 %v6092_v47, %v1526_v46 }
 0x1f9   : > { %v1645_v1 = vadd.f32 %v1644_v53, %v1586_v19  ;;  %1880 = vmatmul.bf16.gmra.mxu0 %v5980_v35  ;;  %v5023_v19 = vld [vmem:[#allocation9 + $0x1a0] sm:$0xff] }
 0x1fa   : > { %2176 = vmatpush.bf16.msrb.mxu2 %v5023_v19  ;;  %v5022_v19 = vld [vmem:[#allocation9 + $0x198] sm:$0xff] }
 0x1fe   : > { %v6198_v42 = vpop.f32.mrf.mxu0  ;;  %2177 = vmatpush.bf16.msrb.mxu2 %v5022_v19 }
 0x1ff   : > { %v1832_v54 = vpop.f32.mrf.mxu3  ;;  %6922 = vst [vmem:[#allocation45_spill] sm:$0xff] %v6198_v42 }
 0x200   : > { %v6196_v26 = vadd.f32 %v1832_v54, %v1630_v55  ;;  %v1651_v55 = vpop.f32.mrf.mxu2 }
 0x204   : > { %1959 = vmatmul.bf16.gmra.mxu1 %v6026_v29 }
 0x206   : > { %v1531_v47 = vpop.f32.mrf.mxu0 }
 0x207   : > { %v6200_v58 = vpop.f32.mrf.mxu3  ;;  %v1591_v46 = vadd.f32 %v6104_v0, %v1531_v47  ;;  %v5029_v47 = vld [vmem:[#allocation9 + $0x1d0] sm:$0xff] }
 0x208   : > { %2237 = vmatpush.bf16.msra.mxu3 %v5029_v47 }
 0x209   : > { %v1650_v53 = vadd.f32 %v1649_v21, %v1591_v46  ;;  %1885 = vmatmul.bf16.gmra.mxu0 %v6010_v13  ;;  %v1654_v21 = vpop.f32.mrf.mxu2 }
 0x20e   : > { %v1533_v59 = vpop.f32.mrf.mxu0 }
 0x20f   : > { %v1837_v54 = vpop.f32.mrf.mxu3  ;;  %v1593_v20 = vadd.f32 %v6112_v18, %v1533_v59  ;;  %v5037_v59 = vld [vmem:[#allocation9 + $0x210] sm:$0xff] }
 0x210   : > { %v6205_v10 = vadd.f32 %v1837_v54, %v1635_v28  ;;  %2296 = vmatpush.bf16.msrb.mxu0 %v5037_v59  ;;  %v5036_v59 = vld [vmem:[#allocation9 + $0x208] sm:$0xff] }
 0x211   : > { %v1652_v42 = vadd.f32 %v1651_v55, %v1593_v20 }
 0x214   : > { %1964 = vmatmul.bf16.gmra.mxu1 %v6043_v56  ;;  %2297 = vmatpush.bf16.msrb.mxu0 %v5036_v59  ;;  %v5035_v59 = vld [vmem:[#allocation9 + $0x200] sm:$0xff] }
 0x216   : > { %v1536_v0 = vpop.f32.mrf.mxu0 }
 0x217   : > { %v6208_v16 = vpop.f32.mrf.mxu3  ;;  %v1596_v46 = vadd.f32 %v6123_v32, %v1536_v0  ;;  %v5021_v0 = vld [vmem:[#allocation9 + $0x190] sm:$0xff] }
 0x218   : > { %2178 = vmatpush.bf16.msrb.mxu2 %v5021_v0  ;;  %2298 = vmatpush.bf16.msrb.mxu0 %v5035_v59  ;;  %v6926_v59 = vld [vmem:[#allocation31_spill] sm:$0xff] }
 0x219   : > { %v1655_v63 = vadd.f32 %v1654_v21, %v1596_v46  ;;  %1890 = vmatmul.bf16.gmra.mxu0 %v6029_v30  ;;  %v5028_v21 = vld [vmem:[#allocation9 + $0x1c8] sm:$0xff] }
 0x21a   : > { %2238 = vmatpush.bf16.msra.mxu3 %v5028_v21  ;;  %v5027_v21 = vld [vmem:[#allocation9 + $0x1c0] sm:$0xff] }
 0x21e   : > { %v6215_v18 = vpop.f32.mrf.mxu0  ;;  %2239 = vmatpush.bf16.msra.mxu3 %v5027_v21 }
 0x21f   : > { %v1842_v28 = vpop.f32.mrf.mxu3  ;;  %6923 = vst [vmem:[#allocation46_spill] sm:$0xff] %v6215_v18 }
 0x220   : > { %v6213_v54 = vadd.f32 %v1842_v28, %v1640_v7  ;;  %v1553_v7 = vadd.f32 %v6096_v45, %v6094_v44  ;;  %v1558_v44 = vadd.f32 %v6108_v5, %v6106_v3 }
 0x221   : > { %2240 = vmatmul.bf16.vlgmr.msra.gmra.mxu3 %v5980_v35  ;;  %v1563_v35 = vadd.f32 %v6127_v50, %v6125_v48 }
 0x224   : > { %1969 = vmatmul.bf16.gmra.mxu1 %v6057_v8 }
 0x226   : > { %v1609_v20 = vpop.f32.mrf.mxu0 }
 0x227   : > { %v6217_v55 = vpop.f32.mrf.mxu3  ;;  %v1610_v32 = vadd.f32 %v1609_v20, %v6088_v37  ;;  %v5020_v20 = vld [vmem:[#allocation9 + $0x188] sm:$0xff] }
 0x228   : > { %2179 = vmatpush.bf16.msrb.mxu2 %v5020_v20 }
 0x229   : > { %1895 = vmatmul.bf16.gmra.mxu0 %v6046_v57 }
 0x22e   : > { %v1611_v19 = vpop.f32.mrf.mxu0 }
 0x22f   : > { %v1847_v47 = vpop.f32.mrf.mxu3  ;;  %v1612_v28 = vadd.f32 %v1611_v19, %v1553_v7  ;;  %v5019_v19 = vld [vmem:[#allocation9 + $0x180] sm:$0xff] }
 0x230   : > { %v6224_v46 = vadd.f32 %v1847_v47, %v1645_v1  ;;  %2180 = vmatpush.bf16.msrb.mxu2 %v5019_v19 }
 0x231   : > { %2245 = vmatmul.bf16.gmra.mxu3 %v6010_v13 }
 0x233   : > { %2181 = vmatmul.bf16.vlgmr.msrb.gmra.mxu2 %v5947_v60 }
 0x234   : > { %1974 = vmatmul.bf16.gmra.mxu1 %v6071_v23 }
 0x236   : > { %v1614_v37 = vpop.f32.mrf.mxu0 }
 0x237   : > { %v6226_v18 = vpop.f32.mrf.mxu3  ;;  %v1615_v0 = vadd.f32 %v1614_v37, %v6100_v52 }
 0x239   : > { %1900 = vmatmul.bf16.gmra.mxu0 %v6060_v9  ;;  %v1818_v50 = vadd.f32 %v6161_v43, %v1615_v0 }
 0x23e   : > { %v1616_v7 = vpop.f32.mrf.mxu0 }
 0x23f   : > { %v1852_v45 = vpop.f32.mrf.mxu3  ;;  %v1617_v47 = vadd.f32 %v1616_v7, %v1558_v44  ;;  %v1813_v44 = vadd.f32 %v6144_v34, %v1610_v32 }
 0x240   : > { %v6233_v1 = vadd.f32 %v1852_v45, %v1650_v53 }
 0x241   : > { %2250 = vmatmul.bf16.gmra.mxu3 %v6029_v30 }
 0x243   : > { %2186 = vmatmul.bf16.gmra.mxu2 %v5982_v36  ;;  %v1820_v36 = vadd.f32 %v6170_v49, %v1617_v47 }
 0x246   : > { %v1619_v20 = vpop.f32.mrf.mxu0 }
 0x247   : > { %v1854_v52 = vpop.f32.mrf.mxu3  ;;  %v1620_v21 = vadd.f32 %v1619_v20, %v6117_v25  ;;  %v1815_v25 = vadd.f32 %v6152_v15, %v1612_v28 }
 0x248   : > { %v6236_v37 = vadd.f32 %v1854_v52, %v1652_v42 }
 0x249   : > { %1905 = vmatmul.bf16.gmra.mxu0 %v6074_v24  ;;  %v1823_v30 = vadd.f32 %v6174_v31, %v1620_v21 }
 0x24e   : > { %v1621_v53 = vpop.f32.mrf.mxu0 }
 0x24f   : > { %v1857_v3 = vpop.f32.mrf.mxu3  ;;  %v1622_v42 = vadd.f32 %v1621_v53, %v1563_v35  ;;  %v6929_v35 = vld [vmem:[#allocation32_spill] sm:$0xff] }
 0x250   : > { %v6244_v5 = vadd.f32 %v1857_v3, %v1655_v63  ;;  %v6930_v3 = vld [vmem:[#allocation43_spill] sm:$0xff] }
 0x251   : > { %2255 = vmatmul.bf16.gmra.mxu3 %v6046_v57  ;;  %v1568_v57 = vadd.f32 %v6148_v2, %v6146_v14 }
 0x253   : > { %2191 = vmatmul.bf16.gmra.mxu2 %v5964_v11  ;;  %v1825_v11 = vadd.f32 %v6180_v39, %v1622_v42 }
 0x256   : > { %v1871_v45 = vpop.f32.mrf.mxu0 }
 0x257   : > { %v6249_v60 = vadd.f32 %v1871_v45, %v1813_v44  ;;  %v6932_v45 = vld [vmem:[#allocation34_spill] sm:$0xff] }
 0x259   : > { %1910 = vmatmul.bf16.gmra.mxu0 %v5950_v62 }
 0x25e   : > { %v1873_v7 = vpop.f32.mrf.mxu0 }
 0x25f   : > { %v6254_v48 = vadd.f32 %v1873_v7, %v1815_v25  ;;  %v1656_v25 = vpop.f32.mrf.mxu2  ;;  %v1859_v7 = vpop.f32.mrf.mxu3 }
 0x261   : > { %2260 = vmatmul.bf16.gmra.mxu3 %v6060_v9 }
 0x263   : > { %2196 = vmatmul.bf16.gmra.mxu2 %v5999_v51  ;;  %v1627_v51 = vadd.f32 %v6119_v6, %v1568_v57 }
 0x266   : > { %v1876_v13 = vpop.f32.mrf.mxu0 }
 0x267   : > { %v6258_v34 = vadd.f32 %v1876_v13, %v1818_v50  ;;  %v6933_v13 = vld [vmem:[#allocation33_spill] sm:$0xff] }
 0x269   : > { %1915 = vmatmul.bf16.gmra.mxu0 %v5985_v38 }
 0x26e   : > { %v1878_v63 = vpop.f32.mrf.mxu0 }
 0x26f   : > { %v6263_v15 = vadd.f32 %v1878_v63, %v1820_v36  ;;  %v6934_v36 = vld [vmem:[#allocation45_spill] sm:$0xff]  ;;  %v6935_v63 = vld [vmem:[#allocation36_spill] sm:$0xff] }
 0x271   : > { %2265 = vmatmul.bf16.gmra.mxu3 %v6074_v24 }
 0x273   : > { %2201 = vmatmul.bf16.gmra.mxu2 %v6020_v17  ;;  %v6924_v17 = vld [vmem:[#allocation39_spill] sm:$0xff] }
 0x274   : > { %v1573_v14 = vadd.f32 %v6924_v17, %v6163_v27  ;;  %v6927_v27 = vld [vmem:[#allocation41_spill] sm:$0xff] }
 0x276   : > { %v1881_v32 = vpop.f32.mrf.mxu0 }
 0x277   : > { %v6267_v43 = vadd.f32 %v1881_v32, %v1823_v30 }
 0x279   : > { %2299 = vmatmul.bf16.vlgmr.msrb.gmra.mxu0 %v6134_v22  ;;  %v1830_v22 = vadd.f32 %v6189_v41, %v1627_v51 }
 0x27e   : > { %v1883_v28 = vpop.f32.mrf.mxu0 }
 0x27f   : > { %v6272_v49 = vadd.f32 %v1883_v28, %v1825_v11 }
 0x281   : > { %2270 = vmatmul.bf16.gmra.mxu3 %v5950_v62  ;;  %v1582_v62 = vpop.f32.mrf.mxu1 }
 0x282   : > { %v1583_v53 = vadd.f32 %v1582_v62, %v6930_v3  ;;  %v6937_v3 = vld [vmem:[#allocation46_spill] sm:$0xff] }
 0x283   : > { %2206 = vmatmul.bf16.gmra.mxu2 %v6038_v40 }
 0x286   : > { %v1886_v0 = vpop.f32.mrf.mxu0 }
 0x287   : > { %v6278_v31 = vadd.f32 %v1886_v0, %v6185_v61 }
 0x289   : > { %2304 = vmatmul.bf16.gmra.mxu0 %v6155_v4  ;;  %v6925_v4 = vld [vmem:[#allocation38_spill] sm:$0xff]  ;;  %v1930_v0 = vpop.f32.mrf.mxu1 }
 0x28a   : > { %v1632_v6 = vadd.f32 %v6925_v4, %v1573_v14 }
 0x28c   : > { %v1835_v61 = vadd.f32 %v6200_v58, %v1632_v6 }
 0x28e   : > { %v1888_v39 = vpop.f32.mrf.mxu0 }
 0x28f   : > { %v6284_v9 = vadd.f32 %v1888_v39, %v1830_v22  ;;  %v926_v22 = vld [vmem:[#allocation2 + $0x8c] sm:$0x1]  ;;  %v6331_v39 = vld [vmem:[#allocation2 + $0x84] sm:$0xff] }
 0x290   : > { %v1169_v4 = vshrl.u32 %v6331_v39, 16 }
 0x291   : > { %2275 = vmatmul.bf16.gmra.mxu3 %v5985_v38 }
 0x293   : > { %2211 = vmatmul.bf16.gmra.mxu2 %v6926_v59 }
 0x296   : > { %v1891_v47 = vpop.f32.mrf.mxu0 }
 0x297   : > { %v6290_v2 = vadd.f32 %v1891_v47, %v6196_v26  ;;  %v6928_v26 = vld [vmem:[#allocation40_spill] sm:$0xff]  ;;  %v1022_v47 = vunpack.c.l.b16 %v926_v22 }
 0x299   : > { %2309 = vmatmul.bf16.gmra.mxu0 %v5977_v33  ;;  %v1637_v33 = vadd.f32 %v6928_v26, %v6927_v27  ;;  %v6333_v17 = vpack.c.b16 %v1022_v47, %v1022_v47 }
 0x29b   : > { %v1840_v52 = vadd.f32 %v6208_v16, %v1637_v33 }
 0x29e   : > { %v1893_v41 = vpop.f32.mrf.mxu0 }
 0x29f   : > { %v6296_v24 = vadd.f32 %v1893_v41, %v1835_v61  ;;  %v1176_v61 = vshll.u32 %v6333_v17, 16  ;;  %v1932_v41 = vpop.f32.mrf.mxu1 }
 0x2a1   : > { %2280 = vmatmul.bf16.gmra.mxu3 %v6932_v45  ;;  %v1178_v27 = vrot.slane %v1176_v61, 1 }
 0x2a3   : > { %2216 = vmatmul.bf16.gmra.mxu2 %v6929_v35 }
 0x2a4   : > { %v2241_v11 = vpop.f32.mrf.mxu3 }
 0x2a6   : > { %v1896_v19 = vpop.f32.mrf.mxu0 }
 0x2a7   : > { %v6300_v40 = vadd.f32 %v1896_v19, %v6205_v10 }
 0x2a9   : > { %2314 = vmatmul.bf16.gmra.mxu0 %v6007_v12  ;;  %v6931_v12 = vld [vmem:[#allocation42_spill] sm:$0xff] }
 0x2aa   : > { %v1642_v42 = vadd.f32 %v6931_v12, %v1583_v53  ;;  %v6938_v53 = vld [vmem:[#allocation37_spill] sm:$0xff] }
 0x2ab   : > { %v1598_v12 = vadd.f32 %v6938_v53, %v6937_v3 }
 0x2ac   : > { %v1845_v16 = vadd.f32 %v6217_v55, %v1642_v42 }
 0x2ae   : > { %v1898_v20 = vpop.f32.mrf.mxu0 }
 0x2af   : > { %v6307_v58 = vadd.f32 %v1898_v20, %v1840_v52 }
 0x2b3   : > { %2221 = vmatmul.bf16.gmra.mxu2 %v6933_v13 }
 0x2b6   : > { %v1901_v21 = vpop.f32.mrf.mxu0  ;;  %v2182_v32 = vpop.f32.mrf.mxu2 }
 0x2b7   : > { %v6312_v10 = vadd.f32 %v1901_v21, %v6213_v54  ;;  %v1588_v54 = vadd.f32 %v6935_v63, %v6934_v36  ;;  %v1935_v21 = vpop.f32.mrf.mxu1  ;;  %v2242_v13 = vadd.f32 %v2241_v11, %v2182_v32 }
 0x2b9   : > { %2319 = vmatmul.bf16.gmra.mxu0 %v6026_v29  ;;  %v6936_v29 = vld [vmem:[#allocation44_spill] sm:$0xff] }
 0x2ba   : > { %v1647_v55 = vadd.f32 %v6936_v29, %v1588_v54 }
 0x2bc   : > { %v1850_v28 = vadd.f32 %v6226_v18, %v1647_v55 }
 0x2be   : > { %v1903_v44 = vpop.f32.mrf.mxu0  ;;  %v2184_v14 = vpop.f32.mrf.mxu2 }
 0x2bf   : > { %v6318_v38 = vadd.f32 %v1903_v44, %v1845_v16  ;;  %v1657_v16 = vadd.f32 %v1656_v25, %v1598_v12  ;;  %v1937_v44 = vpop.f32.mrf.mxu1 }
 0x2c1   : > { %v1860_v45 = vadd.f32 %v1859_v7, %v1657_v16  ;;  %v6940_v7 = vld [vmem:[#allocation35_spill] sm:$0xff] }
 0x2c3   : > { %2226 = vmatmul.bf16.gmra.mxu2 %v6331_v39 }
 0x2c6   : > { %v1906_v50 = vpop.f32.mrf.mxu0  ;;  %v2187_v20 = vpop.f32.mrf.mxu2 }
 0x2c7   : > { %v6324_v30 = vadd.f32 %v1906_v50, %v6224_v46  ;;  %v1171_v46 = vshll.u32 %v6331_v39, 16  ;;  %v6359_v54 = vpop.f32.mrf.mxu1 }
 0x2c9   : > { %2324 = vmatmul.bf16.gmra.mxu0 %v6043_v56  ;;  %v2243_v56 = vpop.f32.mrf.mxu3  ;;  %v1173_v6 = vrot.slane %v1171_v46, 1 }
 0x2ca   : > { %v2244_v11 = vadd.f32 %v2243_v56, %v2184_v14 }
 0x2cb   : > { %v1174_v59 = vor.u32 %v1173_v6, %v1169_v4 }
 0x2cd   : > { %v1179_v26 = vsel %vm1035_vm13, %v1174_v59, %v1178_v27  ;;  %v1227_v59 = vrot.slane %v6333_v17, 1 }
 0x2ce   : > { %v1908_v57 = vpop.f32.mrf.mxu0  ;;  %2285 = vmatmul.bf16.gmra.mxu3 %v1179_v26 }
 0x2cf   : > { %v6329_v51 = vadd.f32 %v1908_v57, %v1850_v28 }
 0x2d1   : > { %v2246_v62 = vpop.f32.mrf.mxu3 }
 0x2d2   : > { %v2247_v56 = vadd.f32 %v2246_v62, %v2187_v20 }
 0x2d6   : > { %v1911_v18 = vpop.f32.mrf.mxu0 }
 0x2d7   : > { %v6340_v19 = vadd.f32 %v1911_v18, %v6233_v1  ;;  %v1226_v18 = vrot.slane %v6331_v39, 1 }
 0x2d9   : > { %2329 = vmatmul.bf16.gmra.mxu0 %v6057_v8  ;;  %v2189_v8 = vpop.f32.mrf.mxu2  ;;  %v2248_v42 = vpop.f32.mrf.mxu3 }
 0x2de   : > { %v1913_v33 = vpop.f32.mrf.mxu0 }
 0x2df   : > { %v6345_v52 = vadd.f32 %v1913_v33, %v6236_v37  ;;  %v2634_v33 = vld [vmem:[#allocation3] sm:$0xf] }
 0x2e1   : > { %v6355_v36 = vpop.f32.mrf.mxu2  ;;  %v6357_v63 = vpop.f32.mrf.mxu3 }
 0x2e6   : > { %v1916_v35 = vpop.f32.mrf.mxu0 }
 0x2e7   : > { %v6350_v1 = vadd.f32 %v1916_v35, %v6244_v5  ;;  %v1931_v5 = vadd.f32 %v1930_v0, %v6249_v60  ;;  %v1933_v60 = vadd.f32 %v1932_v41, %v6254_v48  ;;  %v6374_v0 = vpop.f32.mrf.mxu1  ;;  %v1228_v48 = vsel %vm1192_vm14, %v1226_v18, %v1227_v59 }
 0x2e8   : > { %v1936_v41 = vadd.f32 %v1935_v21, %v6258_v34  ;;  %v2638_v34 = vld [vmem:[#allocation3 + $0x8] sm:$0x1]  ;;  %v2249_v21 = vadd.f32 %v2248_v42, %v2189_v8 }
 0x2e9   : > { %2334 = vmatmul.bf16.gmra.mxu0 %v6071_v23  ;;  %v6365_v23 = vld [vmem:[%s6939_s16] ss:$0 sm:$0xff]  ;;  %v6369_v57 = vpop.f32.mrf.mxu2  ;;  %v6371_v22 = vpop.f32.mrf.mxu3 }
 0x2ee   : > { %v1918_v50 = vpop.f32.mrf.mxu0 }
 0x2ef   : > { %v6353_v37 = vadd.f32 %v1918_v50, %v1860_v45  ;;  %v6387_v20 = vpop.f32.mrf.mxu1 }
 0x2f1   : > { %v6383_v50 = vpop.f32.mrf.mxu2  ;;  %v6385_v17 = vpop.f32.mrf.mxu3 }
 0x2f6   : > { %v2300_v29 = vpop.f32.mrf.mxu0 }
 0x2f7   : > { %v2301_v55 = vadd.f32 %v2300_v29, %v2242_v13 }
 0x2f9   : > { %v2350_v25 = vadd.f32 %v2301_v55, %v1931_v5  ;;  %2339 = vmatmul.bf16.gmra.mxu0 %v6940_v7  ;;  %v2199_v8 = vpop.f32.mrf.mxu2  ;;  %v2258_v42 = vpop.f32.mrf.mxu3 }
 0x2fb   : > { %v2374_v32 = vadd.f32 %v6365_v23, %v2350_v25 }
 0x2fd   : > { %v2394_v28 = vmax.f32 %v2374_v32, 0.0 }
 0x2fe   : > { %v2302_v47 = vpop.f32.mrf.mxu0 }
 0x2ff   : > { %v2414_v46 = vpack.c.bf16 %v2394_v28, %v2394_v28  ;;  %v2303_v4 = vadd.f32 %v2302_v47, %v2244_v11  ;;  %v1938_v28 = vadd.f32 %v1937_v44, %v6263_v15  ;;  %v2252_v15 = vadd.f32 %v6357_v63, %v6355_v36 }
 0x301   : > { %v2435_v6 = vshrl.u32 %v2414_v46, 16  ;;  %v2351_v61 = vadd.f32 %v2303_v4, %v1933_v60  ;;  %v2438_v14 = vshll.u32 %v2414_v46, 16  ;;  %v2202_v63 = vpop.f32.mrf.mxu2 }
 0x303   : > { %v2437_v27 = vrot.slane %v2435_v6, 7  ;;  %v2375_v26 = vadd.f32 %v6365_v23, %v2351_v61 }
 0x305   : > { %v2440_v35 = vor.u32 %v2438_v14, %v2437_v27  ;;  %v2395_v3 = vmax.f32 %v2375_v26, 0.0  ;;  %v2441_v25 = vrot.slane %v2437_v27, 4  ;;  %v6395_v27 = vpop.f32.mrf.mxu1 }
 0x306   : > { %v2305_v53 = vpop.f32.mrf.mxu0 }
 0x307   : > { %v2635_v16 = vsel %vm5818_vm10, %v2440_v35, %v2634_v33  ;;  %v2415_v45 = vpack.c.bf16 %v2395_v3, %v2395_v3  ;;  %v2306_v39 = vadd.f32 %v2305_v53, %v2247_v56  ;;  %v2641_v33 = vld [vmem:[#allocation3 + $0xc] sm:$0xf] }
 0x308   : > { %2636 = vst [vmem:[#allocation3] sm:$0xf] %v2635_v16 }
 0x309   : > { %v2443_v62 = vshrl.u32 %v2415_v45, 16  ;;  %v2352_v13 = vadd.f32 %v2306_v39, %v1936_v41  ;;  %2344 = vmatmul.bf16.gmra.mxu0 %v1228_v48  ;;  %v2446_v5 = vshll.u32 %v2415_v45, 16  ;;  %v1941_v48 = vadd.f32 %v6359_v54, %v6267_v43 }
 0x30b   : > { %v2445_v29 = vrot.slane %v2443_v62, 7  ;;  %v2376_v55 = vadd.f32 %v6365_v23, %v2352_v13 }
 0x30d   : > { %v2448_v7 = vor.u32 %v2446_v5, %v2445_v29  ;;  %v2450_v32 = vrot.slane %v2445_v29, 4  ;;  %v2396_v11 = vmax.f32 %v2376_v55, 0.0  ;;  %v2261_v5 = vpop.f32.mrf.mxu3  ;;  %v2645_v55 = vld [vmem:[#allocation3 + $0x14] sm:$0x1] }
 0x30e   : > { %v2307_v47 = vpop.f32.mrf.mxu0 }
 0x30f   : > { %v2449_v46 = vsel %vm5824_vm11, %v2441_v25, %v2448_v7  ;;  %v2639_v6 = vsel %vm5830_vm12, %v2450_v32, %v2638_v34  ;;  %v2416_v61 = vpack.c.bf16 %v2396_v11, %v2396_v11  ;;  %v2308_v18 = vadd.f32 %v2307_v47, %v2249_v21  ;;  %v6407_v21 = vpop.f32.mrf.mxu1 }
 0x310   : > { %2637 = vst [vmem:[#allocation3 + $0x4] sm:$0xf] %v2449_v46  ;;  %v2254_v34 = vadd.f32 %v6371_v22, %v6369_v57  ;;  %v1943_v32 = vadd.f32 %v6374_v0, %v6272_v49  ;;  %v2648_v0 = vld [vmem:[#allocation3 + $0x18] sm:$0xf] }
 0x311   : > { %2640 = vst [vmem:[#allocation3 + $0x8] sm:$0x1] %v2639_v6  ;;  %v2452_v59 = vshrl.u32 %v2416_v61, 16  ;;  %v2353_v14 = vadd.f32 %v2308_v18, %v1938_v28  ;;  %v2455_v26 = vshll.u32 %v2416_v61, 16 }
 0x313   : > { %v2454_v56 = vrot.slane %v2452_v59, 7  ;;  %v2377_v44 = vadd.f32 %v6365_v23, %v2353_v14  ;;  %v2257_v59 = vadd.f32 %v6385_v17, %v6383_v50 }
 0x315   : > { %v2457_v35 = vor.u32 %v2455_v26, %v2454_v56  ;;  %v2397_v3 = vmax.f32 %v2377_v44, 0.0  ;;  %v2458_v43 = vrot.slane %v2454_v56, 4  ;;  %v2204_v26 = vpop.f32.mrf.mxu2 }
 0x316   : > { %v2310_v53 = vpop.f32.mrf.mxu0 }
 0x317   : > { %v2642_v41 = vsel %vm5818_vm10, %v2457_v35, %v2641_v33  ;;  %v2417_v16 = vpack.c.bf16 %v2397_v3, %v2397_v3  ;;  %v2311_v45 = vadd.f32 %v2310_v53, %v2252_v15  ;;  %v2263_v15 = vpop.f32.mrf.mxu3  ;;  %v1946_v33 = vadd.f32 %v6387_v20, %v6278_v31  ;;  %v1952_v35 = vpop.f32.mrf.mxu1 }
 0x318   : > { %2643 = vst [vmem:[#allocation3 + $0xc] sm:$0xf] %v2642_v41  ;;  %v1948_v31 = vadd.f32 %v6395_v27, %v6284_v9  ;;  %v2655_v27 = vld [vmem:[#allocation3 + $0x24] sm:$0xf] }
 0x319   : > { %v2460_v39 = vshrl.u32 %v2417_v16, 16  ;;  %v2354_v62 = vadd.f32 %v2311_v45, %v1941_v48  ;;  %v2463_v29 = vshll.u32 %v2417_v16, 16 }
 0x31b   : > { %v2462_v13 = vrot.slane %v2460_v39, 7  ;;  %v2378_v36 = vadd.f32 %v6365_v23, %v2354_v62  ;;  %v2652_v39 = vld [vmem:[#allocation3 + $0x20] sm:$0x1]  ;;  %v2259_v62 = vadd.f32 %v2258_v42, %v2199_v8 }
 0x31d   : > { %v2465_v54 = vor.u32 %v2463_v29, %v2462_v13  ;;  %v2467_v25 = vrot.slane %v2462_v13, 4  ;;  %v2398_v7 = vmax.f32 %v2378_v36, 0.0 }
 0x31e   : > { %v2312_v11 = vpop.f32.mrf.mxu0 }
 0x31f   : > { %v2466_v28 = vsel %vm5824_vm11, %v2458_v43, %v2465_v54  ;;  %v2646_v47 = vsel %vm5830_vm12, %v2467_v25, %v2645_v55  ;;  %v2418_v46 = vpack.c.bf16 %v2398_v7, %v2398_v7  ;;  %v2313_v6 = vadd.f32 %v2312_v11, %v2254_v34  ;;  %v2207_v7 = vpop.f32.mrf.mxu2  ;;  %v1955_v8 = vpop.f32.mrf.mxu1 }
 0x320   : > { %2644 = vst [vmem:[#allocation3 + $0x10] sm:$0xf] %v2466_v28 }
 0x321   : > { %2647 = vst [vmem:[#allocation3 + $0x14] sm:$0x1] %v2646_v47  ;;  %v2469_v57 = vshrl.u32 %v2418_v46, 16  ;;  %v2355_v22 = vadd.f32 %v2313_v6, %v1943_v32  ;;  %v2472_v18 = vshll.u32 %v2418_v46, 16  ;;  %v2266_v32 = vpop.f32.mrf.mxu3  ;;  %v2262_v46 = vadd.f32 %v2261_v5, %v2202_v63 }
 0x323   : > { %v2471_v61 = vrot.slane %v2469_v57, 7  ;;  %v2379_v49 = vadd.f32 %v6365_v23, %v2355_v22 }
 0x325   : > { %v2474_v14 = vor.u32 %v2472_v18, %v2471_v61  ;;  %v2399_v56 = vmax.f32 %v2379_v49, 0.0  ;;  %v2475_v13 = vrot.slane %v2471_v61, 4  ;;  %v1951_v61 = vadd.f32 %v6407_v21, %v6290_v2 }
 0x326   : > { %v2315_v44 = vpop.f32.mrf.mxu0 }
 0x327   : > { %v2649_v3 = vsel %vm5818_vm10, %v2474_v14, %v2648_v0  ;;  %v2419_v53 = vpack.c.bf16 %v2399_v56, %v2399_v56  ;;  %v2316_v48 = vadd.f32 %v2315_v44, %v2257_v59  ;;  %v2209_v56 = vpop.f32.mrf.mxu2  ;;  %v1957_v63 = vpop.f32.mrf.mxu1 }
 0x328   : > { %2650 = vst [vmem:[#allocation3 + $0x18] sm:$0xf] %v2649_v3 }
 0x329   : > { %v2477_v41 = vshrl.u32 %v2419_v53, 16  ;;  %v2356_v50 = vadd.f32 %v2316_v48, %v1946_v33  ;;  %v2480_v16 = vshll.u32 %v2419_v53, 16  ;;  %v2268_v44 = vpop.f32.mrf.mxu3  ;;  %v2659_v53 = vld [vmem:[#allocation3 + $0x2c] sm:$0x1]  ;;  %v2264_v48 = vadd.f32 %v2263_v15, %v2204_v26 }
 0x32b   : > { %v2479_v17 = vrot.slane %v2477_v41, 7  ;;  %v2380_v45 = vadd.f32 %v6365_v23, %v2356_v50 }
 0x32d   : > { %v2482_v29 = vor.u32 %v2480_v16, %v2479_v17  ;;  %v2484_v36 = vrot.slane %v2479_v17, 4  ;;  %v2400_v55 = vmax.f32 %v2380_v45, 0.0  ;;  %v1953_v17 = vadd.f32 %v1952_v35, %v6296_v24  ;;  %v2662_v35 = vld [vmem:[#allocation3 + $0x30] sm:$0xf] }
 0x32e   : > { %v2317_v20 = vpop.f32.mrf.mxu0 }
 0x32f   : > { %v2483_v34 = vsel %vm5824_vm11, %v2475_v13, %v2482_v29  ;;  %v2653_v43 = vsel %vm5830_vm12, %v2484_v36, %v2652_v39  ;;  %v2420_v54 = vpack.c.bf16 %v2400_v55, %v2400_v55  ;;  %v2318_v25 = vadd.f32 %v2317_v20, %v2259_v62  ;;  %v2212_v20 = vpop.f32.mrf.mxu2 }
 0x330   : > { %2651 = vst [vmem:[#allocation3 + $0x1c] sm:$0xf] %v2483_v34  ;;  %v2267_v55 = vadd.f32 %v2266_v32, %v2207_v7  ;;  %v1960_v34 = vpop.f32.mrf.mxu1 }
 0x331   : > { %2654 = vst [vmem:[#allocation3 + $0x20] sm:$0x1] %v2653_v43  ;;  %v2486_v42 = vshrl.u32 %v2420_v54, 16  ;;  %v2357_v11 = vadd.f32 %v2318_v25, %v1948_v31  ;;  %v2489_v47 = vshll.u32 %v2420_v54, 16  ;;  %v2271_v24 = vpop.f32.mrf.mxu3 }
 0x333   : > { %v2488_v28 = vrot.slane %v2486_v42, 7  ;;  %v2381_v9 = vadd.f32 %v6365_v23, %v2357_v11  ;;  %v1956_v42 = vadd.f32 %v1955_v8, %v6300_v40  ;;  %v1958_v8 = vadd.f32 %v1957_v63, %v6307_v58  ;;  %v2669_v58 = vld [vmem:[#allocation3 + $0x3c] sm:$0xf] }
 0x335   : > { %v2491_v6 = vor.u32 %v2489_v47, %v2488_v28  ;;  %v2401_v57 = vmax.f32 %v2381_v9, 0.0  ;;  %v2492_v41 = vrot.slane %v2488_v28, 4 }
 0x336   : > { %v2320_v22 = vpop.f32.mrf.mxu0 }
 0x337   : > { %v2656_v18 = vsel %vm5818_vm10, %v2491_v6, %v2655_v27  ;;  %v2421_v59 = vpack.c.bf16 %v2401_v57, %v2401_v57  ;;  %v2321_v49 = vadd.f32 %v2320_v22, %v2262_v46  ;;  %v2666_v6 = vld [vmem:[#allocation3 + $0x38] sm:$0x1]  ;;  %v2269_v57 = vadd.f32 %v2268_v44, %v2209_v56 }
 0x338   : > { %2657 = vst [vmem:[#allocation3 + $0x24] sm:$0xf] %v2656_v18 }
 0x339   : > { %v2494_v0 = vshrl.u32 %v2421_v59, 16  ;;  %v2358_v14 = vadd.f32 %v2321_v49, %v1951_v61  ;;  %v2497_v33 = vshll.u32 %v2421_v59, 16  ;;  %v2214_v49 = vpop.f32.mrf.mxu2  ;;  %v2273_v40 = vpop.f32.mrf.mxu3 }
 0x33b   : > { %v2496_v5 = vrot.slane %v2494_v0, 7  ;;  %v2382_v3 = vadd.f32 %v6365_v23, %v2358_v14  ;;  %v1962_v14 = vpop.f32.mrf.mxu1 }
 0x33d   : > { %v2499_v50 = vor.u32 %v2497_v33, %v2496_v5  ;;  %v2501_v2 = vrot.slane %v2496_v5, 4  ;;  %v2402_v21 = vmax.f32 %v2382_v3, 0.0 }
 0x33e   : > { %v2322_v16 = vpop.f32.mrf.mxu0 }
 0x33f   : > { %v2500_v45 = vsel %vm5824_vm11, %v2492_v41, %v2499_v50  ;;  %v2660_v39 = vsel %vm5830_vm12, %v2501_v2, %v2659_v53  ;;  %v2422_v62 = vpack.c.bf16 %v2402_v21, %v2402_v21  ;;  %v2323_v13 = vadd.f32 %v2322_v16, %v2264_v48 }
 0x340   : > { %2658 = vst [vmem:[#allocation3 + $0x28] sm:$0xf] %v2500_v45  ;;  %v2272_v50 = vadd.f32 %v2271_v24, %v2212_v20  ;;  %v1961_v16 = vadd.f32 %v1960_v34, %v6312_v10  ;;  %v2673_v24 = vld [vmem:[#allocation3 + $0x44] sm:$0x1] }
 0x341   : > { %2661 = vst [vmem:[#allocation3 + $0x2c] sm:$0x1] %v2660_v39  ;;  %v2503_v29 = vshrl.u32 %v2422_v62, 16  ;;  %v2359_v36 = vadd.f32 %v2323_v13, %v1953_v17  ;;  %v2506_v15 = vshll.u32 %v2422_v62, 16  ;;  %v2217_v13 = vpop.f32.mrf.mxu2 }
 0x343   : > { %v2505_v26 = vrot.slane %v2503_v29, 7  ;;  %v2383_v31 = vadd.f32 %v6365_v23, %v2359_v36  ;;  %v2276_v29 = vpop.f32.mrf.mxu3  ;;  %v1965_v36 = vpop.f32.mrf.mxu1 }
 0x345   : > { %v2508_v43 = vor.u32 %v2506_v15, %v2505_v26  ;;  %v2403_v54 = vmax.f32 %v2383_v31, 0.0  ;;  %v2509_v22 = vrot.slane %v2505_v26, 4 }
 0x346   : > { %v2325_v25 = vpop.f32.mrf.mxu0 }
 0x347   : > { %v2663_v11 = vsel %vm5818_vm10, %v2508_v43, %v2662_v35  ;;  %v2423_v28 = vpack.c.bf16 %v2403_v54, %v2403_v54  ;;  %v2326_v47 = vadd.f32 %v2325_v25, %v2267_v55  ;;  %v2274_v35 = vadd.f32 %v2273_v40, %v2214_v49 }
 0x348   : > { %2664 = vst [vmem:[#allocation3 + $0x30] sm:$0xf] %v2663_v11  ;;  %v1963_v25 = vadd.f32 %v1962_v14, %v6318_v38 }
 0x349   : > { %v2511_v46 = vshrl.u32 %v2423_v28, 16  ;;  %v2360_v9 = vadd.f32 %v2326_v47, %v1956_v42  ;;  %v2514_v32 = vshll.u32 %v2423_v28, 16 }
 0x34b   : > { %v2513_v7 = vrot.slane %v2511_v46, 7  ;;  %v2384_v27 = vadd.f32 %v6365_v23, %v2360_v9 }
 0x34d   : > { %v2516_v61 = vor.u32 %v2514_v32, %v2513_v7  ;;  %v2518_v18 = vrot.slane %v2513_v7, 4  ;;  %v2404_v59 = vmax.f32 %v2384_v27, 0.0  ;;  %v2219_v32 = vpop.f32.mrf.mxu2  ;;  %v2278_v27 = vpop.f32.mrf.mxu3 }
 0x34e   : > { %v2327_v0 = vpop.f32.mrf.mxu0 }
 0x34f   : > { %v2517_v5 = vsel %vm5824_vm11, %v2509_v22, %v2516_v61  ;;  %v2667_v33 = vsel %vm5830_vm12, %v2518_v18, %v2666_v6  ;;  %v2424_v3 = vpack.c.bf16 %v2404_v59, %v2404_v59  ;;  %v2328_v53 = vadd.f32 %v2327_v0, %v2269_v57  ;;  %v1967_v6 = vpop.f32.mrf.mxu1  ;;  %v2676_v18 = vld [vmem:[#allocation3 + $0x48] sm:$0xf] }
 0x350   : > { %2665 = vst [vmem:[#allocation3 + $0x34] sm:$0xf] %v2517_v5  ;;  %v2277_v61 = vadd.f32 %v2276_v29, %v2217_v13 }
 0x351   : > { %2668 = vst [vmem:[#allocation3 + $0x38] sm:$0x1] %v2667_v33  ;;  %v2520_v56 = vshrl.u32 %v2424_v3, 16  ;;  %v2361_v44 = vadd.f32 %v2328_v53, %v1958_v8  ;;  %v2523_v41 = vshll.u32 %v2424_v3, 16  ;;  %v1966_v8 = vadd.f32 %v1965_v36, %v6324_v30 }
 0x353   : > { %v2522_v48 = vrot.slane %v2520_v56, 7  ;;  %v2385_v2 = vadd.f32 %v6365_v23, %v2361_v44 }
 0x355   : > { %v2525_v63 = vor.u32 %v2523_v41, %v2522_v48  ;;  %v2405_v21 = vmax.f32 %v2385_v2, 0.0  ;;  %v2526_v43 = vrot.slane %v2522_v48, 4  ;;  %v2222_v48 = vpop.f32.mrf.mxu2  ;;  %v2281_v41 = vpop.f32.mrf.mxu3  ;;  %v2279_v2 = vadd.f32 %v2278_v27, %v2219_v32  ;;  %v2687_v27 = vld [vmem:[#allocation3 + $0x5c] sm:$0x1] }
 0x356   : > { %v2330_v17 = vpop.f32.mrf.mxu0 }
 0x357   : > { %v2670_v45 = vsel %vm5818_vm10, %v2525_v63, %v2669_v58  ;;  %v2425_v39 = vpack.c.bf16 %v2405_v21, %v2405_v21  ;;  %v2331_v62 = vadd.f32 %v2330_v17, %v2272_v50  ;;  %v2680_v50 = vld [vmem:[#allocation3 + $0x50] sm:$0x1]  ;;  %v1970_v58 = vpop.f32.mrf.mxu1 }
 0x358   : > { %2671 = vst [vmem:[#allocation3 + $0x3c] sm:$0xf] %v2670_v45 }
 0x359   : > { %v2528_v26 = vshrl.u32 %v2425_v39, 16  ;;  %v2362_v15 = vadd.f32 %v2331_v62, %v1961_v16  ;;  %v2531_v31 = vshll.u32 %v2425_v39, 16  ;;  %v1968_v16 = vadd.f32 %v1967_v6, %v6329_v51 }
 0x35b   : > { %v2530_v55 = vrot.slane %v2528_v26, 7  ;;  %v2386_v20 = vadd.f32 %v6365_v23, %v2362_v15 }
 0x35d   : > { %v2533_v54 = vor.u32 %v2531_v31, %v2530_v55  ;;  %v2535_v10 = vrot.slane %v2530_v55, 4  ;;  %v2406_v34 = vmax.f32 %v2386_v20, 0.0  ;;  %v2282_v31 = vadd.f32 %v2281_v41, %v2222_v48  ;;  %v2690_v48 = vld [vmem:[#allocation3 + $0x60] sm:$0xf] }
 0x35e   : > { %v2332_v42 = vpop.f32.mrf.mxu0 }
 0x35f   : > { %v2534_v11 = vsel %vm5824_vm11, %v2526_v43, %v2533_v54  ;;  %v2674_v28 = vsel %vm5830_vm12, %v2535_v10, %v2673_v24  ;;  %v2426_v47 = vpack.c.bf16 %v2406_v34, %v2406_v34  ;;  %v2333_v46 = vadd.f32 %v2332_v42, %v2274_v35  ;;  %v2683_v24 = vld [vmem:[#allocation3 + $0x54] sm:$0xf]  ;;  %v2224_v43 = vpop.f32.mrf.mxu2  ;;  %v2283_v54 = vpop.f32.mrf.mxu3 }
 0x360   : > { %2672 = vst [vmem:[#allocation3 + $0x40] sm:$0xf] %v2534_v11  ;;  %v1971_v34 = vadd.f32 %v1970_v58, %v6340_v19  ;;  %v2284_v6 = vadd.f32 %v2283_v54, %v2224_v43 }
 0x361   : > { %2675 = vst [vmem:[#allocation3 + $0x44] sm:$0x1] %v2674_v28  ;;  %v2537_v9 = vshrl.u32 %v2426_v47, 16  ;;  %v2363_v7 = vadd.f32 %v2333_v46, %v1963_v25  ;;  %v2540_v22 = vshll.u32 %v2426_v47, 16  ;;  %v1972_v25 = vpop.f32.mrf.mxu1 }
 0x362   : > { %v1973_v19 = vadd.f32 %v1972_v25, %v6345_v52 }
 0x363   : > { %v2539_v57 = vrot.slane %v2537_v9, 7  ;;  %v2387_v38 = vadd.f32 %v6365_v23, %v2363_v7 }
 0x365   : > { %v2542_v59 = vor.u32 %v2540_v22, %v2539_v57  ;;  %v2407_v49 = vmax.f32 %v2387_v38, 0.0  ;;  %v2543_v63 = vrot.slane %v2539_v57, 4 }
 0x366   : > { %v2335_v40 = vpop.f32.mrf.mxu0 }
 0x367   : > { %v2677_v0 = vsel %vm5818_vm10, %v2542_v59, %v2676_v18  ;;  %v2427_v14 = vpack.c.bf16 %v2407_v49, %v2407_v49  ;;  %v2336_v5 = vadd.f32 %v2335_v40, %v2277_v61 }
 0x368   : > { %2678 = vst [vmem:[#allocation3 + $0x48] sm:$0xf] %v2677_v0  ;;  %v2286_v0 = vpop.f32.mrf.mxu3 }
 0x369   : > { %v2545_v33 = vshrl.u32 %v2427_v14, 16  ;;  %v2364_v3 = vadd.f32 %v2336_v5, %v1966_v8  ;;  %v2548_v56 = vshll.u32 %v2427_v14, 16  ;;  %v2227_v8 = vpop.f32.mrf.mxu2  ;;  %v1975_v5 = vpop.f32.mrf.mxu1 }
 0x36a   : > { %v1976_v58 = vadd.f32 %v1975_v5, %v6350_v1 }
 0x36b   : > { %v2547_v53 = vrot.slane %v2545_v33, 7  ;;  %v2388_v44 = vadd.f32 %v6365_v23, %v2364_v3 }
 0x36d   : > { %v2550_v21 = vor.u32 %v2548_v56, %v2547_v53  ;;  %v2552_v30 = vrot.slane %v2547_v53, 4  ;;  %v2408_v17 = vmax.f32 %v2388_v44, 0.0  ;;  %v2287_v44 = vadd.f32 %v2286_v0, %v2227_v8 }
 0x36e   : > { %v2337_v45 = vpop.f32.mrf.mxu0 }
 0x36f   : > { %v2551_v39 = vsel %vm5824_vm11, %v2543_v63, %v2550_v21  ;;  %v2681_v62 = vsel %vm5830_vm12, %v2552_v30, %v2680_v50  ;;  %v2428_v13 = vpack.c.bf16 %v2408_v17, %v2408_v17  ;;  %v2338_v29 = vadd.f32 %v2337_v45, %v2279_v2 }
 0x370   : > { %2679 = vst [vmem:[#allocation3 + $0x4c] sm:$0xf] %v2551_v39  ;;  %v2288_v45 = vpop.f32.mrf.mxu3 }
 0x371   : > { %2682 = vst [vmem:[#allocation3 + $0x50] sm:$0x1] %v2681_v62  ;;  %v2554_v36 = vshrl.u32 %v2428_v13, 16  ;;  %v2365_v26 = vadd.f32 %v2338_v29, %v1968_v16  ;;  %v2557_v55 = vshll.u32 %v2428_v13, 16  ;;  %v2229_v16 = vpop.f32.mrf.mxu2  ;;  %v1977_v62 = vpop.f32.mrf.mxu1 }
 0x373   : > { %v2556_v15 = vrot.slane %v2554_v36, 7  ;;  %v2389_v20 = vadd.f32 %v6365_v23, %v2365_v26  ;;  %v2694_v26 = vld [vmem:[#allocation3 + $0x68] sm:$0x1] }
 0x375   : > { %v2559_v51 = vor.u32 %v2557_v55, %v2556_v15  ;;  %v2409_v35 = vmax.f32 %v2389_v20, 0.0  ;;  %v2560_v57 = vrot.slane %v2556_v15, 4  ;;  %v2289_v15 = vadd.f32 %v2288_v45, %v2229_v16 }
 0x376   : > { %v2340_v10 = vpop.f32.mrf.mxu0 }
 0x377   : > { %v2684_v42 = vsel %vm5818_vm10, %v2559_v51, %v2683_v24  ;;  %v2429_v11 = vpack.c.bf16 %v2409_v35, %v2409_v35  ;;  %v2341_v28 = vadd.f32 %v2340_v10, %v2282_v31  ;;  %v1978_v24 = vadd.f32 %v1977_v62, %v6353_v37 }
 0x378   : > { %2685 = vst [vmem:[#allocation3 + $0x54] sm:$0xf] %v2684_v42 }
 0x379   : > { %v2562_v47 = vshrl.u32 %v2429_v11, 16  ;;  %v2366_v46 = vadd.f32 %v2341_v28, %v1971_v34  ;;  %v2565_v7 = vshll.u32 %v2429_v11, 16 }
 0x37b   : > { %v2564_v9 = vrot.slane %v2562_v47, 7  ;;  %v2390_v32 = vadd.f32 %v6365_v23, %v2366_v46  ;;  %v2697_v47 = vld [vmem:[#allocation3 + $0x6c] sm:$0xf] }
 0x37d   : > { %v2567_v22 = vor.u32 %v2565_v7, %v2564_v9  ;;  %v2569_v61 = vrot.slane %v2564_v9, 4  ;;  %v2410_v38 = vmax.f32 %v2390_v32, 0.0 }
 0x37e   : > { %v2342_v18 = vpop.f32.mrf.mxu0 }
 0x37f   : > { %v2568_v59 = vsel %vm5824_vm11, %v2560_v57, %v2567_v22  ;;  %v2688_v49 = vsel %vm5830_vm12, %v2569_v61, %v2687_v27  ;;  %v2430_v40 = vpack.c.bf16 %v2410_v38, %v2410_v38  ;;  %v2343_v14 = vadd.f32 %v2342_v18, %v2284_v6  ;;  %v2701_v57 = vld [vmem:[#allocation3 + $0x74] sm:$0x1] }
 0x380   : > { %2686 = vst [vmem:[#allocation3 + $0x58] sm:$0xf] %v2568_v59 }
 0x381   : > { %2689 = vst [vmem:[#allocation3 + $0x5c] sm:$0x1] %v2688_v49  ;;  %v2571_v33 = vshrl.u32 %v2430_v40, 16  ;;  %v2367_v3 = vadd.f32 %v2343_v14, %v1973_v19  ;;  %v2574_v56 = vshll.u32 %v2430_v40, 16 }
 0x383   : > { %v2573_v53 = vrot.slane %v2571_v33, 7  ;;  %v2391_v52 = vadd.f32 %v6365_v23, %v2367_v3 }
 0x385   : > { %v2576_v41 = vor.u32 %v2574_v56, %v2573_v53  ;;  %v2411_v50 = vmax.f32 %v2391_v52, 0.0  ;;  %v2577_v55 = vrot.slane %v2573_v53, 4 }
 0x386   : > { %v2345_v2 = vpop.f32.mrf.mxu0 }
 0x387   : > { %v2691_v63 = vsel %vm5818_vm10, %v2576_v41, %v2690_v48  ;;  %v2431_v21 = vpack.c.bf16 %v2411_v50, %v2411_v50  ;;  %v2346_v30 = vadd.f32 %v2345_v2, %v2287_v44 }
 0x388   : > { %2692 = vst [vmem:[#allocation3 + $0x60] sm:$0xf] %v2691_v63 }
 0x389   : > { %v2579_v17 = vshrl.u32 %v2431_v21, 16  ;;  %v2368_v39 = vadd.f32 %v2346_v30, %v1976_v58  ;;  %v2582_v29 = vshll.u32 %v2431_v21, 16 }
 0x38b   : > { %v2581_v13 = vrot.slane %v2579_v17, 7  ;;  %v2392_v36 = vadd.f32 %v6365_v23, %v2368_v39 }
 0x38d   : > { %v2584_v31 = vor.u32 %v2582_v29, %v2581_v13  ;;  %v2586_v1 = vrot.slane %v2581_v13, 4  ;;  %v2412_v20 = vmax.f32 %v2392_v36, 0.0 }
 0x38e   : > { %v2347_v51 = vpop.f32.mrf.mxu0 }
 0x38f   : > { %v2585_v35 = vsel %vm5824_vm11, %v2577_v55, %v2584_v31  ;;  %v2695_v43 = vsel %vm5830_vm12, %v2586_v1, %v2694_v26  ;;  %v2432_v54 = vpack.c.bf16 %v2412_v20, %v2412_v20  ;;  %v2348_v10 = vadd.f32 %v2347_v51, %v2289_v15 }
 0x390   : > { %2693 = vst [vmem:[#allocation3 + $0x64] sm:$0xf] %v2585_v35 }
 0x391   : > { %2696 = vst [vmem:[#allocation3 + $0x68] sm:$0x1] %v2695_v43  ;;  %v2588_v34 = vshrl.u32 %v2432_v54, 16  ;;  %v2369_v25 = vadd.f32 %v2348_v10, %v1978_v24  ;;  %v2591_v11 = vshll.u32 %v2432_v54, 16 }
 0x393   : > { %v2590_v42 = vrot.slane %v2588_v34, 7  ;;  %v2393_v28 = vadd.f32 %v6365_v23, %v2369_v25 }
 0x395   : > { %v2593_v46 = vor.u32 %v2591_v11, %v2590_v42  ;;  %v2413_v37 = vmax.f32 %v2393_v28, 0.0  ;;  %v2594_v22 = vrot.slane %v2590_v42, 4 }
 0x397   : > { %v2698_v9 = vsel %vm5818_vm10, %v2593_v46, %v2697_v47  ;;  %v2433_v7 = vpack.c.bf16 %v2413_v37, %v2413_v37 }
 0x398   : > { %2699 = vst [vmem:[#allocation3 + $0x6c] sm:$0xf] %v2698_v9 }
 0x399   : > { %v2596_v32 = vshrl.u32 %v2433_v7, 16  ;;  %v2599_v6 = vshll.u32 %v2433_v7, 16 }
 0x39b   : > { %v2598_v27 = vrot.slane %v2596_v32, 7 }
 0x39d   : > { %v2601_v61 = vor.u32 %v2599_v6, %v2598_v27  ;;  %v2603_v38 = vrot.slane %v2598_v27, 4  ;;  %2706 = sbr.rel (%p4280_p8) target bundleno = 934 (0x3a6), region = 76 }
 0x39f   : > { %v2602_v19 = vsel %vm5824_vm11, %v2594_v22, %v2601_v61  ;;  %v2702_v23 = vsel %vm5830_vm12, %v2603_v38, %v2701_v57 }
 0x3a0   : > { %2700 = vst [vmem:[#allocation3 + $0x70] sm:$0xf] %v2602_v19 }
 0x3a1   : > { %2703 = vst [vmem:[#allocation3 + $0x74] sm:$0x1] %v2702_v23 }
 0x3a2   : > { %v5511_v12 = vmov 0  }
 0x3a3   : > { %2707 = vst [vmem:[#allocation3] sm:$0xf] %v5511_v12 }
 0x3a4   : > { %2708 = vst [vmem:[#allocation3 + $0x4] sm:$0xf] %v5511_v12 }
 0x3a5   : > { %2709 = vst [vmem:[#allocation3 + $0x8] sm:$0x1] %v5511_v12 }
 0x3a6 PF: > { %2712 = sbr.rel (%p4282_p4) target bundleno = 943 (0x3af), region = 80 }
 0x3ab   : > { %v5512_v18 = vmov 0  }
 0x3ac   : > { %2714 = vst [vmem:[#allocation3 + $0x6c] sm:$0xf] %v5512_v18 }
 0x3ad   : > { %2715 = vst [vmem:[#allocation3 + $0x70] sm:$0xf] %v5512_v18 }
 0x3ae   : > { %2716 = vst [vmem:[#allocation3 + $0x74] sm:$0x1] %v5512_v18 }
 0x3af PF: > { %v5084_v60 = vld [vmem:[#allocation11 + $0xf8] sm:$0xff]  ;;  %v5083_v49 = vld [vmem:[#allocation11 + $0xf0] sm:$0xff]  ;;  %v5082_v0 = vld [vmem:[#allocation11 + $0xe8] sm:$0xff]  ;;  %s6944_s5 = sld [smem:[#allocation50_spill]]  ;;  %s5125_s18 = sshll.u32 %s5483_s24, 4 }
 0x3b0   : > { %v5092_v4 = vld [vmem:[#allocation11 + $0x138] sm:$0xff]  ;;  %3248 = vmatpush.bf16.msra.mxu1 %v5084_v60  ;;  %v5091_v40 = vld [vmem:[#allocation11 + $0x130] sm:$0xff]  ;;  %v5090_v14 = vld [vmem:[#allocation11 + $0x128] sm:$0xff]  ;;  %s4952_s19 = sshll.u32 %s5487_s25, 5  ;;  %s6945_s11 = sld [smem:[#allocation51_spill]] }
 0x3b1   : > { %v5100_v59 = vld [vmem:[#allocation11 + $0x178] sm:$0xff]  ;;  %3297 = vmatpush.bf16.msra.mxu2 %v5092_v4  ;;  %v5099_v8 = vld [vmem:[#allocation11 + $0x170] sm:$0xff]  ;;  %v5098_v5 = vld [vmem:[#allocation11 + $0x168] sm:$0xff]  ;;  %s4123_s9 = sadd.s32 %s5125_s18, %s4952_s19  ;;  %s4126_s12 = sshll.u32 %s5706_s14, 4  ;;  %s4127_s12 = int_to_ptr.vmem [resolvable:$true] %s4126_s12 }
 0x3b2   : > { %3346 = vmatpush.bf16.msrb.mxu3 %v5100_v59  ;;  %v5081_v33 = vld [vmem:[#allocation11 + $0xe0] sm:$0xff]  ;;  %v2722_v56 = vld [vmem:[#allocation3 + $0x14] sm:$0x1]  ;;  %v6501_v48 = vld [vmem:[#allocation3 + $0xc] sm:$0xff]  ;;  %s4953_s20 = sshll.u32 %s4123_s9, 3  ;;  %s4111_s13 = scalar_lea.sflag [#allocation8], %s5670_s2 }
 0x3b3   : > { %v5089_v3 = vld [vmem:[#allocation11 + $0x120] sm:$0xff]  ;;  %v5080_v44 = vld [vmem:[#allocation11 + $0xd8] sm:$0xff]  ;;  %v2818_v41 = vunpack.c.l.b16 %v2722_v56  ;;  %v5079_v2 = vld [vmem:[#allocation11 + $0xd0] sm:$0xff]  ;;  %v2852_v21 = vshll.u32 %v6501_v48, 16  ;;  %v2850_v45 = vshrl.u32 %v6501_v48, 16  ;;  %v2970_v1 = vrot.slane %v6501_v48, 1 }
 0x3b4   : > { %3249 = vmatpush.bf16.msra.mxu1 %v5083_v49  ;;  %v5097_v53 = vld [vmem:[#allocation11 + $0x160] sm:$0xff]  ;;  %v5088_v52 = vld [vmem:[#allocation11 + $0x118] sm:$0xff]  ;;  %v5087_v58 = vld [vmem:[#allocation11 + $0x110] sm:$0xff] }
 0x3b5   : > { %3298 = vmatpush.bf16.msra.mxu2 %v5091_v40  ;;  %v5096_v50 = vld [vmem:[#allocation11 + $0x158] sm:$0xff]  ;;  %v2828_v63 = vpack.c.b16 %v2818_v41, %v2818_v41  ;;  %v5095_v30 = vld [vmem:[#allocation11 + $0x150] sm:$0xff]  ;;  %v5078_v17 = vld [vmem:[#allocation11 + $0xc8] sm:$0xff]  ;;  %v2854_v39 = vrot.slane %v2852_v21, 1 }
 0x3b6   : > { %3347 = vmatpush.bf16.msrb.mxu3 %v5099_v8  ;;  %v5086_v16 = vld [vmem:[#allocation11 + $0x108] sm:$0xff]  ;;  %v5077_v29 = vld [vmem:[#allocation11 + $0xc0] sm:$0xff]  ;;  %v5068_v31 = vld [vmem:[#allocation11 + $0x78] sm:$0xff]  ;;  %s4125_s29 = scalar_lea.hbm %s6945_s11, %s4953_s20  ;;  %s5413_s7 = scalar_lea.hbm %s6945_s11, 512 }
 0x3b7   : > { %v2857_v62 = vshll.u32 %v2828_v63, 16  ;;  %v5094_v13 = vld [vmem:[#allocation11 + $0x148] sm:$0xff]  ;;  %v5085_v36 = vld [vmem:[#allocation11 + $0x100] sm:$0xff]  ;;  %v2855_v26 = vor.u32 %v2854_v39, %v2850_v45  ;;  %v2971_v20 = vrot.slane %v2828_v63, 1  ;;  %v5060_v51 = vld [vmem:[#allocation11 + $0x38] sm:$0xff]  ;;  %s4128_s8 = sshll.u32 %s4125_s29, 4  ;;  %s4129_s8 = int_to_ptr.hbm [resolvable:$true] %s4128_s8 }
 0x3b8   : > { %3250 = vmatpush.bf16.msra.mxu1 %v5082_v0  ;;  %v5093_v55 = vld [vmem:[#allocation11 + $0x140] sm:$0xff]  ;;  %v2725_v24 = vld [vmem:[#allocation3 + $0x20] sm:$0x1]  ;;  %v5067_v34 = vld [vmem:[#allocation11 + $0x70] sm:$0xff]  ;;  %s5407_s3 = sshra.s32 %s4129_s8, 4  ;;  %s5408_s3 = int_to_ptr.hbm [resolvable:$true] %s5407_s3 }
 0x3b9   : > { %3299 = vmatpush.bf16.msra.mxu2 %v5090_v14  ;;  %v2859_v15 = vrot.slane %v2857_v62, 1  ;;  %v6509_v43 = vld [vmem:[#allocation3 + $0x18] sm:$0xff]  ;;  %v2819_v54 = vunpack.c.l.b16 %v2725_v24  ;;  %v6512_v10 = vsel %vm1192_vm14, %v2970_v1, %v2971_v20  ;;  %v5059_v25 = vld [vmem:[#allocation11 + $0x30] sm:$0xff]  ;;  %v5066_v28 = vld [vmem:[#allocation11 + $0x68] sm:$0xff]  ;;  %s5409_s4 = scalar_lea.hbm %s5408_s3, 128  ;;  %p5414_p12 = scmp.lt.s32.totalorder %s5408_s3, %s6945_s11 }
 0x3ba   : > { %3348 = vmatpush.bf16.msrb.mxu3 %v5098_v5  ;;  %v2864_v11 = vshll.u32 %v6509_v43, 16  ;;  %v5058_v47 = vld [vmem:[#allocation11 + $0x28] sm:$0xff]  ;;  %v2862_v46 = vshrl.u32 %v6509_v43, 16  ;;  %v2973_v27 = vrot.slane %v6509_v43, 1  ;;  %v2728_v57 = vld [vmem:[#allocation3 + $0x2c] sm:$0x1]  ;;  %p5410_p1 = scmp.ne.s32.totalorder %s5408_s3, %s5409_s4  ;;  %p5415_p13 = scmp.lt.s32.totalorder %s5413_s7, %s5409_s4 }
 0x3bb   : > { %v6507_v35 = vsel %vm1035_vm13, %v2855_v26, %v2859_v15  ;;  %v2829_v42 = vpack.c.b16 %v2819_v54, %v2819_v54  ;;  %v6523_v61 = vld [vmem:[#allocation3 + $0x24] sm:$0xff]  ;;  %v2820_v38 = vunpack.c.l.b16 %v2728_v57  ;;  %v5065_v23 = vld [vmem:[#allocation11 + $0x60] sm:$0xff] }
 0x3bc   : > { %3251 = vmatpush.bf16.msra.mxu1 %v5081_v33  ;;  %v2866_v37 = vrot.slane %v2864_v11, 1  ;;  %v2876_v18 = vshll.u32 %v6523_v61, 16  ;;  %v5057_v60 = vld [vmem:[#allocation11 + $0x20] sm:$0xff]  ;;  %v2874_v4 = vshrl.u32 %v6523_v61, 16  ;;  %v2976_v0 = vrot.slane %v6523_v61, 1  ;;  %v6565_v11 = vld [vmem:[#allocation3 + $0x48] sm:$0xff]  ;;  %p5411_p10 = pnand %p5410_p1, %p5645_p5  ;;  %p5416_p0 = por %p5415_p13, %p5414_p12 }
 0x3bd   : > { %3300 = vmatpush.bf16.msra.mxu2 %v5089_v3  ;;  %v2869_v9 = vshll.u32 %v2829_v42, 16  ;;  %v2974_v6 = vrot.slane %v2829_v42, 1  ;;  %v2830_v12 = vpack.c.b16 %v2820_v38, %v2820_v38  ;;  %v2731_v5 = vld [vmem:[#allocation3 + $0x38] sm:$0x1]  ;;  %v6537_v3 = vld [vmem:[#allocation3 + $0x30] sm:$0xff]  ;;  %v6551_v62 = vld [vmem:[#allocation3 + $0x3c] sm:$0xff] }
 0x3be   : > { %3349 = vmatpush.bf16.msrb.mxu3 %v5097_v53  ;;  %v2867_v7 = vor.u32 %v2866_v37, %v2862_v46  ;;  %v2878_v59 = vrot.slane %v2876_v18, 1  ;;  %v2821_v53 = vunpack.c.l.b16 %v2731_v5  ;;  %v2888_v41 = vshll.u32 %v6537_v3, 16  ;;  %v2734_v45 = vld [vmem:[#allocation3 + $0x44] sm:$0x1]  ;;  %v5061_v5 = vld [vmem:[#allocation11 + $0x40] sm:$0xff]  ;;  %p5412_p11 = pneg %p5411_p10 }
 0x3bf   : > { %v2871_v32 = vrot.slane %v2869_v9, 1  ;;  %v6526_v19 = vsel %vm1192_vm14, %v2973_v27, %v2974_v6  ;;  %v2881_v49 = vshll.u32 %v2830_v12, 16  ;;  %v2977_v14 = vrot.slane %v2830_v12, 1  ;;  %v5062_v46 = vld [vmem:[#allocation11 + $0x48] sm:$0xff]  ;;  %v5075_v27 = vld [vmem:[#allocation11 + $0xb0] sm:$0xff] }
 0x3c0   : > { %3252 = vmatpush.bf16.msra.mxu1 %v5080_v44  ;;  %v2879_v40 = vor.u32 %v2878_v59, %v2874_v4  ;;  %v5064_v44 = vld [vmem:[#allocation11 + $0x58] sm:$0xff]  ;;  %v2900_v15 = vshll.u32 %v6551_v62, 16  ;;  %v2982_v54 = vrot.slane %v6551_v62, 1  ;;  %v2912_v9 = vshll.u32 %v6565_v11, 16  ;;  %v2740_v59 = vld [vmem:[#allocation3 + $0x5c] sm:$0x1]  ;;  %p5417_p3 = pnand %p5416_p0, %p5412_p11 }
 0x3c1   : > { %3301 = vmatpush.bf16.msra.mxu2 %v5088_v52  ;;  %v6521_v22 = vsel %vm1035_vm13, %v2867_v7, %v2871_v32  ;;  %v2883_v8 = vrot.slane %v2881_v49, 1  ;;  %v6540_v56 = vsel %vm1192_vm14, %v2976_v0, %v2977_v14  ;;  %v2831_v52 = vpack.c.b16 %v2821_v53, %v2821_v53  ;;  %v5076_v7 = vld [vmem:[#allocation11 + $0xb8] sm:$0xff]  ;;  %v5054_v32 = vld [vmem:[#allocation11 + $0x8] sm:$0xff]  ;;  %v5073_v49 = vld [vmem:[#allocation11 + $0xa0] sm:$0xff] }
 0x3c2   : > { %3350 = vmatpush.bf16.msrb.mxu3 %v5096_v50  ;;  %v5056_v50 = vld [vmem:[#allocation11 + $0x18] sm:$0xff]  ;;  %v2902_v1 = vrot.slane %v2900_v15, 1  ;;  %v2910_v6 = vshrl.u32 %v6565_v11, 16  ;;  %v2914_v57 = vrot.slane %v2912_v9, 1  ;;  %v2824_v0 = vunpack.c.l.b16 %v2740_v59 }
 0x3c3   : > { %v6535_v33 = vsel %vm1035_vm13, %v2879_v40, %v2883_v8  ;;  %v2893_v63 = vshll.u32 %v2831_v52, 16  ;;  %v6579_v8 = vld [vmem:[#allocation3 + $0x54] sm:$0xff] }
 0x3c4   : > { %3253 = vmatpush.bf16.msra.mxu1 %v5079_v2  ;;  %v2886_v2 = vshrl.u32 %v6537_v3, 16  ;;  %v2915_v12 = vor.u32 %v2914_v57, %v2910_v6  ;;  %v2834_v53 = vpack.c.b16 %v2824_v0, %v2824_v0 }
 0x3c5   : > { %3302 = vmatpush.bf16.msra.mxu2 %v5087_v58  ;;  %v2890_v58 = vrot.slane %v2888_v41, 1  ;;  %v5053_v41 = vld [vmem:[#allocation11] sm:$0xff] }
 0x3c6   : > { %3351 = vmatpush.bf16.msrb.mxu3 %v5095_v30  ;;  %v2895_v30 = vrot.slane %v2893_v63, 1  ;;  %v2929_v63 = vshll.u32 %v2834_v53, 16 }
 0x3c7   : > { %v2891_v21 = vor.u32 %v2890_v58, %v2886_v2  ;;  %v2922_v2 = vshrl.u32 %v6579_v8, 16 }
 0x3c8   : > { %3254 = vmatpush.bf16.msra.mxu1 %v5078_v17  ;;  %v2979_v17 = vrot.slane %v6537_v3, 1 }
 0x3c9   : > { %3303 = vmatpush.bf16.msra.mxu2 %v5086_v16  ;;  %v2980_v16 = vrot.slane %v2831_v52, 1  ;;  %v6549_v39 = vsel %vm1035_vm13, %v2891_v21, %v2895_v30  ;;  %v5072_v52 = vld [vmem:[#allocation11 + $0x98] sm:$0xff]  ;;  %v5070_v21 = vld [vmem:[#allocation11 + $0x88] sm:$0xff] }
 0x3ca   : > { %3352 = vmatpush.bf16.msrb.mxu3 %v5094_v13  ;;  %v2822_v13 = vunpack.c.l.b16 %v2734_v45  ;;  %v2989_v45 = vrot.slane %v2834_v53, 1 }
 0x3cc   : > { %3255 = vmatpush.bf16.msra.mxu1 %v5077_v29  ;;  %v6554_v29 = vsel %vm1192_vm14, %v2979_v17, %v2980_v16  ;;  %v2832_v26 = vpack.c.b16 %v2822_v13, %v2822_v13  ;;  %v2931_v17 = vrot.slane %v2929_v63, 1  ;;  %v2988_v16 = vrot.slane %v6579_v8, 1  ;;  %v2743_v13 = vld [vmem:[#allocation3 + $0x68] sm:$0x1] }
 0x3cd   : > { %3304 = vmatpush.bf16.msra.mxu2 %v5085_v36  ;;  %v5063_v36 = vld [vmem:[#allocation11 + $0x50] sm:$0xff]  ;;  %v2825_v15 = vunpack.c.l.b16 %v2743_v13 }
 0x3ce   : > { %3353 = vmatpush.bf16.msrb.mxu3 %v5093_v55  ;;  %v5055_v55 = vld [vmem:[#allocation11 + $0x10] sm:$0xff]  ;;  %v2905_v20 = vshll.u32 %v2832_v26, 16 }
 0x3cf   : > { %3256 = vmatmul.bf16.vlgmr.msra.gmra.mxu1 %v6501_v48 }
 0x3d0   : > { %3539 = vmatpush.bf16.msrb.mxu1 %v5060_v51  ;;  %3305 = vmatmul.bf16.vlgmr.msra.gmra.mxu2 %v6507_v35  ;;  %v2907_v51 = vrot.slane %v2905_v20, 1  ;;  %v2835_v20 = vpack.c.b16 %v2825_v15, %v2825_v15 }
 0x3d1   : > { %3588 = vmatpush.bf16.msrb.mxu2 %v5068_v31  ;;  %3354 = vmatmul.bf16.vlgmr.msrb.gmra.mxu3 %v6512_v10  ;;  %v2898_v31 = vshrl.u32 %v6551_v62, 16 }
 0x3d2   : > { %3637 = vmatpush.bf16.msra.mxu3 %v5076_v7  ;;  %v2992_v9 = vrot.slane %v2835_v20, 1  ;;  %v2719_v7 = vld [vmem:[#allocation3 + $0x8] sm:$0x1] }
 0x3d3   : > { %v2903_v24 = vor.u32 %v2902_v1, %v2898_v31  ;;  %v6596_v31 = vsel %vm1192_vm14, %v2988_v16, %v2989_v45  ;;  %v5124_v1 = vld [vmem:[#allocation11 + $0x238] sm:$0xff]  ;;  %v2817_v6 = vunpack.c.l.b16 %v2719_v7 }
 0x3d4   : > { %3540 = vmatpush.bf16.msrb.mxu1 %v5059_v25  ;;  %v2737_v25 = vld [vmem:[#allocation3 + $0x50] sm:$0x1] }
 0x3d5   : > { %3589 = vmatpush.bf16.msrb.mxu2 %v5067_v34  ;;  %v2983_v34 = vrot.slane %v2832_v26, 1  ;;  %v6563_v42 = vsel %vm1035_vm13, %v2903_v24, %v2907_v51  ;;  %v6593_v26 = vld [vmem:[#allocation3 + $0x60] sm:$0xff]  ;;  %v5116_v51 = vld [vmem:[#allocation11 + $0x1f8] sm:$0xff] }
 0x3d6   : > { %3638 = vmatpush.bf16.msra.mxu3 %v5075_v27  ;;  %v2936_v24 = vshll.u32 %v6593_v26, 16  ;;  %v5043_v27 = vld [vmem:[#allocation3] sm:$0xff] }
 0x3d8   : > { %3541 = vmatpush.bf16.msrb.mxu1 %v5058_v47  ;;  %v6568_v47 = vsel %vm1192_vm14, %v2982_v54, %v2983_v34  ;;  %v2934_v54 = vshrl.u32 %v6593_v26, 16  ;;  %v2938_v34 = vrot.slane %v2936_v24, 1 }
 0x3d9   : > { %3590 = vmatpush.bf16.msrb.mxu2 %v5066_v28  ;;  %v2823_v28 = vunpack.c.l.b16 %v2737_v25  ;;  %v2941_v25 = vshll.u32 %v2835_v20, 16 }
 0x3db   : > { %v2833_v37 = vpack.c.b16 %v2823_v28, %v2823_v28  ;;  %v2939_v28 = vor.u32 %v2938_v34, %v2934_v54  ;;  %v5113_v54 = vld [vmem:[#allocation11 + $0x1e0] sm:$0xff] }
 0x3dc   : > { %3542 = vmatpush.bf16.msrb.mxu1 %v5057_v60  ;;  %v2985_v60 = vrot.slane %v6565_v11, 1 }
 0x3dd   : > { %3591 = vmatpush.bf16.msrb.mxu2 %v5065_v23  ;;  %v2917_v38 = vshll.u32 %v2833_v37, 16  ;;  %v5074_v23 = vld [vmem:[#allocation11 + $0xa8] sm:$0xff]  ;;  %v2986_v4 = vrot.slane %v2833_v37, 1  ;;  %v2991_v37 = vrot.slane %v6593_v26, 1 }
 0x3de   : > { %3639 = vmatpush.bf16.msra.mxu3 %v5074_v23  ;;  %v2827_v23 = vpack.c.b16 %v2817_v6, %v2817_v6  ;;  %v5112_v6 = vld [vmem:[#allocation11 + $0x1d8] sm:$0xff] }
 0x3df   : > { %3261 = vmatmul.bf16.gmra.mxu1 %v6509_v43  ;;  %v2919_v18 = vrot.slane %v2917_v38, 1  ;;  %v6582_v14 = vsel %vm1192_vm14, %v2985_v60, %v2986_v4  ;;  %v6608_v57 = vsel %vm1192_vm14, %v2991_v37, %v2992_v9  ;;  %v5123_v38 = vld [vmem:[#allocation11 + $0x230] sm:$0xff]  ;;  %v2838_v60 = vshrl.u32 %v5043_v27, 16 }
 0x3e0   : > { %3310 = vmatmul.bf16.gmra.mxu2 %v6521_v22  ;;  %3543 = vmatpush.bf16.msrb.mxu1 %v5056_v50  ;;  %v5071_v50 = vld [vmem:[#allocation11 + $0x90] sm:$0xff]  ;;  %v2845_v59 = vshll.u32 %v2827_v23, 16  ;;  %v2968_v53 = vrot.slane %v2827_v23, 1 }
 0x3e1   : > { %3359 = vmatmul.bf16.gmra.mxu3 %v6526_v19  ;;  %3592 = vmatpush.bf16.msrb.mxu2 %v5064_v44  ;;  %v6577_v40 = vsel %vm1035_vm13, %v2915_v12, %v2919_v18  ;;  %v2924_v44 = vshll.u32 %v6579_v8, 16  ;;  %v2840_v12 = vshll.u32 %v5043_v27, 16  ;;  %v5115_v18 = vld [vmem:[#allocation11 + $0x1f0] sm:$0xff] }
 0x3e2   : > { %3640 = vmatpush.bf16.msra.mxu3 %v5073_v49  ;;  %v2847_v0 = vrot.slane %v2845_v59, 1 }
 0x3e3   : > { %v2926_v58 = vrot.slane %v2924_v44, 1  ;;  %v2842_v4 = vrot.slane %v2840_v12, 1 }
 0x3e4   : > { %3544 = vmatpush.bf16.msrb.mxu1 %v5055_v55  ;;  %v5069_v55 = vld [vmem:[#allocation11 + $0x80] sm:$0xff] }
 0x3e5   : > { %3593 = vmatpush.bf16.msrb.mxu2 %v5063_v36  ;;  %v2927_v30 = vor.u32 %v2926_v58, %v2922_v2  ;;  %v2843_v49 = vor.u32 %v2842_v4, %v2838_v60 }
 0x3e6   : > { %3641 = vmatpush.bf16.msra.mxu3 %v5072_v52 }
 0x3e7   : > { %v6591_v36 = vsel %vm1035_vm13, %v2927_v30, %v2931_v17  ;;  %v2848_v52 = vsel %vm1035_vm13, %v2843_v49, %v2847_v0  ;;  %v5119_v49 = vld [vmem:[#allocation11 + $0x210] sm:$0xff] }
 0x3e8   : > { %3545 = vmatpush.bf16.msrb.mxu1 %v5054_v32 }
 0x3e9   : > { %3594 = vmatpush.bf16.msrb.mxu2 %v5062_v46  ;;  %v2943_v46 = vrot.slane %v2941_v25, 1 }
 0x3ea   : > { %3642 = vmatpush.bf16.msra.mxu3 %v5071_v50  ;;  %v5122_v50 = vld [vmem:[#allocation11 + $0x228] sm:$0xff] }
 0x3eb   : > { %v6605_v32 = vsel %vm1035_vm13, %v2939_v28, %v2943_v46 }
 0x3ec   : > { %3546 = vmatpush.bf16.msrb.mxu1 %v5053_v41 }
 0x3ed   : > { %3595 = vmatpush.bf16.msrb.mxu2 %v5061_v5  ;;  %v2967_v5 = vrot.slane %v5043_v27, 1 }
 0x3ee   : > { %3643 = vmatpush.bf16.msra.mxu3 %v5070_v21  ;;  %v5114_v21 = vld [vmem:[#allocation11 + $0x1e8] sm:$0xff] }
 0x3ef   : > { %3266 = vmatmul.bf16.gmra.mxu1 %v6523_v61  ;;  %v2969_v41 = vsel %vm1192_vm14, %v2967_v5, %v2968_v53 }
 0x3f0   : > { %3315 = vmatmul.bf16.gmra.mxu2 %v6535_v33  ;;  %3928 = vmatpush.bf16.msra.mxu1 %v5116_v51 }
 0x3f1   : > { %3364 = vmatmul.bf16.gmra.mxu3 %v6540_v56  ;;  %3977 = vmatpush.bf16.msra.mxu2 %v5124_v1  ;;  %v5121_v1 = vld [vmem:[#allocation11 + $0x220] sm:$0xff] }
 0x3f2   : > { %3644 = vmatpush.bf16.msra.mxu3 %v5069_v55 }
 0x3f4   : > { %3929 = vmatpush.bf16.msra.mxu1 %v5115_v18 }
 0x3f5   : > { %3978 = vmatpush.bf16.msra.mxu2 %v5123_v38 }
 0x3f8   : > { %3930 = vmatpush.bf16.msra.mxu1 %v5114_v21 }
 0x3f9   : > { %3979 = vmatpush.bf16.msra.mxu2 %v5122_v50 }
 0x3fc   : > { %3931 = vmatpush.bf16.msra.mxu1 %v5113_v54 }
 0x3fd   : > { %3980 = vmatpush.bf16.msra.mxu2 %v5121_v1 }
 0x3ff   : > { %3271 = vmatmul.bf16.gmra.mxu1 %v6537_v3 }
 0x400   : > { %3320 = vmatmul.bf16.gmra.mxu2 %v6549_v39  ;;  %3932 = vmatpush.bf16.msra.mxu1 %v5112_v6 }
 0x401   : > { %3369 = vmatmul.bf16.gmra.mxu3 %v6554_v29 }
 0x40f   : > { %3276 = vmatmul.bf16.gmra.mxu1 %v6551_v62 }
 0x410   : > { %3325 = vmatmul.bf16.gmra.mxu2 %v6563_v42 }
 0x411   : > { %3374 = vmatmul.bf16.gmra.mxu3 %v6568_v47 }
 0x41f   : > { %3281 = vmatmul.bf16.gmra.mxu1 %v6565_v11 }
 0x420   : > { %3330 = vmatmul.bf16.gmra.mxu2 %v6577_v40 }
 0x421   : > { %3379 = vmatmul.bf16.gmra.mxu3 %v6582_v14 }
 0x42f   : > { %3286 = vmatmul.bf16.gmra.mxu1 %v6579_v8 }
 0x430   : > { %3335 = vmatmul.bf16.gmra.mxu2 %v6591_v36 }
 0x431   : > { %3384 = vmatmul.bf16.gmra.mxu3 %v6596_v31 }
 0x43f   : > { %3291 = vmatmul.bf16.gmra.mxu1 %v6593_v26 }
 0x440   : > { %3340 = vmatmul.bf16.gmra.mxu2 %v6605_v32 }
 0x441   : > { %3389 = vmatmul.bf16.gmra.mxu3 %v6608_v57 }
 0x44c   : > { %v3257_v44 = vpop.f32.mrf.mxu1 }
 0x44f   : > { %3547 = vmatmul.bf16.vlgmr.msrb.gmra.mxu1 %v5043_v27 }
 0x450   : > { %3596 = vmatmul.bf16.vlgmr.msrb.gmra.mxu2 %v2848_v52 }
 0x451   : > { %3645 = vmatmul.bf16.vlgmr.msra.gmra.mxu3 %v2969_v41 }
 0x453   : > { %v3306_v2 = vpop.f32.mrf.mxu2 }
 0x454   : > { %v3307_v58 = vadd.f32 %v3306_v2, %v3257_v44  ;;  %v3355_v63 = vpop.f32.mrf.mxu3  ;;  %v3259_v30 = vpop.f32.mrf.mxu1  ;;  %v5111_v44 = vld [vmem:[#allocation11 + $0x1d0] sm:$0xff]  ;;  %v5108_v2 = vld [vmem:[#allocation11 + $0x1b8] sm:$0xff] }
 0x455   : > { %3933 = vmatpush.bf16.msra.mxu1 %v5111_v44  ;;  %3879 = vmatpush.bf16.msra.mxu0 %v5108_v2 }
 0x456   : > { %v6615_v17 = vadd.f32 %v3355_v63, %v3307_v58 }
 0x45b   : > { %v3308_v16 = vpop.f32.mrf.mxu2 }
 0x45c   : > { %v3309_v45 = vadd.f32 %v3308_v16, %v3259_v30  ;;  %v3357_v13 = vpop.f32.mrf.mxu3  ;;  %v3262_v15 = vpop.f32.mrf.mxu1  ;;  %v5107_v16 = vld [vmem:[#allocation11 + $0x1b0] sm:$0xff] }
 0x45d   : > { %3880 = vmatpush.bf16.msra.mxu0 %v5107_v16 }
 0x45e   : > { %v6617_v55 = vadd.f32 %v3357_v13, %v3309_v45  ;;  %v5118_v45 = vld [vmem:[#allocation11 + $0x208] sm:$0xff] }
 0x45f   : > { %3552 = vmatmul.bf16.gmra.mxu1 %v6501_v48  ;;  %v5120_v48 = vld [vmem:[#allocation11 + $0x218] sm:$0xff] }
 0x460   : > { %3601 = vmatmul.bf16.gmra.mxu2 %v6507_v35 }
 0x461   : > { %3650 = vmatmul.bf16.gmra.mxu3 %v6512_v10  ;;  %3981 = vmatpush.bf16.msra.mxu2 %v5120_v48 }
 0x463   : > { %v3311_v20 = vpop.f32.mrf.mxu2 }
 0x464   : > { %v3312_v24 = vadd.f32 %v3311_v20, %v3262_v15  ;;  %v3360_v51 = vpop.f32.mrf.mxu3  ;;  %v3264_v34 = vpop.f32.mrf.mxu1  ;;  %v5106_v15 = vld [vmem:[#allocation11 + $0x1a8] sm:$0xff] }
 0x465   : > { %3982 = vmatpush.bf16.msra.mxu2 %v5119_v49  ;;  %3881 = vmatpush.bf16.msra.mxu0 %v5106_v15 }
 0x466   : > { %v6622_v25 = vadd.f32 %v3360_v51, %v3312_v24  ;;  %v5110_v24 = vld [vmem:[#allocation11 + $0x1c8] sm:$0xff] }
 0x467   : > { %3934 = vmatpush.bf16.msra.mxu1 %v5110_v24 }
 0x469   : > { %3983 = vmatpush.bf16.msra.mxu2 %v5118_v45 }
 0x46b   : > { %v3313_v28 = vpop.f32.mrf.mxu2 }
 0x46c   : > { %v3314_v46 = vadd.f32 %v3313_v28, %v3264_v34  ;;  %v3362_v37 = vpop.f32.mrf.mxu3  ;;  %v3267_v9 = vpop.f32.mrf.mxu1  ;;  %v5105_v34 = vld [vmem:[#allocation11 + $0x1a0] sm:$0xff] }
 0x46d   : > { %3882 = vmatpush.bf16.msra.mxu0 %v5105_v34 }
 0x46e   : > { %v6624_v7 = vadd.f32 %v3362_v37, %v3314_v46  ;;  %v5104_v46 = vld [vmem:[#allocation11 + $0x198] sm:$0xff] }
 0x46f   : > { %3557 = vmatmul.bf16.gmra.mxu1 %v6509_v43 }
 0x470   : > { %3606 = vmatmul.bf16.gmra.mxu2 %v6521_v22 }
 0x471   : > { %3655 = vmatmul.bf16.gmra.mxu3 %v6526_v19  ;;  %3883 = vmatpush.bf16.msra.mxu0 %v5104_v46 }
 0x473   : > { %v3316_v35 = vpop.f32.mrf.mxu2 }
 0x474   : > { %v3317_v10 = vadd.f32 %v3316_v35, %v3267_v9  ;;  %v3365_v27 = vpop.f32.mrf.mxu3  ;;  %v3269_v38 = vpop.f32.mrf.mxu1 }
 0x476   : > { %v6629_v23 = vadd.f32 %v3365_v27, %v3317_v10  ;;  %v5103_v10 = vld [vmem:[#allocation11 + $0x190] sm:$0xff]  ;;  %v5117_v27 = vld [vmem:[#allocation11 + $0x200] sm:$0xff] }
 0x477   : > { %3884 = vmatpush.bf16.msra.mxu0 %v5103_v10  ;;  %3984 = vmatpush.bf16.msra.mxu2 %v5117_v27 }
 0x47b   : > { %v3318_v12 = vpop.f32.mrf.mxu2 }
 0x47c   : > { %v3319_v18 = vadd.f32 %v3318_v12, %v3269_v38  ;;  %v3367_v60 = vpop.f32.mrf.mxu3  ;;  %v3272_v4 = vpop.f32.mrf.mxu1  ;;  %v5102_v38 = vld [vmem:[#allocation11 + $0x188] sm:$0xff] }
 0x47d   : > { %3885 = vmatpush.bf16.msra.mxu0 %v5102_v38 }
 0x47e   : > { %v6631_v59 = vadd.f32 %v3367_v60, %v3319_v18  ;;  %v5109_v60 = vld [vmem:[#allocation11 + $0x1c0] sm:$0xff] }
 0x47f   : > { %3562 = vmatmul.bf16.gmra.mxu1 %v6523_v61 }
 0x480   : > { %3611 = vmatmul.bf16.gmra.mxu2 %v6535_v33  ;;  %3935 = vmatpush.bf16.msra.mxu1 %v5109_v60 }
 0x481   : > { %3660 = vmatmul.bf16.gmra.mxu3 %v6540_v56 }
 0x483   : > { %v3321_v0 = vpop.f32.mrf.mxu2 }
 0x484   : > { %v3322_v5 = vadd.f32 %v3321_v0, %v3272_v4  ;;  %v3370_v53 = vpop.f32.mrf.mxu3  ;;  %v3274_v52 = vpop.f32.mrf.mxu1  ;;  %v5101_v0 = vld [vmem:[#allocation11 + $0x180] sm:$0xff] }
 0x485   : > { %3886 = vmatpush.bf16.msra.mxu0 %v5101_v0 }
 0x486   : > { %v6636_v41 = vadd.f32 %v3370_v53, %v3322_v5 }
 0x488   : > { %3887 = vmatmul.bf16.vlgmr.msra.gmra.mxu0 %v6509_v43 }
 0x48b   : > { %v3323_v50 = vpop.f32.mrf.mxu2 }
 0x48c   : > { %v3324_v58 = vadd.f32 %v3323_v50, %v3274_v52  ;;  %v3372_v63 = vpop.f32.mrf.mxu3  ;;  %v3277_v21 = vpop.f32.mrf.mxu1 }
 0x48e   : > { %v6638_v30 = vadd.f32 %v3372_v63, %v3324_v58 }
 0x48f   : > { %3567 = vmatmul.bf16.gmra.mxu1 %v6537_v3 }
 0x490   : > { %3616 = vmatmul.bf16.gmra.mxu2 %v6549_v39 }
 0x491   : > { %3665 = vmatmul.bf16.gmra.mxu3 %v6554_v29 }
 0x493   : > { %v3326_v13 = vpop.f32.mrf.mxu2 }
 0x494   : > { %v3327_v1 = vadd.f32 %v3326_v13, %v3277_v21  ;;  %v3375_v20 = vpop.f32.mrf.mxu3  ;;  %v3279_v51 = vpop.f32.mrf.mxu1 }
 0x496   : > { %v6643_v54 = vadd.f32 %v3375_v20, %v3327_v1 }
 0x498   : > { %3892 = vmatmul.bf16.gmra.mxu0 %v6523_v61 }
 0x49b   : > { %v3328_v28 = vpop.f32.mrf.mxu2 }
 0x49c   : > { %v3329_v37 = vadd.f32 %v3328_v28, %v3279_v51  ;;  %v3377_v9 = vpop.f32.mrf.mxu3  ;;  %v3282_v48 = vpop.f32.mrf.mxu1 }
 0x49e   : > { %v6645_v35 = vadd.f32 %v3377_v9, %v3329_v37 }
 0x49f   : > { %3572 = vmatmul.bf16.gmra.mxu1 %v6551_v62 }
 0x4a0   : > { %3621 = vmatmul.bf16.gmra.mxu2 %v6563_v42 }
 0x4a1   : > { %3670 = vmatmul.bf16.gmra.mxu3 %v6568_v47 }
 0x4a3   : > { %v3331_v6 = vpop.f32.mrf.mxu2 }
 0x4a4   : > { %v3332_v12 = vadd.f32 %v3331_v6, %v3282_v48  ;;  %v3380_v18 = vpop.f32.mrf.mxu3  ;;  %v3284_v4 = vpop.f32.mrf.mxu1 }
 0x4a6   : > { %v6650_v49 = vadd.f32 %v3380_v18, %v3332_v12 }
 0x4a8   : > { %3897 = vmatmul.bf16.gmra.mxu0 %v6537_v3 }
 0x4ab   : > { %v3333_v5 = vpop.f32.mrf.mxu2 }
 0x4ac   : > { %v3334_v53 = vadd.f32 %v3333_v5, %v3284_v4  ;;  %v3382_v44 = vpop.f32.mrf.mxu3  ;;  %v3287_v52 = vpop.f32.mrf.mxu1 }
 0x4ae   : > { %v6653_v50 = vadd.f32 %v3382_v44, %v3334_v53 }
 0x4af   : > { %3577 = vmatmul.bf16.gmra.mxu1 %v6565_v11 }
 0x4b0   : > { %3626 = vmatmul.bf16.gmra.mxu2 %v6577_v40 }
 0x4b1   : > { %3675 = vmatmul.bf16.gmra.mxu3 %v6582_v14 }
 0x4b3   : > { %v3336_v2 = vpop.f32.mrf.mxu2 }
 0x4b4   : > { %v3337_v58 = vadd.f32 %v3336_v2, %v3287_v52  ;;  %v3385_v63 = vpop.f32.mrf.mxu3  ;;  %v3289_v21 = vpop.f32.mrf.mxu1 }
 0x4b6   : > { %v6658_v16 = vadd.f32 %v3385_v63, %v3337_v58 }
 0x4b8   : > { %3902 = vmatmul.bf16.gmra.mxu0 %v6551_v62 }
 0x4bb   : > { %v3338_v45 = vpop.f32.mrf.mxu2 }
 0x4bc   : > { %v3339_v13 = vadd.f32 %v3338_v45, %v3289_v21  ;;  %v3387_v15 = vpop.f32.mrf.mxu3  ;;  %v3292_v43 = vpop.f32.mrf.mxu1 }
 0x4be   : > { %v6661_v1 = vadd.f32 %v3387_v15, %v3339_v13  ;;  %v5052_v13 = vld [vmem:[#allocation3 + $0x6c] sm:$0xff] }
 0x4bf   : > { %3582 = vmatmul.bf16.gmra.mxu1 %v6579_v8 }
 0x4c0   : > { %3631 = vmatmul.bf16.gmra.mxu2 %v6591_v36 }
 0x4c1   : > { %3680 = vmatmul.bf16.gmra.mxu3 %v6596_v31 }
 0x4c3   : > { %v3341_v20 = vpop.f32.mrf.mxu2 }
 0x4c4   : > { %v3342_v24 = vadd.f32 %v3341_v20, %v3292_v43  ;;  %v3390_v51 = vpop.f32.mrf.mxu3  ;;  %v3294_v34 = vpop.f32.mrf.mxu1 }
 0x4c6   : > { %v6666_v28 = vadd.f32 %v3390_v51, %v3342_v24  ;;  %v2746_v24 = vld [vmem:[#allocation3 + $0x74] sm:$0x1] }
 0x4c8   : > { %3907 = vmatmul.bf16.gmra.mxu0 %v6565_v11 }
 0x4cb   : > { %v3343_v46 = vpop.f32.mrf.mxu2 }
 0x4cc   : > { %v3344_v37 = vadd.f32 %v3343_v46, %v3294_v34  ;;  %v3392_v9 = vpop.f32.mrf.mxu3  ;;  %v3548_v61 = vpop.f32.mrf.mxu1  ;;  %v2826_v46 = vunpack.c.l.b16 %v2746_v24 }
 0x4cd   : > { %v3549_v10 = vadd.f32 %v3548_v61, %v6615_v17 }
 0x4ce   : > { %v6669_v48 = vadd.f32 %v3392_v9, %v3344_v37 }
 0x4cf   : > { %3936 = vmatmul.bf16.vlgmr.msra.gmra.mxu1 %v6521_v22 }
 0x4d0   : > { %3985 = vmatmul.bf16.vlgmr.msra.gmra.mxu2 %v6526_v19 }
 0x4d3   : > { %v3597_v27 = vpop.f32.mrf.mxu2 }
 0x4d4   : > { %v6674_v6 = vadd.f32 %v3597_v27, %v3549_v10  ;;  %v3550_v38 = vpop.f32.mrf.mxu1  ;;  %v2946_v27 = vshrl.u32 %v5052_v13, 16 }
 0x4d5   : > { %v3551_v12 = vadd.f32 %v3550_v38, %v6617_v55 }
 0x4d8   : > { %3912 = vmatmul.bf16.gmra.mxu0 %v6579_v8 }
 0x4db   : > { %v3599_v18 = vpop.f32.mrf.mxu2 }
 0x4dc   : > { %v6677_v60 = vadd.f32 %v3599_v18, %v3551_v12  ;;  %v3553_v3 = vpop.f32.mrf.mxu1 }
 0x4dd   : > { %v3554_v4 = vadd.f32 %v3553_v3, %v6622_v25 }
 0x4df   : > { %3941 = vmatmul.bf16.gmra.mxu1 %v6535_v33 }
 0x4e0   : > { %3990 = vmatmul.bf16.gmra.mxu2 %v6540_v56 }
 0x4e3   : > { %v3602_v22 = vpop.f32.mrf.mxu2 }
 0x4e4   : > { %v6683_v19 = vadd.f32 %v3602_v22, %v3554_v4  ;;  %v3555_v17 = vpop.f32.mrf.mxu1 }
 0x4e5   : > { %v3556_v0 = vadd.f32 %v3555_v17, %v6624_v7 }
 0x4e8   : > { %3917 = vmatmul.bf16.gmra.mxu0 %v6593_v26 }
 0x4eb   : > { %v3604_v5 = vpop.f32.mrf.mxu2 }
 0x4ec   : > { %v6686_v55 = vadd.f32 %v3604_v5, %v3556_v0  ;;  %v3558_v53 = vpop.f32.mrf.mxu1 }
 0x4ed   : > { %v3559_v62 = vadd.f32 %v3558_v53, %v6629_v23 }
 0x4ef   : > { %3946 = vmatmul.bf16.gmra.mxu1 %v6549_v39 }
 0x4f0   : > { %3995 = vmatmul.bf16.gmra.mxu2 %v6554_v29 }
 0x4f3   : > { %v3607_v33 = vpop.f32.mrf.mxu2 }
 0x4f4   : > { %v6692_v56 = vadd.f32 %v3607_v33, %v3559_v62  ;;  %v3560_v25 = vpop.f32.mrf.mxu1 }
 0x4f5   : > { %v3561_v44 = vadd.f32 %v3560_v25, %v6631_v59 }
 0x4f8   : > { %3922 = vmatmul.bf16.gmra.mxu0 %v5052_v13 }
 0x4fb   : > { %v3609_v52 = vpop.f32.mrf.mxu2 }
 0x4fc   : > { %v6695_v7 = vadd.f32 %v3609_v52, %v3561_v44  ;;  %v3563_v2 = vpop.f32.mrf.mxu1 }
 0x4fd   : > { %v3564_v11 = vadd.f32 %v3563_v2, %v6636_v41 }
 0x4ff   : > { %3951 = vmatmul.bf16.gmra.mxu1 %v6563_v42 }
 0x500   : > { %4000 = vmatmul.bf16.gmra.mxu2 %v6568_v47 }
 0x503   : > { %v3612_v39 = vpop.f32.mrf.mxu2 }
 0x504   : > { %v6701_v29 = vadd.f32 %v3612_v39, %v3564_v11  ;;  %v3565_v23 = vpop.f32.mrf.mxu1 }
 0x505   : > { %v3566_v58 = vadd.f32 %v3565_v23, %v6638_v30  ;;  %v3888_v61 = vpop.f32.mrf.mxu0 }
 0x50b   : > { %v3614_v63 = vpop.f32.mrf.mxu2 }
 0x50c   : > { %v6704_v59 = vadd.f32 %v3614_v63, %v3566_v58  ;;  %v3568_v21 = vpop.f32.mrf.mxu1 }
 0x50d   : > { %v3569_v8 = vadd.f32 %v3568_v21, %v6643_v54  ;;  %v3890_v62 = vpop.f32.mrf.mxu0 }
 0x50f   : > { %3956 = vmatmul.bf16.gmra.mxu1 %v6577_v40 }
 0x510   : > { %4005 = vmatmul.bf16.gmra.mxu2 %v6582_v14 }
 0x513   : > { %v3617_v42 = vpop.f32.mrf.mxu2 }
 0x514   : > { %v6710_v47 = vadd.f32 %v3617_v42, %v3569_v8  ;;  %v3570_v41 = vpop.f32.mrf.mxu1 }
 0x515   : > { %v3571_v45 = vadd.f32 %v3570_v41, %v6645_v35  ;;  %v3893_v11 = vpop.f32.mrf.mxu0 }
 0x51b   : > { %v3619_v30 = vpop.f32.mrf.mxu2 }
 0x51c   : > { %v6713_v15 = vadd.f32 %v3619_v30, %v3571_v45  ;;  %v3573_v43 = vpop.f32.mrf.mxu1  ;;  %v6743_v45 = vld [vmem:[%s6944_s5] ss:$0 sm:$0xff]  ;;  %v4062_v30 = vld [vmem:[%s5676_s21] sm:$0xff] }
 0x51d   : > { %v3574_v26 = vadd.f32 %v3573_v43, %v6650_v49  ;;  %v3646_v49 = vpop.f32.mrf.mxu3  ;;  %v3895_v8 = vpop.f32.mrf.mxu0 }
 0x51e   : > { %v3647_v42 = vadd.f32 %v3646_v49, %v6674_v6 }
 0x51f   : > { %3961 = vmatmul.bf16.gmra.mxu1 %v6591_v36  ;;  %v2836_v36 = vpack.c.b16 %v2826_v46, %v2826_v46 }
 0x520   : > { %4010 = vmatmul.bf16.gmra.mxu2 %v6596_v31  ;;  %v2948_v31 = vshll.u32 %v5052_v13, 16 }
 0x521   : > { %v2953_v12 = vshll.u32 %v2836_v36, 16  ;;  %v2995_v22 = vrot.slane %v2836_v36, 1 }
 0x522   : > { %v2950_v38 = vrot.slane %v2948_v31, 1 }
 0x523   : > { %v3622_v40 = vpop.f32.mrf.mxu2  ;;  %v2955_v4 = vrot.slane %v2953_v12, 1 }
 0x524   : > { %v6718_v14 = vadd.f32 %v3622_v40, %v3574_v26  ;;  %v3575_v54 = vpop.f32.mrf.mxu1  ;;  %v2951_v3 = vor.u32 %v2950_v38, %v2946_v27 }
 0x525   : > { %v3576_v20 = vadd.f32 %v3575_v54, %v6653_v50  ;;  %v3648_v17 = vpop.f32.mrf.mxu3  ;;  %v3898_v24 = vpop.f32.mrf.mxu0 }
 0x526   : > { %v2956_v5 = vsel %vm1035_vm13, %v2951_v3, %v2955_v4  ;;  %v3649_v6 = vadd.f32 %v3648_v17, %v6677_v60 }
 0x52b   : > { %v3624_v35 = vpop.f32.mrf.mxu2 }
 0x52c   : > { %v6721_v51 = vadd.f32 %v3624_v35, %v3576_v20  ;;  %v3578_v34 = vpop.f32.mrf.mxu1 }
 0x52d   : > { %v3579_v37 = vadd.f32 %v3578_v34, %v6658_v16  ;;  %v2994_v16 = vrot.slane %v5052_v13, 1  ;;  %v3651_v52 = vpop.f32.mrf.mxu3  ;;  %v3900_v60 = vpop.f32.mrf.mxu0 }
 0x52f   : > { %3966 = vmatmul.bf16.gmra.mxu1 %v6605_v32  ;;  %v2996_v53 = vsel %vm1192_vm14, %v2994_v16, %v2995_v22 }
 0x530   : > { %4015 = vmatmul.bf16.gmra.mxu2 %v6608_v57 }
 0x533   : > { %v3627_v9 = vpop.f32.mrf.mxu2 }
 0x534   : > { %v6726_v10 = vadd.f32 %v3627_v9, %v3579_v37  ;;  %v3580_v50 = vpop.f32.mrf.mxu1  ;;  %v4063_v37 = vld [vmem:[%s5676_s21 + $0x8] sm:$0xff] }
 0x535   : > { %v3581_v18 = vadd.f32 %v3580_v50, %v6661_v1  ;;  %v3653_v63 = vpop.f32.mrf.mxu3 }
 0x53b   : > { %v3629_v32 = vpop.f32.mrf.mxu2 }
 0x53c   : > { %v6729_v57 = vadd.f32 %v3629_v32, %v3581_v18  ;;  %v3583_v0 = vpop.f32.mrf.mxu1  ;;  %v4064_v18 = vld [vmem:[%s5676_s21 + $0x10] sm:$0xff]  ;;  %v3654_v32 = vadd.f32 %v3653_v63, %v6686_v55 }
 0x53d   : > { %v3584_v33 = vadd.f32 %v3583_v0, %v6666_v28  ;;  %v3656_v26 = vpop.f32.mrf.mxu3 }
 0x53f   : > { %3971 = vmatmul.bf16.gmra.mxu1 %v2956_v5 }
 0x540   : > { %4020 = vmatmul.bf16.gmra.mxu2 %v2996_v53  ;;  %v4065_v53 = vld [vmem:[%s5676_s21 + $0x18] sm:$0xff] }
 0x543   : > { %v3632_v25 = vpop.f32.mrf.mxu2 }
 0x544   : > { %v6734_v1 = vadd.f32 %v3632_v25, %v3584_v33  ;;  %v3585_v44 = vpop.f32.mrf.mxu1 }
 0x545   : > { %v3586_v2 = vadd.f32 %v3585_v44, %v6669_v48  ;;  %v3658_v50 = vpop.f32.mrf.mxu3 }
 0x54b   : > { %v3634_v39 = vpop.f32.mrf.mxu2 }
 0x54c   : > { %v6737_v23 = vadd.f32 %v3634_v39, %v3586_v2  ;;  %v3937_v58 = vpop.f32.mrf.mxu1  ;;  %v3657_v2 = vadd.f32 %v3656_v26, %v6692_v56 }
 0x54d   : > { %v3938_v21 = vadd.f32 %v3937_v58, %v3888_v61  ;;  %v3652_v61 = vadd.f32 %v3651_v52, %v6683_v19  ;;  %v3661_v0 = vpop.f32.mrf.mxu3  ;;  %v4066_v58 = vld [vmem:[%s5676_s21 + $0x20] sm:$0xff] }
 0x553   : > { %v3986_v28 = vpop.f32.mrf.mxu2 }
 0x554   : > { %v3987_v41 = vadd.f32 %v3986_v28, %v3938_v21  ;;  %v3939_v48 = vpop.f32.mrf.mxu1 }
 0x555   : > { %v3940_v54 = vadd.f32 %v3939_v48, %v3890_v62  ;;  %v3903_v62 = vpop.f32.mrf.mxu0  ;;  %v3663_v63 = vpop.f32.mrf.mxu3  ;;  %v3659_v48 = vadd.f32 %v3658_v50, %v6695_v7 }
 0x556   : > { %v4026_v13 = vadd.f32 %v3987_v41, %v3647_v42 }
 0x558   : > { %v4046_v43 = vadd.f32 %v6743_v45, %v4026_v13 }
 0x55a   : > { %v4078_v40 = vadd.f32 %v4062_v30, %v4046_v43  ;;  %v4067_v43 = vld [vmem:[%s5676_s21 + $0x28] sm:$0xff] }
 0x55b   : > { %v3988_v20 = vpop.f32.mrf.mxu2 }
 0x55c   : > { %4094 = vst [vmem:[%s5706_s14] sm:$0xff] %v4078_v40  ;;  %v3989_v35 = vadd.f32 %v3988_v20, %v3940_v54  ;;  %v3942_v34 = vpop.f32.mrf.mxu1 }
 0x55d   : > { %v3943_v31 = vadd.f32 %v3942_v34, %v3893_v11  ;;  %v3666_v54 = vpop.f32.mrf.mxu3 }
 0x55e   : > { %v4027_v46 = vadd.f32 %v3989_v35, %v3649_v6  ;;  %v3662_v35 = vadd.f32 %v3661_v0, %v6701_v29  ;;  %v4070_v0 = vld [vmem:[%s5676_s21 + $0x40] sm:$0xff] }
 0x560   : > { %v4047_v36 = vadd.f32 %v6743_v45, %v4027_v46 }
 0x562   : > { %v4079_v49 = vadd.f32 %v4063_v37, %v4047_v36  ;;  %v4068_v37 = vld [vmem:[%s5676_s21 + $0x30] sm:$0xff] }
 0x563   : > { %v3991_v9 = vpop.f32.mrf.mxu2 }
 0x564   : > { %4095 = vst [vmem:[%s5706_s14 + $0x8] sm:$0xff] %v4079_v49  ;;  %v3992_v27 = vadd.f32 %v3991_v9, %v3943_v31  ;;  %v3944_v38 = vpop.f32.mrf.mxu1 }
 0x565   : > { %v3945_v16 = vadd.f32 %v3944_v38, %v3895_v8  ;;  %v3905_v8 = vpop.f32.mrf.mxu0  ;;  %v3668_v50 = vpop.f32.mrf.mxu3 }
 0x566   : > { %v4028_v12 = vadd.f32 %v3992_v27, %v3652_v61  ;;  %v3664_v61 = vadd.f32 %v3663_v63, %v6704_v59 }
 0x568   : > { %v4048_v3 = vadd.f32 %v6743_v45, %v4028_v12  ;;  %v4069_v12 = vld [vmem:[%s5676_s21 + $0x38] sm:$0xff] }
 0x56a   : > { %v4080_v4 = vadd.f32 %v4064_v18, %v4048_v3 }
 0x56b   : > { %v3993_v22 = vpop.f32.mrf.mxu2 }
 0x56c   : > { %4096 = vst [vmem:[%s5706_s14 + $0x10] sm:$0xff] %v4080_v4  ;;  %v3994_v17 = vadd.f32 %v3993_v22, %v3945_v16  ;;  %v3947_v19 = vpop.f32.mrf.mxu1  ;;  %v3667_v22 = vadd.f32 %v3666_v54, %v6710_v47 }
 0x56d   : > { %v3948_v25 = vadd.f32 %v3947_v19, %v3898_v24  ;;  %v3908_v6 = vpop.f32.mrf.mxu0 }
 0x56e   : > { %v4029_v5 = vadd.f32 %v3994_v17, %v3654_v32  ;;  %v3671_v17 = vpop.f32.mrf.mxu3 }
 0x570   : > { %v4049_v33 = vadd.f32 %v6743_v45, %v4029_v5 }
 0x572   : > { %v4081_v44 = vadd.f32 %v4065_v53, %v4049_v33 }
 0x573   : > { %v3996_v52 = vpop.f32.mrf.mxu2 }
 0x574   : > { %4097 = vst [vmem:[%s5706_s14 + $0x18] sm:$0xff] %v4081_v44  ;;  %v3997_v11 = vadd.f32 %v3996_v52, %v3948_v25  ;;  %v3949_v55 = vpop.f32.mrf.mxu1  ;;  %v3669_v44 = vadd.f32 %v3668_v50, %v6713_v15 }
 0x575   : > { %v3950_v42 = vadd.f32 %v3949_v55, %v3900_v60  ;;  %v3910_v29 = vpop.f32.mrf.mxu0 }
 0x576   : > { %v4030_v39 = vadd.f32 %v3997_v11, %v3657_v2  ;;  %v4071_v11 = vld [vmem:[%s5676_s21 + $0x48] sm:$0xff]  ;;  %v3673_v55 = vpop.f32.mrf.mxu3 }
 0x577   : > { %v3674_v54 = vadd.f32 %v3673_v55, %v6721_v51  ;;  %v4077_v55 = vld [vmem:[%s5676_s21 + $0x78] sm:$0xff] }
 0x578   : > { %v4050_v21 = vadd.f32 %v6743_v45, %v4030_v39 }
 0x57a   : > { %v4082_v28 = vadd.f32 %v4066_v58, %v4050_v21 }
 0x57b   : > { %v3998_v41 = vpop.f32.mrf.mxu2 }
 0x57c   : > { %4098 = vst [vmem:[%s5706_s14 + $0x20] sm:$0xff] %v4082_v28  ;;  %v3999_v13 = vadd.f32 %v3998_v41, %v3950_v42  ;;  %v3952_v56 = vpop.f32.mrf.mxu1  ;;  %v3672_v28 = vadd.f32 %v3671_v17, %v6718_v14 }
 0x57d   : > { %v3953_v40 = vadd.f32 %v3952_v56, %v3903_v62  ;;  %v3913_v5 = vpop.f32.mrf.mxu0 }
 0x57e   : > { %v4031_v30 = vadd.f32 %v3999_v13, %v3659_v48  ;;  %v4072_v48 = vld [vmem:[%s5676_s21 + $0x50] sm:$0xff]  ;;  %v3676_v56 = vpop.f32.mrf.mxu3 }
 0x580   : > { %v4051_v26 = vadd.f32 %v6743_v45, %v4031_v30 }
 0x582   : > { %v4083_v20 = vadd.f32 %v4067_v43, %v4051_v26 }
 0x583   : > { %v4001_v24 = vpop.f32.mrf.mxu2 }
 0x584   : > { %4099 = vst [vmem:[%s5706_s14 + $0x28] sm:$0xff] %v4083_v20  ;;  %v4002_v34 = vadd.f32 %v4001_v24, %v3953_v40  ;;  %v3954_v7 = vpop.f32.mrf.mxu1 }
 0x585   : > { %v3955_v49 = vadd.f32 %v3954_v7, %v3905_v8  ;;  %v3915_v63 = vpop.f32.mrf.mxu0 }
 0x586   : > { %v4032_v46 = vadd.f32 %v4002_v34, %v3662_v35 }
 0x588   : > { %v4052_v36 = vadd.f32 %v6743_v45, %v4032_v46 }
 0x58a   : > { %v4084_v31 = vadd.f32 %v4068_v37, %v4052_v36  ;;  %v3677_v37 = vadd.f32 %v3676_v56, %v6726_v10  ;;  %v3678_v36 = vpop.f32.mrf.mxu3 }
 0x58b   : > { %v4003_v9 = vpop.f32.mrf.mxu2 }
 0x58c   : > { %4100 = vst [vmem:[%s5706_s14 + $0x30] sm:$0xff] %v4084_v31  ;;  %v4004_v27 = vadd.f32 %v4003_v9, %v3955_v49  ;;  %v3957_v38 = vpop.f32.mrf.mxu1 }
 0x58d   : > { %v3958_v3 = vadd.f32 %v3957_v38, %v3908_v6  ;;  %v3918_v26 = vpop.f32.mrf.mxu0  ;;  %v4073_v6 = vld [vmem:[%s5676_s21 + $0x58] sm:$0xff] }
 0x58e   : > { %v4033_v60 = vadd.f32 %v4004_v27, %v3664_v61  ;;  %v4074_v61 = vld [vmem:[%s5676_s21 + $0x60] sm:$0xff] }
 0x590   : > { %v4053_v18 = vadd.f32 %v6743_v45, %v4033_v60  ;;  %v3679_v60 = vadd.f32 %v3678_v36, %v6729_v57 }
 0x592   : > { %v4085_v4 = vadd.f32 %v4069_v12, %v4053_v18 }
 0x593   : > { %v4006_v16 = vpop.f32.mrf.mxu2 }
 0x594   : > { %4101 = vst [vmem:[%s5706_s14 + $0x38] sm:$0xff] %v4085_v4  ;;  %v4007_v32 = vadd.f32 %v4006_v16, %v3958_v3  ;;  %v3959_v59 = vpop.f32.mrf.mxu1  ;;  %v3681_v3 = vpop.f32.mrf.mxu3  ;;  %v4075_v16 = vld [vmem:[%s5676_s21 + $0x68] sm:$0xff] }
 0x595   : > { %v3960_v33 = vadd.f32 %v3959_v59, %v3910_v29  ;;  %v3920_v49 = vpop.f32.mrf.mxu0 }
 0x596   : > { %v4034_v19 = vadd.f32 %v4007_v32, %v3667_v22 }
 0x598   : > { %v4054_v53 = vadd.f32 %v6743_v45, %v4034_v19  ;;  %v3682_v19 = vadd.f32 %v3681_v3, %v6734_v1 }
 0x59a   : > { %v4086_v62 = vadd.f32 %v4070_v0, %v4054_v53 }
 0x59b   : > { %v4008_v25 = vpop.f32.mrf.mxu2 }
 0x59c   : > { %4102 = vst [vmem:[%s5706_s14 + $0x40] sm:$0xff] %v4086_v62  ;;  %v4009_v52 = vadd.f32 %v4008_v25, %v3960_v33  ;;  %v3962_v47 = vpop.f32.mrf.mxu1  ;;  %v3683_v33 = vpop.f32.mrf.mxu3 }
 0x59d   : > { %v3963_v58 = vadd.f32 %v3962_v47, %v3913_v5  ;;  %v3923_v4 = vpop.f32.mrf.mxu0  ;;  %v4076_v5 = vld [vmem:[%s5676_s21 + $0x70] sm:$0xff]  ;;  %v3684_v1 = vadd.f32 %v3683_v33, %v6737_v23 }
 0x59e   : > { %v4035_v2 = vadd.f32 %v4009_v52, %v3669_v44 }
 0x5a0   : > { %v4055_v39 = vadd.f32 %v6743_v45, %v4035_v2 }
 0x5a2   : > { %v4087_v21 = vadd.f32 %v4071_v11, %v4055_v39 }
 0x5a3   : > { %v4011_v8 = vpop.f32.mrf.mxu2 }
 0x5a4   : > { %4103 = vst [vmem:[%s5706_s14 + $0x48] sm:$0xff] %v4087_v21  ;;  %v4012_v42 = vadd.f32 %v4011_v8, %v3963_v58  ;;  %v3964_v15 = vpop.f32.mrf.mxu1 }
 0x5a5   : > { %v3965_v43 = vadd.f32 %v3964_v15, %v3915_v63  ;;  %v3925_v25 = vpop.f32.mrf.mxu0 }
 0x5a6   : > { %v4036_v41 = vadd.f32 %v4012_v42, %v3672_v28 }
 0x5a8   : > { %v4056_v13 = vadd.f32 %v6743_v45, %v4036_v41 }
 0x5aa   : > { %v4088_v30 = vadd.f32 %v4072_v48, %v4056_v13 }
 0x5ab   : > { %v4013_v40 = vpop.f32.mrf.mxu2 }
 0x5ac   : > { %4104 = vst [vmem:[%s5706_s14 + $0x50] sm:$0xff] %v4088_v30  ;;  %v4014_v20 = vadd.f32 %v4013_v40, %v3965_v43  ;;  %v3967_v14 = vpop.f32.mrf.mxu1 }
 0x5ad   : > { %v3968_v34 = vadd.f32 %v3967_v14, %v3918_v26 }
 0x5ae   : > { %v4037_v24 = vadd.f32 %v4014_v20, %v3674_v54 }
 0x5b0   : > { %v4057_v35 = vadd.f32 %v6743_v45, %v4037_v24 }
 0x5b2   : > { %v4089_v7 = vadd.f32 %v4073_v6, %v4057_v35 }
 0x5b3   : > { %v4016_v46 = vpop.f32.mrf.mxu2 }
 0x5b4   : > { %4105 = vst [vmem:[%s5706_s14 + $0x58] sm:$0xff] %v4089_v7  ;;  %v4017_v31 = vadd.f32 %v4016_v46, %v3968_v34  ;;  %v3969_v51 = vpop.f32.mrf.mxu1 }
 0x5b5   : > { %v3970_v38 = vadd.f32 %v3969_v51, %v3920_v49 }
 0x5b6   : > { %v4038_v9 = vadd.f32 %v4017_v31, %v3677_v37 }
 0x5b8   : > { %v4058_v50 = vadd.f32 %v6743_v45, %v4038_v9 }
 0x5ba   : > { %v4090_v27 = vadd.f32 %v4074_v61, %v4058_v50 }
 0x5bb   : > { %v4018_v29 = vpop.f32.mrf.mxu2 }
 0x5bc   : > { %4106 = vst [vmem:[%s5706_s14 + $0x60] sm:$0xff] %v4090_v27  ;;  %v4019_v10 = vadd.f32 %v4018_v29, %v3970_v38  ;;  %v3972_v12 = vpop.f32.mrf.mxu1 }
 0x5bd   : > { %v3973_v32 = vadd.f32 %v3972_v12, %v3923_v4 }
 0x5be   : > { %v4039_v18 = vadd.f32 %v4019_v10, %v3679_v60 }
 0x5c0   : > { %v4059_v22 = vadd.f32 %v6743_v45, %v4039_v18 }
 0x5c2   : > { %v4091_v59 = vadd.f32 %v4075_v16, %v4059_v22 }
 0x5c3   : > { %v4021_v17 = vpop.f32.mrf.mxu2 }
 0x5c4   : > { %4107 = vst [vmem:[%s5706_s14 + $0x68] sm:$0xff] %v4091_v59  ;;  %v4022_v57 = vadd.f32 %v4021_v17, %v3973_v32  ;;  %v3974_v53 = vpop.f32.mrf.mxu1 }
 0x5c5   : > { %v3975_v52 = vadd.f32 %v3974_v53, %v3925_v25 }
 0x5c6   : > { %v4040_v0 = vadd.f32 %v4022_v57, %v3682_v19 }
 0x5c8   : > { %v4060_v62 = vadd.f32 %v6743_v45, %v4040_v0 }
 0x5ca   : > { %v4092_v44 = vadd.f32 %v4076_v5, %v4060_v62 }
 0x5cb   : > { %v4023_v47 = vpop.f32.mrf.mxu2 }
 0x5cc   : > { %4108 = vst [vmem:[%s5706_s14 + $0x70] sm:$0xff] %v4092_v44  ;;  %v4024_v2 = vadd.f32 %v4023_v47, %v3975_v52 }
 0x5ce   : > { %v4041_v11 = vadd.f32 %v4024_v2, %v3684_v1 }
 0x5d0   : > { %v4061_v39 = vadd.f32 %v6743_v45, %v4041_v11 }
 0x5d2   : > { %v4093_v58 = vadd.f32 %v4077_v55, %v4061_v39 }
 0x5d4   : > { %4109 = vst [vmem:[%s5706_s14 + $0x78] sm:$0xff] %v4093_v58 }
 0x5d5   : > { %5420 = shalt.err (!%p5417_p3)
}
 0x5d6   : > { %s5513_s2 = smov 128   ;;  %s5514_s14 = smov 8  }
 0x5d7   : > { %5152 = dma.vmem_to_hbm [thread:$0]  (%p5645_p5), %s4127_s12, 2048, %s4129_s8, %s4111_s13, %s5513_s2, %s5513_s2, %s5514_s14  }
 0x5d8 PF: > { %s6947_s5 = sld [smem:[#allocation24_spill]]  ;;  %p5174_p7 = scmp.ge.s32.totalorder %s5499_s28, 2 }
 0x5da   : > { %p5166_p9 = pnand %p5174_p7, %p5609_p6 }
 0x5dc   : > { %p5167_p2 = pneg %p5166_p9 }
 0x5de   : > { %s4143_s19 = sand.u32 1, %s6947_s5  }
 0x5df   : > { %s4144_s9 = scalar_lea.sflag [#allocation8], %s4143_s19 }
 0x5e0   : > { %5466 = dma.done.wait (%p5167_p2), %s4144_s9, 2048  }
 0x5e1   : > { %5468 = vsyncadd (%p5167_p2), %s4144_s9, 4294965248  ;;  %s23_s28 = sadd.s32 1, %s5499_s28   ;;  %s6949_s20 = sld [smem:[#allocation26_spill]] }
 0x5e2   : > { %p20_p8 = scmp.ge.s32.totalorder %s23_s28, 6   ;;  %s6950_s21 = smov %s5475_s22 }
 0x5e3   : > { %s6951_s22 = smov %s5479_s23  ;;  %s6952_s23 = smov %s5658_s10 }
 0x5e4   : > { %s6953_s24 = smov %s5491_s26  ;;  %s6954_s25 = smov %s5495_s27 }
 0x5e5   : > { %s6956_s27 = smov %s6962_s15  ;;  %22 = sbr.rel (!%p20_p8) target bundleno = 14 (0xe), region = 133 }
 0x5e7   : > { %s6955_s26 = smov %s6949_s20 }
 0x5ea   :  { %4150 = vsyncpa [#allocation7], 1 }
 0x5eb   :  { %4152 = vsyncpa [#allocation7 + $0x1], 1 }
 0x5ec   :  { %4153 = vsyncpa [#allocation10], 1 }
 0x5ed   :  { %4154 = vsyncpa [#allocation8], 1 }
 0x5ee   :  { %4156 = vsyncpa [#allocation8 + $0x1], 1 }
 0x5ef   :  { %4157 = vsyncmov [#allocation5] }
 0x5f2   :  { %s4158_s29 = vpop.sfrf %4157 }
 0x5f3   :  { %p4956_p6 = scmp.ne.s32.totalorder %s4158_s29, 0 }
 0x5f5   :  { %4162 = shalt.err (%p4956_p6)  }
 0x5f6   :  { %4164 = vsyncmov [#allocation5 + $0x1] }
 0x5f9   :  { %s4165_s10 = vpop.sfrf %4164 }
 0x5fa   :  { %p4957_p5 = scmp.ne.s32.totalorder %s4165_s10, 0 }
 0x5fc   :  { %4169 = shalt.err (%p4957_p5)  }

</bundles_post_ra>
